<compile_context>
chip_gen: v7x
topology: tpu7x:2x2x1
jax: 0.10.0
libtpu: 0.0.40
codegen_flags: <defaults>
</compile_context>

<pallas_src>
import functools

import jax
import jax.numpy as jnp
from jax import lax
from jax.experimental import pallas as pl
from jax.experimental.pallas import tpu as pltpu

CPAD = 128        # lane-dense channel padding for conv outputs
HEAD_PAD = 128    # lane-dense padding for the (n_actions + 1) head output
TM_MAX = 256      # M-tile size when the row count is large


def _compiler_params():
    return pltpu.CompilerParams(
        dimension_semantics=("parallel",),
        vmem_limit_bytes=32 * 1024 * 1024,
    )


def _pick_tm(m):
    # Full block (always legal) for small M; 256-row tiles (8/128 aligned,
    # double-buffered, megacore-splittable) for large M.
    return m if m <= 512 else TM_MAX


# ----------------------------------------------------------------------------
# Pallas kernel 1: fused  y = act(x @ w + b)    (each conv lowered to matmul)
# ----------------------------------------------------------------------------
def _mm_bias_act_kernel(x_ref, w_ref, b_ref, o_ref, *, relu):
    y = jnp.dot(x_ref[...], w_ref[...], preferred_element_type=jnp.float32)
    y = y + b_ref[...]                      # (1, N) broadcasts over rows
    if relu:
        y = jnp.maximum(y, 0.0)
    o_ref[...] = y


def matmul_bias(x, w, b, *, relu):
    """x: (M, K) f32, w: (K, N) f32, b: (N,) f32 -> (M, N) f32."""
    M, K = x.shape
    K2, N = w.shape
    assert K == K2 and b.shape == (N,)
    TM = _pick_tm(M)
    grid_m = pl.cdiv(M, TM)
    cost = pl.CostEstimate(
        flops=2 * M * K * N,
        transcendentals=0,
        bytes_accessed=4 * (M * K + K * N + N + M * N),
    )
    return pl.pallas_call(
        functools.partial(_mm_bias_act_kernel, relu=relu),
        out_shape=jax.ShapeDtypeStruct((M, N), jnp.float32),
        grid=(grid_m,),
        in_specs=[
            pl.BlockSpec((TM, K), lambda i: (i, 0)),   # activations: M-tiled
            pl.BlockSpec((K, N), lambda i: (0, 0)),    # weights: resident
            pl.BlockSpec((1, N), lambda i: (0, 0)),    # bias: resident
        ],
        out_specs=pl.BlockSpec((TM, N), lambda i: (i, 0)),
        compiler_params=_compiler_params(),
        cost_estimate=cost,
    )(x, w, b.reshape(1, N))


# ----------------------------------------------------------------------------
# Pallas kernel 2: both heads, both layers, one call
#   h   = relu(flat @ W1 + b1)   with W1 = [p1 | v1]            (K, 1024)
#   out = h @ W2 + b2            with W2 = blockdiag(p2, v2) padded to 128
# ----------------------------------------------------------------------------
def _heads_kernel(x_ref, w1_ref, b1_ref, w2_ref, b2_ref, o_ref):
    h = jnp.dot(x_ref[...], w1_ref[...], preferred_element_type=jnp.float32)
    h = jnp.maximum(h + b1_ref[...], 0.0)
    y = jnp.dot(h, w2_ref[...], preferred_element_type=jnp.float32)
    o_ref[...] = y + b2_ref[...]


def fused_heads(flat, w1, b1, w2, b2):
    M, K = flat.shape
    K2, H = w1.shape
    H2, N = w2.shape
    assert K == K2 and H == H2 and b1.shape == (H,) and b2.shape == (N,)
    TM = _pick_tm(M)
    grid_m = pl.cdiv(M, TM)
    cost = pl.CostEstimate(
        flops=2 * M * K * H + 2 * M * H * N,
        transcendentals=0,
        bytes_accessed=4 * (M * K + K * H + H + H * N + N + M * N),
    )
    return pl.pallas_call(
        _heads_kernel,
        out_shape=jax.ShapeDtypeStruct((M, N), jnp.float32),
        grid=(grid_m,),
        in_specs=[
            pl.BlockSpec((TM, K), lambda i: (i, 0)),
            pl.BlockSpec((K, H), lambda i: (0, 0)),
            pl.BlockSpec((1, H), lambda i: (0, 0)),
            pl.BlockSpec((H, N), lambda i: (0, 0)),
            pl.BlockSpec((1, N), lambda i: (0, 0)),
        ],
        out_specs=pl.BlockSpec((TM, N), lambda i: (i, 0)),
        compiler_params=_compiler_params(),
        cost_estimate=cost,
    )(flat, w1, b1.reshape(1, H), w2, b2.reshape(1, N))


# ----------------------------------------------------------------------------
# One-time parameter preparation (reorder / pad / fuse-scale)
# ----------------------------------------------------------------------------
def _conv_w2d(w_oihw, b, cin_pad, cout_pad, scale=1.0):
    """OIHW conv weight -> (cin_pad*kh*kw, cout_pad) matmul weight.

    Row ordering is (c, i, j) with c slowest, matching
    lax.conv_general_dilated_patches' output-feature ordering.
    """
    O, Cin, kh, kw = w_oihw.shape
    w2d = jnp.transpose(w_oihw, (1, 2, 3, 0)).astype(jnp.float32) * scale  # (Cin,kh,kw,O)
    w2d = w2d.reshape(Cin, kh * kw, O)
    if cin_pad > Cin:
        w2d = jnp.pad(w2d, ((0, cin_pad - Cin), (0, 0), (0, 0)))
    w2d = w2d.reshape(cin_pad * kh * kw, O)
    b = b.astype(jnp.float32)
    if cout_pad > O:
        w2d = jnp.pad(w2d, ((0, 0), (0, cout_pad - O)))
        b = jnp.pad(b, (0, cout_pad - O))
    return w2d, b


def prepare_params(params, input_shape, n_actions):
    C, H, W = input_shape
    H1, W1 = (H - 8) // 4 + 1, (W - 8) // 4 + 1
    H2, W2 = (H1 - 4) // 2 + 1, (W1 - 4) // 2 + 1
    H3, W3 = H2 - 3 + 1, W2 - 3 + 1

    # 1/256 input prescale folded into conv1 weights (bias untouched).
    c1_w2d, c1_b = _conv_w2d(params["c1_w"], params["c1_b"], C, CPAD, scale=1.0 / 256.0)
    c2_w2d, c2_b = _conv_w2d(params["c2_w"], params["c2_b"], CPAD, CPAD)
    c3_w2d, c3_b = _conv_w2d(params["c3_w"], params["c3_b"], CPAD, CPAD)

    # Head layer 1: concat policy|value, permute rows from PyTorch NCHW-flatten
    # order (c, h, w) to the padded NHWC-flatten order (h, w, c_pad).
    conv_c = params["c3_w"].shape[0]                                  # 64 real channels
    w1 = jnp.concatenate([params["p1_w"], params["v1_w"]], axis=1)    # (conv_out, 1024)
    hid = w1.shape[1]
    assert w1.shape[0] == conv_c * H3 * W3
    w1 = w1.reshape(conv_c, H3, W3, hid)
    w1 = jnp.transpose(w1, (1, 2, 0, 3))                              # (H3, W3, C, hid)
    w1 = jnp.pad(w1, ((0, 0), (0, 0), (0, CPAD - conv_c), (0, 0)))
    h1_w = w1.reshape(H3 * W3 * CPAD, hid).astype(jnp.float32)
    h1_b = jnp.concatenate([params["p1_b"], params["v1_b"]]).astype(jnp.float32)

    # Head layer 2: block-diagonal [p2 ; v2], padded to HEAD_PAD lanes.
    h2_w = jnp.zeros((hid, HEAD_PAD), jnp.float32)
    h2_w = h2_w.at[: hid // 2, :n_actions].set(params["p2_w"])
    h2_w = h2_w.at[hid // 2:, n_actions:n_actions + 1].set(params["v2_w"])
    h2_b = jnp.zeros((HEAD_PAD,), jnp.float32)
    h2_b = h2_b.at[:n_actions].set(params["p2_b"])
    h2_b = h2_b.at[n_actions].set(params["v2_b"][0])

    return {
        "c1_w2d": c1_w2d, "c1_b": c1_b,
        "c2_w2d": c2_w2d, "c2_b": c2_b,
        "c3_w2d": c3_w2d, "c3_b": c3_b,
        "h1_w": h1_w, "h1_b": h1_b,
        "h2_w": h2_w, "h2_b": h2_b,
    }


# ----------------------------------------------------------------------------
# Full model forward (4 pallas_calls + minimal XLA glue)
# ----------------------------------------------------------------------------
def model_forward(x_nchw, pp, *, n_actions):
    B = x_nchw.shape[0]
    x = x_nchw.astype(jnp.float32)

    # conv1: NHWC patches straight from the NCHW input (no transpose op).
    p1 = lax.conv_general_dilated_patches(
        x, (8, 8), (4, 4), "VALID",
        dimension_numbers=("NCHW", "OIHW", "NHWC"))
    _, H1, W1, K1 = p1.shape
    h = matmul_bias(p1.reshape(B * H1 * W1, K1), pp["c1_w2d"], pp["c1_b"], relu=True)
    img = h.reshape(B, H1, W1, CPAD)

    # conv2
    p2 = lax.conv_general_dilated_patches(
        img, (4, 4), (2, 2), "VALID",
        dimension_numbers=("NHWC", "HWIO", "NHWC"))
    _, H2, W2, K2 = p2.shape
    h = matmul_bias(p2.reshape(B * H2 * W2, K2), pp["c2_w2d"], pp["c2_b"], relu=True)
    img = h.reshape(B, H2, W2, CPAD)

    # conv3
    p3 = lax.conv_general_dilated_patches(
        img, (3, 3), (1, 1), "VALID",
        dimension_numbers=("NHWC", "HWIO", "NHWC"))
    _, H3, W3, K3 = p3.shape
    h = matmul_bias(p3.reshape(B * H3 * W3, K3), pp["c3_w2d"], pp["c3_b"], relu=True)

    # NHWC flatten (contiguous reshape; weight rows already permuted at prep).
    flat = h.reshape(B, H3 * W3 * CPAD)

    out = fused_heads(flat, pp["h1_w"], pp["h1_b"], pp["h2_w"], pp["h2_b"])
    policy = out[:, :n_actions]
    value = out[:, n_actions:n_actions + 1]
    return policy, value


# ----------------------------------------------------------------------------
# Pure-JAX reference (PyTorch semantics) for the correctness check
# ----------------------------------------------------------------------------
def reference_forward(x_nchw, params):
    fx = x_nchw.astype(jnp.float32) / 256.0
    h = fx
    for w, b, s in [
        (params["c1_w"], params["c1_b"], 4),
        (params["c2_w"], params["c2_b"], 2),
        (params["c3_w"], params["c3_b"], 1),
    ]:
        h = lax.conv_general_dilated(
            h, w, (s, s), "VALID",
            dimension_numbers=("NCHW", "OIHW", "NCHW"))
        h = jnp.maximum(h + b[None, :, None, None], 0.0)
    flat = h.reshape(h.shape[0], -1)
    p_h = jnp.maximum(flat @ params["p1_w"] + params["p1_b"], 0.0)
    policy = p_h @ params["p2_w"] + params["p2_b"]
    v_h = jnp.maximum(flat @ params["v1_w"] + params["v1_b"], 0.0)
    value = v_h @ params["v2_w"] + params["v2_b"]
    return policy, value


# ----------------------------------------------------------------------------
# Deterministic parameter init (PyTorch layout conventions)
# ----------------------------------------------------------------------------
def init_params(key, in_channels, conv_out_size, n_actions):
    ks = jax.random.split(key, 14)
    s = 0.05
    return {
        "c1_w": jax.random.normal(ks[0], (32, in_channels, 8, 8), jnp.float32) * s,
        "c1_b": jax.random.normal(ks[1], (32,), jnp.float32) * s,
        "c2_w": jax.random.normal(ks[2], (64, 32, 4, 4), jnp.float32) * s,
        "c2_b": jax.random.normal(ks[3], (64,), jnp.float32) * s,
        "c3_w": jax.random.normal(ks[4], (64, 64, 3, 3), jnp.float32) * s,
        "c3_b": jax.random.normal(ks[5], (64,), jnp.float32) * s,
        # Linear weights stored as (in, out); rows in NCHW-flatten order
        "p1_w": jax.random.normal(ks[6], (conv_out_size, 512), jnp.float32) * s,
        "p1_b": jax.random.normal(ks[7], (512,), jnp.float32) * s,
        "p2_w": jax.random.normal(ks[8], (512, n_actions), jnp.float32) * s,
        "p2_b": jax.random.normal(ks[9], (n_actions,), jnp.float32) * s,
        "v1_w": jax.random.normal(ks[10], (conv_out_size, 512), jnp.float32) * s,
        "v1_b": jax.random.normal(ks[11], (512,), jnp.float32) * s,
        "v2_w": jax.random.normal(ks[12], (512, 1), jnp.float32) * s,
        "v2_b": jax.random.normal(ks[13], (1,), jnp.float32) * s,
    }


if __name__ == "__main__":
    # Small shapes consistent with the module: input_shape = (4, 36, 36)
    #   conv1 -> 32 x 8 x 8, conv2 -> 64 x 3 x 3, conv3 -> 64 x 1 x 1
    #   conv_out_size = 64
    B, C, H, W = 2, 4, 36, 36
    n_actions = 6
    h1 = (H - 8) // 4 + 1
    h2 = (h1 - 4) // 2 + 1
    h3 = h2 - 3 + 1
    conv_out_size = 64 * h3 * h3

    key = jax.random.PRNGKey(0)
    k_x, k_p = jax.random.split(key)
    # emulate uint8-style pixel input passed through x.float()/256
    x = jnp.floor(jax.random.uniform(k_x, (B, C, H, W), jnp.float32) * 256.0)

    params = init_params(k_p, C, conv_out_size, n_actions)
    prepped = prepare_params(params, (C, H, W), n_actions)

    fwd = jax.jit(functools.partial(model_forward, n_actions=n_actions))
    policy, value = fwd(x, prepped)
    policy = jax.block_until_ready(policy)
    value = jax.block_until_ready(value)

    assert policy.shape == (B, n_actions) and value.shape == (B, 1)

    ref_policy, ref_value = reference_forward(x, params)
    assert jnp.allclose(policy, ref_policy, rtol=2e-3, atol=2e-3)
    assert jnp.allclose(value, ref_value, rtol=2e-3, atol=2e-3)

    print("KERNEL_OK")
</pallas_src>

<mosaic_0001>
module attributes {stable_mosaic.version = 11 : i64} {
  func.func @_mm_bias_act_kernel(%arg0: i32, %arg1: memref<128x256xf32, #tpu.memory_space<vmem>>, %arg2: memref<256x128xf32, #tpu.memory_space<vmem>>, %arg3: memref<1x128xf32, #tpu.memory_space<vmem>>, %arg4: memref<128x128xf32, #tpu.memory_space<vmem>>) attributes {dimension_semantics = [#tpu.dimension_semantics<parallel>], iteration_bounds = array<i64: 1>, scalar_prefetch = 0 : i64, scratch_operands = 0 : i64, tpu.core_type = #tpu.core_type<tc>, window_params = [{transform_indices = @transform_0, window_bounds = array<i64: 128, 256>}, {pipeline_mode = #tpu.pipeline_mode<synchronous>, transform_indices = @transform_1, window_bounds = array<i64: 256, 128>}, {pipeline_mode = #tpu.pipeline_mode<synchronous>, transform_indices = @transform_2, window_bounds = array<i64: 1, 128>}, {transform_indices = @transform_3, window_bounds = array<i64: 128, 128>}]} {
    %c0 = arith.constant 0 : index
    %c0_0 = arith.constant 0 : index
    %0 = vector.load %arg1[%c0, %c0_0] : memref<128x256xf32, #tpu.memory_space<vmem>>, vector<128x256xf32>
    %c0_1 = arith.constant 0 : index
    %c0_2 = arith.constant 0 : index
    %1 = vector.load %arg2[%c0_1, %c0_2] : memref<256x128xf32, #tpu.memory_space<vmem>>, vector<256x128xf32>
    %cst = arith.constant dense<0.000000e+00> : vector<128x128xf32>
    %2 = tpu.matmul %0, %1, %cst {dimension_numbers = #tpu.dot_dimension_numbers<[1], [0], [0], [1], [0, 0, 1, 1], [], []>} : vector<128x256xf32>, vector<256x128xf32>, vector<128x128xf32> -> vector<128x128xf32>
    %c0_3 = arith.constant 0 : index
    %c0_4 = arith.constant 0 : index
    %3 = vector.load %arg3[%c0_3, %c0_4] : memref<1x128xf32, #tpu.memory_space<vmem>>, vector<1x128xf32>
    %4 = vector.broadcast %3 : vector<1x128xf32> to vector<128x128xf32>
    %5 = arith.addf %2, %4 : vector<128x128xf32>
    %cst_5 = arith.constant 0.000000e+00 : f32
    %6 = vector.broadcast %cst_5 : f32 to vector<128x128xf32>
    %7 = arith.maximumf %5, %6 : vector<128x128xf32>
    %c0_6 = arith.constant 0 : index
    %c0_7 = arith.constant 0 : index
    %8 = vector.load %arg4[%c0_6, %c0_7] : memref<128x128xf32, #tpu.memory_space<vmem>>, vector<128x128xf32>
    tpu.vector_store %arg4[%c0_6, %c0_7], %7 {strides = array<i32>} : memref<128x128xf32, #tpu.memory_space<vmem>>, vector<128x128xf32>,
    return
  }
  func.func @transform_0(%arg0: i32) -> (i32, i32) {
    %c0_i32 = arith.constant 0 : i32
    %c0_i32_0 = arith.constant 0 : i32
    return %arg0, %c0_i32 : i32, i32
  }
  func.func @transform_1(%arg0: i32) -> (i32, i32) {
    %c0_i32 = arith.constant 0 : i32
    %c0_i32_0 = arith.constant 0 : i32
    %c0_i32_1 = arith.constant 0 : i32
    return %c0_i32, %c0_i32_0 : i32, i32
  }
  func.func @transform_2(%arg0: i32) -> (i32, i32) {
    %c0_i32 = arith.constant 0 : i32
    %c0_i32_0 = arith.constant 0 : i32
    %c0_i32_1 = arith.constant 0 : i32
    return %c0_i32, %c0_i32_0 : i32, i32
  }
  func.func @transform_3(%arg0: i32) -> (i32, i32) {
    %c0_i32 = arith.constant 0 : i32
    %c0_i32_0 = arith.constant 0 : i32
    return %arg0, %c0_i32 : i32, i32
  }
}

module attributes {stable_mosaic.version = 11 : i64} {
  func.func @_mm_bias_act_kernel(%arg0: i32, %arg1: memref<18x2048xf32, #tpu.memory_space<vmem>>, %arg2: memref<2048x128xf32, #tpu.memory_space<vmem>>, %arg3: memref<1x128xf32, #tpu.memory_space<vmem>>, %arg4: memref<18x128xf32, #tpu.memory_space<vmem>>) attributes {dimension_semantics = [#tpu.dimension_semantics<parallel>], iteration_bounds = array<i64: 1>, scalar_prefetch = 0 : i64, scratch_operands = 0 : i64, tpu.core_type = #tpu.core_type<tc>, window_params = [{transform_indices = @transform_0, window_bounds = array<i64: 18, 2048>}, {pipeline_mode = #tpu.pipeline_mode<synchronous>, transform_indices = @transform_1, window_bounds = array<i64: 2048, 128>}, {pipeline_mode = #tpu.pipeline_mode<synchronous>, transform_indices = @transform_2, window_bounds = array<i64: 1, 128>}, {transform_indices = @transform_3, window_bounds = array<i64: 18, 128>}]} {
    %c0 = arith.constant 0 : index
    %c0_0 = arith.constant 0 : index
    %0 = vector.load %arg1[%c0, %c0_0] : memref<18x2048xf32, #tpu.memory_space<vmem>>, vector<18x2048xf32>
    %c0_1 = arith.constant 0 : index
    %c0_2 = arith.constant 0 : index
    %1 = vector.load %arg2[%c0_1, %c0_2] : memref<2048x128xf32, #tpu.memory_space<vmem>>, vector<2048x128xf32>
    %cst = arith.constant dense<0.000000e+00> : vector<18x128xf32>
    %2 = tpu.matmul %0, %1, %cst {dimension_numbers = #tpu.dot_dimension_numbers<[1], [0], [0], [1], [0, 0, 1, 1], [], []>} : vector<18x2048xf32>, vector<2048x128xf32>, vector<18x128xf32> -> vector<18x128xf32>
    %c0_3 = arith.constant 0 : index
    %c0_4 = arith.constant 0 : index
    %3 = vector.load %arg3[%c0_3, %c0_4] : memref<1x128xf32, #tpu.memory_space<vmem>>, vector<1x128xf32>
    %4 = vector.broadcast %3 : vector<1x128xf32> to vector<18x128xf32>
    %5 = arith.addf %2, %4 : vector<18x128xf32>
    %cst_5 = arith.constant 0.000000e+00 : f32
    %6 = vector.broadcast %cst_5 : f32 to vector<18x128xf32>
    %7 = arith.maximumf %5, %6 : vector<18x128xf32>
    %c0_6 = arith.constant 0 : index
    %c0_7 = arith.constant 0 : index
    %8 = vector.load %arg4[%c0_6, %c0_7] : memref<18x128xf32, #tpu.memory_space<vmem>>, vector<18x128xf32>
    tpu.vector_store %arg4[%c0_6, %c0_7], %7 {strides = array<i32>} : memref<18x128xf32, #tpu.memory_space<vmem>>, vector<18x128xf32>,
    return
  }
  func.func @transform_0(%arg0: i32) -> (i32, i32) {
    %c0_i32 = arith.constant 0 : i32
    %c0_i32_0 = arith.constant 0 : i32
    return %arg0, %c0_i32 : i32, i32
  }
  func.func @transform_1(%arg0: i32) -> (i32, i32) {
    %c0_i32 = arith.constant 0 : i32
    %c0_i32_0 = arith.constant 0 : i32
    %c0_i32_1 = arith.constant 0 : i32
    return %c0_i32, %c0_i32_0 : i32, i32
  }
  func.func @transform_2(%arg0: i32) -> (i32, i32) {
    %c0_i32 = arith.constant 0 : i32
    %c0_i32_0 = arith.constant 0 : i32
    %c0_i32_1 = arith.constant 0 : i32
    return %c0_i32, %c0_i32_0 : i32, i32
  }
  func.func @transform_3(%arg0: i32) -> (i32, i32) {
    %c0_i32 = arith.constant 0 : i32
    %c0_i32_0 = arith.constant 0 : i32
    return %arg0, %c0_i32 : i32, i32
  }
}

module attributes {stable_mosaic.version = 11 : i64} {
  func.func @_mm_bias_act_kernel(%arg0: i32, %arg1: memref<2x1152xf32, #tpu.memory_space<vmem>>, %arg2: memref<1152x128xf32, #tpu.memory_space<vmem>>, %arg3: memref<1x128xf32, #tpu.memory_space<vmem>>, %arg4: memref<2x128xf32, #tpu.memory_space<vmem>>) attributes {dimension_semantics = [#tpu.dimension_semantics<parallel>], iteration_bounds = array<i64: 1>, scalar_prefetch = 0 : i64, scratch_operands = 0 : i64, tpu.core_type = #tpu.core_type<tc>, window_params = [{transform_indices = @transform_0, window_bounds = array<i64: 2, 1152>}, {pipeline_mode = #tpu.pipeline_mode<synchronous>, transform_indices = @transform_1, window_bounds = array<i64: 1152, 128>}, {pipeline_mode = #tpu.pipeline_mode<synchronous>, transform_indices = @transform_2, window_bounds = array<i64: 1, 128>}, {transform_indices = @transform_3, window_bounds = array<i64: 2, 128>}]} {
    %c0 = arith.constant 0 : index
    %c0_0 = arith.constant 0 : index
    %0 = vector.load %arg1[%c0, %c0_0] : memref<2x1152xf32, #tpu.memory_space<vmem>>, vector<2x1152xf32>
    %c0_1 = arith.constant 0 : index
    %c0_2 = arith.constant 0 : index
    %1 = vector.load %arg2[%c0_1, %c0_2] : memref<1152x128xf32, #tpu.memory_space<vmem>>, vector<1152x128xf32>
    %cst = arith.constant dense<0.000000e+00> : vector<2x128xf32>
    %2 = tpu.matmul %0, %1, %cst {dimension_numbers = #tpu.dot_dimension_numbers<[1], [0], [0], [1], [0, 0, 1, 1], [], []>} : vector<2x1152xf32>, vector<1152x128xf32>, vector<2x128xf32> -> vector<2x128xf32>
    %c0_3 = arith.constant 0 : index
    %c0_4 = arith.constant 0 : index
    %3 = vector.load %arg3[%c0_3, %c0_4] : memref<1x128xf32, #tpu.memory_space<vmem>>, vector<1x128xf32>
    %4 = vector.broadcast %3 : vector<1x128xf32> to vector<2x128xf32>
    %5 = arith.addf %2, %4 : vector<2x128xf32>
    %cst_5 = arith.constant 0.000000e+00 : f32
    %6 = vector.broadcast %cst_5 : f32 to vector<2x128xf32>
    %7 = arith.maximumf %5, %6 : vector<2x128xf32>
    %c0_6 = arith.constant 0 : index
    %c0_7 = arith.constant 0 : index
    %8 = vector.load %arg4[%c0_6, %c0_7] : memref<2x128xf32, #tpu.memory_space<vmem>>, vector<2x128xf32>
    tpu.vector_store %arg4[%c0_6, %c0_7], %7 {strides = array<i32>} : memref<2x128xf32, #tpu.memory_space<vmem>>, vector<2x128xf32>,
    return
  }
  func.func @transform_0(%arg0: i32) -> (i32, i32) {
    %c0_i32 = arith.constant 0 : i32
    %c0_i32_0 = arith.constant 0 : i32
    return %arg0, %c0_i32 : i32, i32
  }
  func.func @transform_1(%arg0: i32) -> (i32, i32) {
    %c0_i32 = arith.constant 0 : i32
    %c0_i32_0 = arith.constant 0 : i32
    %c0_i32_1 = arith.constant 0 : i32
    return %c0_i32, %c0_i32_0 : i32, i32
  }
  func.func @transform_2(%arg0: i32) -> (i32, i32) {
    %c0_i32 = arith.constant 0 : i32
    %c0_i32_0 = arith.constant 0 : i32
    %c0_i32_1 = arith.constant 0 : i32
    return %c0_i32, %c0_i32_0 : i32, i32
  }
  func.func @transform_3(%arg0: i32) -> (i32, i32) {
    %c0_i32 = arith.constant 0 : i32
    %c0_i32_0 = arith.constant 0 : i32
    return %arg0, %c0_i32 : i32, i32
  }
}

module attributes {stable_mosaic.version = 11 : i64} {
  func.func @_heads_kernel(%arg0: i32, %arg1: memref<2x128xf32, #tpu.memory_space<vmem>>, %arg2: memref<128x1024xf32, #tpu.memory_space<vmem>>, %arg3: memref<1x1024xf32, #tpu.memory_space<vmem>>, %arg4: memref<1024x128xf32, #tpu.memory_space<vmem>>, %arg5: memref<1x128xf32, #tpu.memory_space<vmem>>, %arg6: memref<2x128xf32, #tpu.memory_space<vmem>>) attributes {dimension_semantics = [#tpu.dimension_semantics<parallel>], iteration_bounds = array<i64: 1>, scalar_prefetch = 0 : i64, scratch_operands = 0 : i64, tpu.core_type = #tpu.core_type<tc>, window_params = [{transform_indices = @transform_0, window_bounds = array<i64: 2, 128>}, {pipeline_mode = #tpu.pipeline_mode<synchronous>, transform_indices = @transform_1, window_bounds = array<i64: 128, 1024>}, {pipeline_mode = #tpu.pipeline_mode<synchronous>, transform_indices = @transform_2, window_bounds = array<i64: 1, 1024>}, {pipeline_mode = #tpu.pipeline_mode<synchronous>, transform_indices = @transform_3, window_bounds = array<i64: 1024, 128>}, {pipeline_mode = #tpu.pipeline_mode<synchronous>, transform_indices = @transform_4, window_bounds = array<i64: 1, 128>}, {transform_indices = @transform_5, window_bounds = array<i64: 2, 128>}]} {
    %c0 = arith.constant 0 : index
    %c0_0 = arith.constant 0 : index
    %0 = vector.load %arg1[%c0, %c0_0] : memref<2x128xf32, #tpu.memory_space<vmem>>, vector<2x128xf32>
    %c0_1 = arith.constant 0 : index
    %c0_2 = arith.constant 0 : index
    %1 = vector.load %arg2[%c0_1, %c0_2] : memref<128x1024xf32, #tpu.memory_space<vmem>>, vector<128x1024xf32>
    %cst = arith.constant dense<0.000000e+00> : vector<2x1024xf32>
    %2 = tpu.matmul %0, %1, %cst {dimension_numbers = #tpu.dot_dimension_numbers<[1], [0], [0], [1], [0, 0, 1, 1], [], []>} : vector<2x128xf32>, vector<128x1024xf32>, vector<2x1024xf32> -> vector<2x1024xf32>
    %c0_3 = arith.constant 0 : index
    %c0_4 = arith.constant 0 : index
    %3 = vector.load %arg3[%c0_3, %c0_4] : memref<1x1024xf32, #tpu.memory_space<vmem>>, vector<1x1024xf32>
    %4 = vector.broadcast %3 : vector<1x1024xf32> to vector<2x1024xf32>
    %5 = arith.addf %2, %4 : vector<2x1024xf32>
    %cst_5 = arith.constant 0.000000e+00 : f32
    %6 = vector.broadcast %cst_5 : f32 to vector<2x1024xf32>
    %7 = arith.maximumf %5, %6 : vector<2x1024xf32>
    %c0_6 = arith.constant 0 : index
    %c0_7 = arith.constant 0 : index
    %8 = vector.load %arg4[%c0_6, %c0_7] : memref<1024x128xf32, #tpu.memory_space<vmem>>, vector<1024x128xf32>
    %cst_8 = arith.constant dense<0.000000e+00> : vector<2x128xf32>
    %9 = tpu.matmul %7, %8, %cst_8 {dimension_numbers = #tpu.dot_dimension_numbers<[1], [0], [0], [1], [0, 0, 1, 1], [], []>} : vector<2x1024xf32>, vector<1024x128xf32>, vector<2x128xf32> -> vector<2x128xf32>
    %c0_9 = arith.constant 0 : index
    %c0_10 = arith.constant 0 : index
    %10 = vector.load %arg5[%c0_9, %c0_10] : memref<1x128xf32, #tpu.memory_space<vmem>>, vector<1x128xf32>
    %11 = vector.broadcast %10 : vector<1x128xf32> to vector<2x128xf32>
    %12 = arith.addf %9, %11 : vector<2x128xf32>
    %c0_11 = arith.constant 0 : index
    %c0_12 = arith.constant 0 : index
    %13 = vector.load %arg6[%c0_11, %c0_12] : memref<2x128xf32, #tpu.memory_space<vmem>>, vector<2x128xf32>
    tpu.vector_store %arg6[%c0_11, %c0_12], %12 {strides = array<i32>} : memref<2x128xf32, #tpu.memory_space<vmem>>, vector<2x128xf32>,
    return
  }
  func.func @transform_0(%arg0: i32) -> (i32, i32) {
    %c0_i32 = arith.constant 0 : i32
    %c0_i32_0 = arith.constant 0 : i32
    return %arg0, %c0_i32 : i32, i32
  }
  func.func @transform_1(%arg0: i32) -> (i32, i32) {
    %c0_i32 = arith.constant 0 : i32
    %c0_i32_0 = arith.constant 0 : i32
    %c0_i32_1 = arith.constant 0 : i32
    return %c0_i32, %c0_i32_0 : i32, i32
  }
  func.func @transform_2(%arg0: i32) -> (i32, i32) {
    %c0_i32 = arith.constant 0 : i32
    %c0_i32_0 = arith.constant 0 : i32
    %c0_i32_1 = arith.constant 0 : i32
    return %c0_i32, %c0_i32_0 : i32, i32
  }
  func.func @transform_3(%arg0: i32) -> (i32, i32) {
    %c0_i32 = arith.constant 0 : i32
    %c0_i32_0 = arith.constant 0 : i32
    %c0_i32_1 = arith.constant 0 : i32
    return %c0_i32, %c0_i32_0 : i32, i32
  }
  func.func @transform_4(%arg0: i32) -> (i32, i32) {
    %c0_i32 = arith.constant 0 : i32
    %c0_i32_0 = arith.constant 0 : i32
    %c0_i32_1 = arith.constant 0 : i32
    return %c0_i32, %c0_i32_0 : i32, i32
  }
  func.func @transform_5(%arg0: i32) -> (i32, i32) {
    %c0_i32 = arith.constant 0 : i32
    %c0_i32_0 = arith.constant 0 : i32
    return %arg0, %c0_i32 : i32, i32
  }
}

</mosaic_0001>

<bundles_post_ra>
// kernel: model_forward.4
= control target key start
LH: loop header
LB: loop body
LE: loop exit
PB: predicated region body
PF: predicated region fallthrough
CT: control target
= control target key end

     0   :  { %s676_s1 = inlined_call_operand.vmem [shape: f32[256,128], index: 1, kind: input, shape index: {}]   ;;  %s677_s0 = inlined_call_operand.vmem [shape: f32[128,256], index: 0, kind: input, shape index: {}]   ;;  %s678_s2 = inlined_call_operand.vmem [shape: f32[1,128], index: 2, kind: input, shape index: {}]   ;;  %s679_s3 = inlined_call_operand.vmem [shape: f32[128,128], index: 3, kind: output, shape index: {}]  }
   0x1   :  { %v62_v0 = vld [vmem:[%s676_s1 + $0x80] sm:$0xff]  ;;  %v63_v1 = vld [vmem:[%s676_s1 + $0x88] sm:$0xff]  ;;  %v64_v5 = vld [vmem:[%s676_s1 + $0x90] sm:$0xff] }
   0x2   :  { %v46_v2 = vld [vmem:[%s676_s1] sm:$0xff]  ;;  %v347_v3 = vpack.c.bf16 %v63_v1, %v62_v0  ;;  %v47_v4 = vld [vmem:[%s676_s1 + $0x8] sm:$0xff]  ;;  %v65_v6 = vld [vmem:[%s676_s1 + $0x98] sm:$0xff] }
   0x3   :  { %v349_v7 = vpack.c.bf16 %v47_v4, %v46_v2  ;;  %v351_v8 = vpack.c.bf16 %v65_v6, %v64_v5  ;;  %v48_v9 = vld [vmem:[%s676_s1 + $0x10] sm:$0xff]  ;;  %v49_v10 = vld [vmem:[%s676_s1 + $0x18] sm:$0xff]  ;;  %v66_v11 = vld [vmem:[%s676_s1 + $0xa0] sm:$0xff] }
   0x4   :  { %348 = vmatprep.subr.bf16.mxu0 %v347_v3  ;;  %379 = vmatprep.subr.bf16.mxu1 %v347_v3  ;;  %v67_v12 = vld [vmem:[%s676_s1 + $0xa8] sm:$0xff]  ;;  %v353_v13 = vpack.c.bf16 %v49_v10, %v48_v9  ;;  %v50_v15 = vld [vmem:[%s676_s1 + $0x20] sm:$0xff]  ;;  %v68_v17 = vld [vmem:[%s676_s1 + $0xb0] sm:$0xff] }
   0x5   :  { %350 = vmatpush3.bf16.msra.mxu0 %v349_v7  ;;  %387 = vmatpush3.bf16.msra.mxu1 %v349_v7  ;;  %v355_v14 = vpack.c.bf16 %v67_v12, %v66_v11  ;;  %v51_v16 = vld [vmem:[%s676_s1 + $0x28] sm:$0xff]  ;;  %v69_v18 = vld [vmem:[%s676_s1 + $0xb8] sm:$0xff]  ;;  %v52_v21 = vld [vmem:[%s676_s1 + $0x30] sm:$0xff] }
   0x6   :  { %352 = vmatprep.subr.bf16.mxu0 %v351_v8  ;;  %380 = vmatprep.subr.bf16.mxu1 %v351_v8  ;;  %v357_v19 = vpack.c.bf16 %v51_v16, %v50_v15  ;;  %v359_v20 = vpack.c.bf16 %v69_v18, %v68_v17  ;;  %v53_v22 = vld [vmem:[%s676_s1 + $0x38] sm:$0xff]  ;;  %v70_v23 = vld [vmem:[%s676_s1 + $0xc0] sm:$0xff]  ;;  %v71_v24 = vld [vmem:[%s676_s1 + $0xc8] sm:$0xff] }
   0x7   :  { %v15_v25 = vld [vmem:[%s677_s0 + $0x8] sm:$0xff]  ;;  %v361_v27 = vpack.c.bf16 %v53_v22, %v52_v21  ;;  %v363_v28 = vpack.c.bf16 %v71_v24, %v70_v23  ;;  %v54_v29 = vld [vmem:[%s676_s1 + $0x40] sm:$0xff]  ;;  %v72_v31 = vld [vmem:[%s676_s1 + $0xd0] sm:$0xff] }
   0x8   :  { %149 = vmatprep.mubr.f32.mxu0 %v15_v25  ;;  %v31_v26 = vld [vmem:[%s677_s0 + $0x88] sm:$0xff]  ;;  %v73_v32 = vld [vmem:[%s676_s1 + $0xd8] sm:$0xff]  ;;  %v56_v35 = vld [vmem:[%s676_s1 + $0x50] sm:$0xff] }
   0x9   :  { %354 = vmatpush3.bf16.msra.mxu0 %v353_v13  ;;  %388 = vmatpush3.bf16.msra.mxu1 %v353_v13  ;;  %v55_v30 = vld [vmem:[%s676_s1 + $0x48] sm:$0xff]  ;;  %v367_v34 = vpack.c.bf16 %v73_v32, %v72_v31  ;;  %v57_v36 = vld [vmem:[%s676_s1 + $0x58] sm:$0xff]  ;;  %v74_v37 = vld [vmem:[%s676_s1 + $0xe0] sm:$0xff] }
   0xa   :  { %356 = vmatprep.subr.bf16.mxu0 %v355_v14  ;;  %381 = vmatprep.subr.bf16.mxu1 %v355_v14  ;;  %v365_v33 = vpack.c.bf16 %v55_v30, %v54_v29  ;;  %v75_v38 = vld [vmem:[%s676_s1 + $0xe8] sm:$0xff]  ;;  %v369_v39 = vpack.c.bf16 %v57_v36, %v56_v35  ;;  %v58_v41 = vld [vmem:[%s676_s1 + $0x60] sm:$0xff]  ;;  %v76_v43 = vld [vmem:[%s676_s1 + $0xf0] sm:$0xff] }
   0xb   :  { %189 = vmatprep.mubr.f32.mxu1 %v31_v26  ;;  %v371_v40 = vpack.c.bf16 %v75_v38, %v74_v37  ;;  %v59_v42 = vld [vmem:[%s676_s1 + $0x68] sm:$0xff]  ;;  %v77_v44 = vld [vmem:[%s676_s1 + $0xf8] sm:$0xff]  ;;  %v60_v47 = vld [vmem:[%s676_s1 + $0x70] sm:$0xff] }
   0xc   :  { %v373_v45 = vpack.c.bf16 %v59_v42, %v58_v41  ;;  %v375_v46 = vpack.c.bf16 %v77_v44, %v76_v43  ;;  %v61_v48 = vld [vmem:[%s676_s1 + $0x78] sm:$0xff]  ;;  %v14_v50 = vld [vmem:[%s677_s0] sm:$0xff]  ;;  %v16_v54 = vld [vmem:[%s677_s0 + $0x10] sm:$0xff] }
   0xd   :  { %358 = vmatpush3.bf16.msra.mxu0 %v357_v19  ;;  %389 = vmatpush3.bf16.msra.mxu1 %v357_v19  ;;  %v377_v49 = vpack.c.bf16 %v61_v48, %v60_v47  ;;  %v30_v51 = vld [vmem:[%s677_s0 + $0x80] sm:$0xff]  ;;  %v17_v52 = vld [vmem:[%s677_s0 + $0x18] sm:$0xff]  ;;  %v32_v55 = vld [vmem:[%s677_s0 + $0x90] sm:$0xff] }
   0xe   :  { %360 = vmatprep.subr.bf16.mxu0 %v359_v20  ;;  %382 = vmatprep.subr.bf16.mxu1 %v359_v20  ;;  %v33_v53 = vld [vmem:[%s677_s0 + $0x98] sm:$0xff]  ;;  %v19_v56 = vld [vmem:[%s677_s0 + $0x28] sm:$0xff]  ;;  %v18_v58 = vld [vmem:[%s677_s0 + $0x20] sm:$0xff] }
   0xf   :  { %v35_v57 = vld [vmem:[%s677_s0 + $0xa8] sm:$0xff]  ;;  %v34_v59 = vld [vmem:[%s677_s0 + $0xa0] sm:$0xff]  ;;  %v21_v60 = vld [vmem:[%s677_s0 + $0x38] sm:$0xff] }
  0x10   :  { %v37_v61 = vld [vmem:[%s677_s0 + $0xb8] sm:$0xff]  ;;  %v20_v62 = vld [vmem:[%s677_s0 + $0x30] sm:$0xff]  ;;  %v23_v0 = vld [vmem:[%s677_s0 + $0x48] sm:$0xff] }
  0x11   :  { %362 = vmatpush3.bf16.msra.mxu0 %v361_v27  ;;  %390 = vmatpush3.bf16.msra.mxu1 %v361_v27  ;;  %v36_v63 = vld [vmem:[%s677_s0 + $0xb0] sm:$0xff]  ;;  %v39_v1 = vld [vmem:[%s677_s0 + $0xc8] sm:$0xff]  ;;  %v22_v2 = vld [vmem:[%s677_s0 + $0x40] sm:$0xff] }
  0x12   :  { %364 = vmatprep.subr.bf16.mxu0 %v363_v28  ;;  %383 = vmatprep.subr.bf16.mxu1 %v363_v28  ;;  %v38_v3 = vld [vmem:[%s677_s0 + $0xc0] sm:$0xff]  ;;  %v25_v4 = vld [vmem:[%s677_s0 + $0x58] sm:$0xff]  ;;  %v24_v6 = vld [vmem:[%s677_s0 + $0x50] sm:$0xff] }
  0x13   :  { %v41_v5 = vld [vmem:[%s677_s0 + $0xd8] sm:$0xff]  ;;  %v40_v7 = vld [vmem:[%s677_s0 + $0xd0] sm:$0xff]  ;;  %v27_v8 = vld [vmem:[%s677_s0 + $0x68] sm:$0xff] }
  0x14   :  { %v43_v9 = vld [vmem:[%s677_s0 + $0xe8] sm:$0xff]  ;;  %v26_v10 = vld [vmem:[%s677_s0 + $0x60] sm:$0xff]  ;;  %v29_v12 = vld [vmem:[%s677_s0 + $0x78] sm:$0xff] }
  0x15   :  { %366 = vmatpush3.bf16.msra.mxu0 %v365_v33  ;;  %391 = vmatpush3.bf16.msra.mxu1 %v365_v33  ;;  %v42_v11 = vld [vmem:[%s677_s0 + $0xe0] sm:$0xff]  ;;  %v45_v13 = vld [vmem:[%s677_s0 + $0xf8] sm:$0xff]  ;;  %v28_v14 = vld [vmem:[%s677_s0 + $0x70] sm:$0xff] }
  0x16   :  { %368 = vmatprep.subr.bf16.mxu0 %v367_v34  ;;  %384 = vmatprep.subr.bf16.mxu1 %v367_v34  ;;  %v44_v15 = vld [vmem:[%s677_s0 + $0xf0] sm:$0xff]  ;;  %v610_v18 = vld [vmem:[%s678_s2] ss:$0 sm:$0xff] }
  0x19   :  { %370 = vmatpush3.bf16.msra.mxu0 %v369_v39  ;;  %392 = vmatpush3.bf16.msra.mxu1 %v369_v39 }
  0x1a   :  { %372 = vmatprep.subr.bf16.mxu0 %v371_v40  ;;  %385 = vmatprep.subr.bf16.mxu1 %v371_v40 }
  0x1d   :  { %374 = vmatpush3.bf16.msra.mxu0 %v373_v45  ;;  %393 = vmatpush3.bf16.msra.mxu1 %v373_v45 }
  0x1e   :  { %376 = vmatprep.subr.bf16.mxu0 %v375_v46  ;;  %386 = vmatprep.subr.bf16.mxu1 %v375_v46 }
  0x21   :  { %378 = vmatpush3.bf16.msra.mxu0 %v377_v49  ;;  %394 = vmatpush3.bf16.msra.mxu1 %v377_v49 }
  0x24   :  { %150 = vmatmul.mubr.f32.vlgmr.msra.gmra.mrb[0].mxu0 %v14_v50  ;;  %190 = vmatmul.mubr.f32.vlgmr.msra.gmra.mrb[0].mxu1 %v30_v51 }
  0x25   :  { %154 = vmatprep.mubr.f32.mxu0 %v17_v52  ;;  %194 = vmatprep.mubr.f32.mxu1 %v33_v53 }
  0x28   :  { %155 = vmatmul.mubr.f32.gmra.mrb[2].mxu0 %v16_v54  ;;  %195 = vmatmul.mubr.f32.gmra.mrb[2].mxu1 %v32_v55 }
  0x29   :  { %159 = vmatprep.mubr.f32.mxu0 %v19_v56  ;;  %199 = vmatprep.mubr.f32.mxu1 %v35_v57 }
  0x2c   :  { %160 = vmatmul.mubr.f32.gmra.mrb[4].mxu0 %v18_v58  ;;  %200 = vmatmul.mubr.f32.gmra.mrb[4].mxu1 %v34_v59 }
  0x2d   :  { %164 = vmatprep.mubr.f32.mxu0 %v21_v60  ;;  %204 = vmatprep.mubr.f32.mxu1 %v37_v61 }
  0x30   :  { %165 = vmatmul.mubr.f32.gmra.mrb[6].mxu0 %v20_v62  ;;  %205 = vmatmul.mubr.f32.gmra.mrb[6].mxu1 %v36_v63 }
  0x31   :  { %169 = vmatprep.mubr.f32.mxu0 %v23_v0  ;;  %209 = vmatprep.mubr.f32.mxu1 %v39_v1 }
  0x34   :  { %170 = vmatmul.mubr.f32.gmra.mrb[8].mxu0 %v22_v2  ;;  %210 = vmatmul.mubr.f32.gmra.mrb[8].mxu1 %v38_v3 }
  0x35   :  { %174 = vmatprep.mubr.f32.mxu0 %v25_v4  ;;  %214 = vmatprep.mubr.f32.mxu1 %v41_v5 }
  0x38   :  { %175 = vmatmul.mubr.f32.gmra.mrb[10].mxu0 %v24_v6  ;;  %215 = vmatmul.mubr.f32.gmra.mrb[10].mxu1 %v40_v7 }
  0x39   :  { %179 = vmatprep.mubr.f32.mxu0 %v27_v8  ;;  %219 = vmatprep.mubr.f32.mxu1 %v43_v9 }
  0x3c   :  { %180 = vmatmul.mubr.f32.gmra.mrb[12].mxu0 %v26_v10  ;;  %220 = vmatmul.mubr.f32.gmra.mrb[12].mxu1 %v42_v11 }
  0x3d   :  { %184 = vmatprep.mubr.f32.mxu0 %v29_v12  ;;  %224 = vmatprep.mubr.f32.mxu1 %v45_v13 }
  0x40   :  { %185 = vmatmul.mubr.f32.gmra.mrb[14].mxu0 %v28_v14  ;;  %225 = vmatmul.mubr.f32.gmra.mrb[14].mxu1 %v44_v15 }
  0xf7   :  { %v299_v16 = vpop.f32.mrb[0].mxu0  ;;  %v323_v17 = vpop.f32.mrb[0].mxu1 }
  0xf8   :  { %v300_v19 = vpop.f32.mrb[1].mxu0  ;;  %v324_v20 = vpop.f32.mrb[1].mxu1 }
  0xf9   :  { %v301_v21 = vadd.f32 %v300_v19, %v299_v16  ;;  %v325_v22 = vadd.f32 %v324_v20, %v323_v17 }
  0xfb   :  { %v152_v23 = vadd.f32 %v301_v21, %v610_v18  ;;  %v192_v24 = vadd.f32 %v325_v22, %v610_v18  ;;  %v302_v25 = vpop.f32.mrb[2].mxu0  ;;  %v326_v26 = vpop.f32.mrb[2].mxu1 }
  0xfc   :  { %v303_v27 = vpop.f32.mrb[3].mxu0  ;;  %v327_v28 = vpop.f32.mrb[3].mxu1 }
  0xfd   :  { %v230_v29 = vmax.f32 %v152_v23, 0.0  ;;  %v238_v30 = vmax.f32 %v192_v24, 0.0  ;;  %v304_v31 = vadd.f32 %v303_v27, %v302_v25  ;;  %v328_v32 = vadd.f32 %v327_v28, %v326_v26 }
  0xff   :  { %246 = vst [vmem:[%s679_s3] sm:$0xff] %v230_v29  ;;  %254 = vst [vmem:[%s679_s3 + $0x40] sm:$0xff] %v238_v30  ;;  %v157_v33 = vadd.f32 %v304_v31, %v610_v18  ;;  %v197_v34 = vadd.f32 %v328_v32, %v610_v18  ;;  %v305_v35 = vpop.f32.mrb[4].mxu0  ;;  %v329_v36 = vpop.f32.mrb[4].mxu1 }
 0x100   :  { %v306_v37 = vpop.f32.mrb[5].mxu0  ;;  %v330_v38 = vpop.f32.mrb[5].mxu1 }
 0x101   :  { %v231_v39 = vmax.f32 %v157_v33, 0.0  ;;  %v239_v40 = vmax.f32 %v197_v34, 0.0  ;;  %v307_v41 = vadd.f32 %v306_v37, %v305_v35  ;;  %v331_v42 = vadd.f32 %v330_v38, %v329_v36 }
 0x103   :  { %247 = vst [vmem:[%s679_s3 + $0x8] sm:$0xff] %v231_v39  ;;  %255 = vst [vmem:[%s679_s3 + $0x48] sm:$0xff] %v239_v40  ;;  %v162_v43 = vadd.f32 %v307_v41, %v610_v18  ;;  %v202_v44 = vadd.f32 %v331_v42, %v610_v18  ;;  %v308_v45 = vpop.f32.mrb[6].mxu0  ;;  %v332_v46 = vpop.f32.mrb[6].mxu1 }
 0x104   :  { %v309_v47 = vpop.f32.mrb[7].mxu0  ;;  %v333_v48 = vpop.f32.mrb[7].mxu1 }
 0x105   :  { %v232_v49 = vmax.f32 %v162_v43, 0.0  ;;  %v240_v50 = vmax.f32 %v202_v44, 0.0  ;;  %v310_v51 = vadd.f32 %v309_v47, %v308_v45  ;;  %v334_v52 = vadd.f32 %v333_v48, %v332_v46 }
 0x107   :  { %248 = vst [vmem:[%s679_s3 + $0x10] sm:$0xff] %v232_v49  ;;  %256 = vst [vmem:[%s679_s3 + $0x50] sm:$0xff] %v240_v50  ;;  %v167_v53 = vadd.f32 %v310_v51, %v610_v18  ;;  %v207_v54 = vadd.f32 %v334_v52, %v610_v18  ;;  %v311_v55 = vpop.f32.mrb[8].mxu0  ;;  %v335_v56 = vpop.f32.mrb[8].mxu1 }
 0x108   :  { %v312_v57 = vpop.f32.mrb[9].mxu0  ;;  %v336_v58 = vpop.f32.mrb[9].mxu1 }
 0x109   :  { %v233_v59 = vmax.f32 %v167_v53, 0.0  ;;  %v241_v60 = vmax.f32 %v207_v54, 0.0  ;;  %v313_v61 = vadd.f32 %v312_v57, %v311_v55  ;;  %v337_v62 = vadd.f32 %v336_v58, %v335_v56 }
 0x10b   :  { %249 = vst [vmem:[%s679_s3 + $0x18] sm:$0xff] %v233_v59  ;;  %257 = vst [vmem:[%s679_s3 + $0x58] sm:$0xff] %v241_v60  ;;  %v172_v63 = vadd.f32 %v313_v61, %v610_v18  ;;  %v212_v0 = vadd.f32 %v337_v62, %v610_v18  ;;  %v314_v1 = vpop.f32.mrb[10].mxu0  ;;  %v338_v2 = vpop.f32.mrb[10].mxu1 }
 0x10c   :  { %v315_v3 = vpop.f32.mrb[11].mxu0  ;;  %v339_v4 = vpop.f32.mrb[11].mxu1 }
 0x10d   :  { %v234_v5 = vmax.f32 %v172_v63, 0.0  ;;  %v242_v6 = vmax.f32 %v212_v0, 0.0  ;;  %v316_v7 = vadd.f32 %v315_v3, %v314_v1  ;;  %v340_v8 = vadd.f32 %v339_v4, %v338_v2 }
 0x10f   :  { %250 = vst [vmem:[%s679_s3 + $0x20] sm:$0xff] %v234_v5  ;;  %258 = vst [vmem:[%s679_s3 + $0x60] sm:$0xff] %v242_v6  ;;  %v177_v9 = vadd.f32 %v316_v7, %v610_v18  ;;  %v217_v10 = vadd.f32 %v340_v8, %v610_v18  ;;  %v317_v11 = vpop.f32.mrb[12].mxu0  ;;  %v341_v12 = vpop.f32.mrb[12].mxu1 }
 0x110   :  { %v318_v13 = vpop.f32.mrb[13].mxu0  ;;  %v342_v14 = vpop.f32.mrb[13].mxu1 }
 0x111   :  { %v235_v15 = vmax.f32 %v177_v9, 0.0  ;;  %v243_v16 = vmax.f32 %v217_v10, 0.0  ;;  %v319_v17 = vadd.f32 %v318_v13, %v317_v11  ;;  %v343_v19 = vadd.f32 %v342_v14, %v341_v12 }
 0x113   :  { %251 = vst [vmem:[%s679_s3 + $0x28] sm:$0xff] %v235_v15  ;;  %259 = vst [vmem:[%s679_s3 + $0x68] sm:$0xff] %v243_v16  ;;  %v182_v20 = vadd.f32 %v319_v17, %v610_v18  ;;  %v222_v21 = vadd.f32 %v343_v19, %v610_v18  ;;  %v320_v22 = vpop.f32.mrb[14].mxu0  ;;  %v344_v23 = vpop.f32.mrb[14].mxu1 }
 0x114   :  { %v321_v24 = vpop.f32.mrb[15].mxu0  ;;  %v345_v25 = vpop.f32.mrb[15].mxu1 }
 0x115   :  { %v236_v26 = vmax.f32 %v182_v20, 0.0  ;;  %v244_v27 = vmax.f32 %v222_v21, 0.0  ;;  %v322_v28 = vadd.f32 %v321_v24, %v320_v22  ;;  %v346_v29 = vadd.f32 %v345_v25, %v344_v23 }
 0x117   :  { %252 = vst [vmem:[%s679_s3 + $0x30] sm:$0xff] %v236_v26  ;;  %260 = vst [vmem:[%s679_s3 + $0x70] sm:$0xff] %v244_v27  ;;  %v187_v30 = vadd.f32 %v322_v28, %v610_v18  ;;  %v227_v31 = vadd.f32 %v346_v29, %v610_v18 }
 0x119   :  { %v237_v32 = vmax.f32 %v187_v30, 0.0  ;;  %v245_v33 = vmax.f32 %v227_v31, 0.0 }
 0x11b   :  { %253 = vst [vmem:[%s679_s3 + $0x38] sm:$0xff] %v237_v32  ;;  %261 = vst [vmem:[%s679_s3 + $0x78] sm:$0xff] %v245_v33 }

// kernel: model_forward.5
= control target key start
LH: loop header
LB: loop body
LE: loop exit
PB: predicated region body
PF: predicated region fallthrough
CT: control target
= control target key end

     0   :  { %s2504_s1 = inlined_call_operand.vmem [shape: f32[2048,128], index: 1, kind: input, shape index: {}]   ;;  %s2505_s0 = inlined_call_operand.vmem [shape: f32[18,2048], index: 0, kind: input, shape index: {}]   ;;  %s2506_s2 = inlined_call_operand.vmem [shape: f32[1,128], index: 2, kind: input, shape index: {}]   ;;  %s2507_s3 = inlined_call_operand.vmem [shape: f32[18,128], index: 3, kind: output, shape index: {}]  }
   0x1   :  { %v78_v0 = vld [vmem:[%s2504_s1 + $0x80] sm:$0xff]  ;;  %v79_v1 = vld [vmem:[%s2504_s1 + $0x88] sm:$0xff]  ;;  %v80_v11 = vld [vmem:[%s2504_s1 + $0x90] sm:$0xff] }
   0x2   :  { %v62_v2 = vld [vmem:[%s2504_s1] sm:$0xff]  ;;  %v1304_v3 = vpack.c.bf16 %v79_v1, %v78_v0  ;;  %v63_v4 = vld [vmem:[%s2504_s1 + $0x8] sm:$0xff]  ;;  %v81_v13 = vld [vmem:[%s2504_s1 + $0x98] sm:$0xff] }
   0x3   :  { %v110_v5 = vld [vmem:[%s2504_s1 + $0x180] sm:$0xff]  ;;  %v111_v6 = vld [vmem:[%s2504_s1 + $0x188] sm:$0xff]  ;;  %v1306_v7 = vpack.c.bf16 %v63_v4, %v62_v2  ;;  %v64_v14 = vld [vmem:[%s2504_s1 + $0x10] sm:$0xff]  ;;  %v1308_v16 = vpack.c.bf16 %v81_v13, %v80_v11 }
   0x4   :  { %v1336_v8 = vpack.c.bf16 %v111_v6, %v110_v5  ;;  %v94_v9 = vld [vmem:[%s2504_s1 + $0x100] sm:$0xff]  ;;  %v95_v10 = vld [vmem:[%s2504_s1 + $0x108] sm:$0xff]  ;;  %1305 = vmatprep.subr.bf16.mxu0 %v1304_v3  ;;  %v65_v15 = vld [vmem:[%s2504_s1 + $0x18] sm:$0xff] }
   0x5   :  { %v1338_v12 = vpack.c.bf16 %v95_v10, %v94_v9  ;;  %1307 = vmatpush3.bf16.msra.mxu0 %v1306_v7  ;;  %v1310_v17 = vpack.c.bf16 %v65_v15, %v64_v14  ;;  %v112_v18 = vld [vmem:[%s2504_s1 + $0x190] sm:$0xff]  ;;  %v113_v19 = vld [vmem:[%s2504_s1 + $0x198] sm:$0xff]  ;;  %v82_v23 = vld [vmem:[%s2504_s1 + $0xa0] sm:$0xff] }
   0x6   :  { %1337 = vmatprep.subr.bf16.mxu1 %v1336_v8  ;;  %v96_v20 = vld [vmem:[%s2504_s1 + $0x110] sm:$0xff]  ;;  %v1340_v21 = vpack.c.bf16 %v113_v19, %v112_v18  ;;  %v97_v22 = vld [vmem:[%s2504_s1 + $0x118] sm:$0xff]  ;;  %v83_v24 = vld [vmem:[%s2504_s1 + $0xa8] sm:$0xff]  ;;  %1309 = vmatprep.subr.bf16.mxu0 %v1308_v16 }
   0x7   :  { %1339 = vmatpush3.bf16.msra.mxu1 %v1338_v12  ;;  %v1342_v25 = vpack.c.bf16 %v97_v22, %v96_v20  ;;  %v1312_v26 = vpack.c.bf16 %v83_v24, %v82_v23  ;;  %v66_v27 = vld [vmem:[%s2504_s1 + $0x20] sm:$0xff]  ;;  %v67_v28 = vld [vmem:[%s2504_s1 + $0x28] sm:$0xff]  ;;  %v84_v35 = vld [vmem:[%s2504_s1 + $0xb0] sm:$0xff] }
   0x8   :  { %v114_v29 = vld [vmem:[%s2504_s1 + $0x1a0] sm:$0xff]  ;;  %1341 = vmatprep.subr.bf16.mxu1 %v1340_v21  ;;  %v115_v30 = vld [vmem:[%s2504_s1 + $0x1a8] sm:$0xff]  ;;  %v1314_v33 = vpack.c.bf16 %v67_v28, %v66_v27  ;;  %v85_v36 = vld [vmem:[%s2504_s1 + $0xb8] sm:$0xff] }
   0x9   :  { %v98_v31 = vld [vmem:[%s2504_s1 + $0x120] sm:$0xff]  ;;  %v99_v32 = vld [vmem:[%s2504_s1 + $0x128] sm:$0xff]  ;;  %1311 = vmatpush3.bf16.msra.mxu0 %v1310_v17  ;;  %v1344_v34 = vpack.c.bf16 %v115_v30, %v114_v29  ;;  %v68_v37 = vld [vmem:[%s2504_s1 + $0x30] sm:$0xff]  ;;  %v1316_v39 = vpack.c.bf16 %v85_v36, %v84_v35 }
   0xa   :  { %1313 = vmatprep.subr.bf16.mxu0 %v1312_v26  ;;  %v1346_v38 = vpack.c.bf16 %v99_v32, %v98_v31  ;;  %v69_v40 = vld [vmem:[%s2504_s1 + $0x38] sm:$0xff]  ;;  %v116_v41 = vld [vmem:[%s2504_s1 + $0x1b0] sm:$0xff]  ;;  %v86_v46 = vld [vmem:[%s2504_s1 + $0xc0] sm:$0xff] }
   0xb   :  { %1343 = vmatpush3.bf16.msra.mxu1 %v1342_v25  ;;  %v117_v42 = vld [vmem:[%s2504_s1 + $0x1b8] sm:$0xff]  ;;  %v100_v44 = vld [vmem:[%s2504_s1 + $0x130] sm:$0xff]  ;;  %v87_v47 = vld [vmem:[%s2504_s1 + $0xc8] sm:$0xff]  ;;  %v1318_v48 = vpack.c.bf16 %v69_v40, %v68_v37 }
   0xc   :  { %1345 = vmatprep.subr.bf16.mxu1 %v1344_v34  ;;  %v1348_v43 = vpack.c.bf16 %v117_v42, %v116_v41  ;;  %v101_v45 = vld [vmem:[%s2504_s1 + $0x138] sm:$0xff]  ;;  %v118_v49 = vld [vmem:[%s2504_s1 + $0x1c0] sm:$0xff]  ;;  %v119_v50 = vld [vmem:[%s2504_s1 + $0x1c8] sm:$0xff]  ;;  %v1320_v52 = vpack.c.bf16 %v87_v47, %v86_v46 }
   0xd   :  { %1315 = vmatpush3.bf16.msra.mxu0 %v1314_v33  ;;  %v1350_v51 = vpack.c.bf16 %v101_v45, %v100_v44  ;;  %v70_v53 = vld [vmem:[%s2504_s1 + $0x40] sm:$0xff]  ;;  %v71_v54 = vld [vmem:[%s2504_s1 + $0x48] sm:$0xff]  ;;  %v1352_v56 = vpack.c.bf16 %v119_v50, %v118_v49  ;;  %v88_v58 = vld [vmem:[%s2504_s1 + $0xd0] sm:$0xff] }
   0xe   :  { %1317 = vmatprep.subr.bf16.mxu0 %v1316_v39  ;;  %v102_v55 = vld [vmem:[%s2504_s1 + $0x140] sm:$0xff]  ;;  %v103_v57 = vld [vmem:[%s2504_s1 + $0x148] sm:$0xff]  ;;  %v89_v59 = vld [vmem:[%s2504_s1 + $0xd8] sm:$0xff]  ;;  %v1322_v62 = vpack.c.bf16 %v71_v54, %v70_v53 }
   0xf   :  { %1347 = vmatpush3.bf16.msra.mxu1 %v1346_v38  ;;  %v120_v60 = vld [vmem:[%s2504_s1 + $0x1d0] sm:$0xff]  ;;  %v121_v61 = vld [vmem:[%s2504_s1 + $0x1d8] sm:$0xff]  ;;  %v1354_v63 = vpack.c.bf16 %v103_v57, %v102_v55  ;;  %v1324_v0 = vpack.c.bf16 %v89_v59, %v88_v58  ;;  %v90_v6 = vld [vmem:[%s2504_s1 + $0xe0] sm:$0xff] }
  0x10   :  { %1349 = vmatprep.subr.bf16.mxu1 %v1348_v43  ;;  %v72_v1 = vld [vmem:[%s2504_s1 + $0x50] sm:$0xff]  ;;  %v73_v2 = vld [vmem:[%s2504_s1 + $0x58] sm:$0xff]  ;;  %v1356_v4 = vpack.c.bf16 %v121_v61, %v120_v60  ;;  %v91_v7 = vld [vmem:[%s2504_s1 + $0xe8] sm:$0xff] }
  0x11   :  { %1319 = vmatpush3.bf16.msra.mxu0 %v1318_v48  ;;  %v104_v3 = vld [vmem:[%s2504_s1 + $0x150] sm:$0xff]  ;;  %v105_v5 = vld [vmem:[%s2504_s1 + $0x158] sm:$0xff]  ;;  %v122_v8 = vld [vmem:[%s2504_s1 + $0x1e0] sm:$0xff]  ;;  %v1326_v10 = vpack.c.bf16 %v73_v2, %v72_v1  ;;  %v1328_v14 = vpack.c.bf16 %v91_v7, %v90_v6 }
  0x12   :  { %1321 = vmatprep.subr.bf16.mxu0 %v1320_v52  ;;  %v123_v9 = vld [vmem:[%s2504_s1 + $0x1e8] sm:$0xff]  ;;  %v74_v11 = vld [vmem:[%s2504_s1 + $0x60] sm:$0xff]  ;;  %v1358_v13 = vpack.c.bf16 %v105_v5, %v104_v3  ;;  %v92_v19 = vld [vmem:[%s2504_s1 + $0xf0] sm:$0xff] }
  0x13   :  { %1351 = vmatpush3.bf16.msra.mxu1 %v1350_v51  ;;  %v75_v12 = vld [vmem:[%s2504_s1 + $0x68] sm:$0xff]  ;;  %v106_v15 = vld [vmem:[%s2504_s1 + $0x160] sm:$0xff]  ;;  %v1360_v18 = vpack.c.bf16 %v123_v9, %v122_v8  ;;  %v93_v20 = vld [vmem:[%s2504_s1 + $0xf8] sm:$0xff] }
  0x14   :  { %1353 = vmatprep.subr.bf16.mxu1 %v1352_v56  ;;  %v107_v16 = vld [vmem:[%s2504_s1 + $0x168] sm:$0xff]  ;;  %v17_v21 = vld [vmem:[%s2505_s0 + $0x18] sm:$0xff]  ;;  %v124_v22 = vld [vmem:[%s2504_s1 + $0x1f0] sm:$0xff]  ;;  %v1330_v24 = vpack.c.bf16 %v75_v12, %v74_v11  ;;  %v1332_v26 = vpack.c.bf16 %v93_v20, %v92_v19 }
  0x15   :  { %1323 = vmatpush3.bf16.msra.mxu0 %v1322_v62  ;;  %v15_v17 = vld [vmem:[%s2505_s0 + $0x8] sm:$0xff]  ;;  %v125_v23 = vld [vmem:[%s2504_s1 + $0x1f8] sm:$0xff]  ;;  %469 = vmatprep.mubr.f32.mxu1 %v17_v21  ;;  %v1362_v25 = vpack.c.bf16 %v107_v16, %v106_v15  ;;  %v76_v27 = vld [vmem:[%s2504_s1 + $0x70] sm:$0xff] }
  0x16   :  { %1325 = vmatprep.subr.bf16.mxu0 %v1324_v0  ;;  %389 = vmatprep.mubr.f32.mxu0 %v15_v17  ;;  %v77_v28 = vld [vmem:[%s2504_s1 + $0x78] sm:$0xff]  ;;  %v108_v29 = vld [vmem:[%s2504_s1 + $0x170] sm:$0xff]  ;;  %v1364_v30 = vpack.c.bf16 %v125_v23, %v124_v22  ;;  %v142_v32 = vld [vmem:[%s2504_s1 + $0x280] sm:$0xff] }
  0x17   :  { %1355 = vmatpush3.bf16.msra.mxu1 %v1354_v63  ;;  %v109_v31 = vld [vmem:[%s2504_s1 + $0x178] sm:$0xff]  ;;  %v143_v33 = vld [vmem:[%s2504_s1 + $0x288] sm:$0xff]  ;;  %v174_v34 = vld [vmem:[%s2504_s1 + $0x380] sm:$0xff]  ;;  %v1334_v36 = vpack.c.bf16 %v77_v28, %v76_v27 }
  0x18   :  { %1357 = vmatprep.subr.bf16.mxu1 %v1356_v4  ;;  %v175_v35 = vld [vmem:[%s2504_s1 + $0x388] sm:$0xff]  ;;  %v1366_v37 = vpack.c.bf16 %v109_v31, %v108_v29  ;;  %v1368_v38 = vpack.c.bf16 %v143_v33, %v142_v32  ;;  %v126_v39 = vld [vmem:[%s2504_s1 + $0x200] sm:$0xff]  ;;  %v144_v44 = vld [vmem:[%s2504_s1 + $0x290] sm:$0xff] }
  0x19   :  { %1327 = vmatpush3.bf16.msra.mxu0 %v1326_v10  ;;  %v127_v40 = vld [vmem:[%s2504_s1 + $0x208] sm:$0xff]  ;;  %v158_v41 = vld [vmem:[%s2504_s1 + $0x300] sm:$0xff]  ;;  %v1400_v42 = vpack.c.bf16 %v175_v35, %v174_v34  ;;  %v145_v45 = vld [vmem:[%s2504_s1 + $0x298] sm:$0xff] }
  0x1a   :  { %1329 = vmatprep.subr.bf16.mxu0 %v1328_v14  ;;  %v159_v43 = vld [vmem:[%s2504_s1 + $0x308] sm:$0xff]  ;;  %v176_v46 = vld [vmem:[%s2504_s1 + $0x390] sm:$0xff]  ;;  %v177_v47 = vld [vmem:[%s2504_s1 + $0x398] sm:$0xff]  ;;  %v1370_v49 = vpack.c.bf16 %v127_v40, %v126_v39  ;;  %v1372_v52 = vpack.c.bf16 %v145_v45, %v144_v44 }
  0x1b   :  { %1359 = vmatpush3.bf16.msra.mxu1 %v1358_v13  ;;  %v14_v48 = vld [vmem:[%s2505_s0] sm:$0xff]  ;;  %v16_v50 = vld [vmem:[%s2505_s0 + $0x10] sm:$0xff]  ;;  %v1402_v51 = vpack.c.bf16 %v159_v43, %v158_v41  ;;  %v129_v54 = vld [vmem:[%s2504_s1 + $0x218] sm:$0xff]  ;;  %v1404_v56 = vpack.c.bf16 %v177_v47, %v176_v46 }
  0x1c   :  { %1361 = vmatprep.subr.bf16.mxu1 %v1360_v18  ;;  %v128_v53 = vld [vmem:[%s2504_s1 + $0x210] sm:$0xff]  ;;  %v161_v57 = vld [vmem:[%s2504_s1 + $0x318] sm:$0xff]  ;;  %v146_v58 = vld [vmem:[%s2504_s1 + $0x2a0] sm:$0xff] }
  0x1d   :  { %1331 = vmatpush3.bf16.msra.mxu0 %v1330_v24  ;;  %v160_v55 = vld [vmem:[%s2504_s1 + $0x310] sm:$0xff]  ;;  %v147_v59 = vld [vmem:[%s2504_s1 + $0x2a8] sm:$0xff]  ;;  %v178_v60 = vld [vmem:[%s2504_s1 + $0x3a0] sm:$0xff]  ;;  %v1374_v62 = vpack.c.bf16 %v129_v54, %v128_v53 }
  0x1e   :  { %1333 = vmatprep.subr.bf16.mxu0 %v1332_v26  ;;  %v179_v61 = vld [vmem:[%s2504_s1 + $0x3a8] sm:$0xff]  ;;  %v130_v63 = vld [vmem:[%s2504_s1 + $0x220] sm:$0xff]  ;;  %v1406_v0 = vpack.c.bf16 %v161_v57, %v160_v55  ;;  %v1376_v1 = vpack.c.bf16 %v147_v59, %v146_v58  ;;  %v148_v6 = vld [vmem:[%s2504_s1 + $0x2b0] sm:$0xff] }
  0x1f   :  { %1363 = vmatpush3.bf16.msra.mxu1 %v1362_v25  ;;  %v131_v2 = vld [vmem:[%s2504_s1 + $0x228] sm:$0xff]  ;;  %v162_v3 = vld [vmem:[%s2504_s1 + $0x320] sm:$0xff]  ;;  %v1408_v5 = vpack.c.bf16 %v179_v61, %v178_v60  ;;  %v149_v7 = vld [vmem:[%s2504_s1 + $0x2b8] sm:$0xff] }
  0x20   :  { %1365 = vmatprep.subr.bf16.mxu1 %v1364_v30  ;;  %v163_v4 = vld [vmem:[%s2504_s1 + $0x328] sm:$0xff]  ;;  %v180_v9 = vld [vmem:[%s2504_s1 + $0x3b0] sm:$0xff]  ;;  %v181_v10 = vld [vmem:[%s2504_s1 + $0x3b8] sm:$0xff]  ;;  %v1378_v12 = vpack.c.bf16 %v131_v2, %v130_v63  ;;  %v1380_v17 = vpack.c.bf16 %v149_v7, %v148_v6 }
  0x21   :  { %1335 = vmatpush3.bf16.msra.mxu0 %v1334_v36  ;;  %v31_v8 = vld [vmem:[%s2505_s0 + $0x88] sm:$0xff]  ;;  %v30_v11 = vld [vmem:[%s2505_s0 + $0x80] sm:$0xff]  ;;  %v132_v13 = vld [vmem:[%s2504_s1 + $0x230] sm:$0xff]  ;;  %v1410_v16 = vpack.c.bf16 %v163_v4, %v162_v3  ;;  %v1412_v21 = vpack.c.bf16 %v181_v10, %v180_v9 }
  0x22   :  { %1369 = vmatprep.subr.bf16.mxu0 %v1368_v38  ;;  %v133_v14 = vld [vmem:[%s2504_s1 + $0x238] sm:$0xff]  ;;  %v164_v18 = vld [vmem:[%s2504_s1 + $0x330] sm:$0xff]  ;;  %v150_v22 = vld [vmem:[%s2504_s1 + $0x2c0] sm:$0xff] }
  0x23   :  { %1367 = vmatpush3.bf16.msra.mxu1 %v1366_v37  ;;  %v33_v15 = vld [vmem:[%s2505_s0 + $0x98] sm:$0xff]  ;;  %v32_v20 = vld [vmem:[%s2505_s0 + $0x90] sm:$0xff]  ;;  %v151_v23 = vld [vmem:[%s2504_s1 + $0x2c8] sm:$0xff]  ;;  %v1382_v28 = vpack.c.bf16 %v133_v14, %v132_v13 }
  0x24   :  { %1401 = vmatprep.subr.bf16.mxu1 %v1400_v42  ;;  %390 = vmatmul.mubr.f32.vlgmr.msra.gmra.mrb[0].mxu0 %v14_v48  ;;  %v165_v19 = vld [vmem:[%s2504_s1 + $0x338] sm:$0xff]  ;;  %v47_v24 = vld [vmem:[%s2505_s0 + $0x108] sm:$0x3]  ;;  %v182_v25 = vld [vmem:[%s2504_s1 + $0x3c0] sm:$0xff]  ;;  %v1384_v33 = vpack.c.bf16 %v151_v23, %v150_v22 }
  0x25   :  { %1371 = vmatpush3.bf16.msra.mxu0 %v1370_v49  ;;  %394 = vmatprep.mubr.f32.mxu0 %v31_v8  ;;  %v183_v26 = vld [vmem:[%s2504_s1 + $0x3c8] sm:$0xff]  ;;  %v46_v27 = vld [vmem:[%s2505_s0 + $0x100] sm:$0x3]  ;;  %v49_v31 = vld [vmem:[%s2505_s0 + $0x118] sm:$0x3]  ;;  %v1414_v32 = vpack.c.bf16 %v165_v19, %v164_v18 }
  0x26   :  { %470 = vmatmul.mubr.f32.vlgmr.msra.gmra.mrb[0].mxu1 %v16_v50  ;;  %1373 = vmatprep.subr.bf16.mxu0 %v1372_v52  ;;  %v134_v29 = vld [vmem:[%s2504_s1 + $0x240] sm:$0xff]  ;;  %v135_v30 = vld [vmem:[%s2504_s1 + $0x248] sm:$0xff]  ;;  %v48_v36 = vld [vmem:[%s2505_s0 + $0x110] sm:$0x3]  ;;  %v1416_v37 = vpack.c.bf16 %v183_v26, %v182_v25 }
  0x27   :  { %1403 = vmatpush3.bf16.msra.mxu1 %v1402_v51  ;;  %474 = vmatprep.mubr.f32.mxu1 %v33_v15  ;;  %v166_v34 = vld [vmem:[%s2504_s1 + $0x340] sm:$0xff]  ;;  %v167_v35 = vld [vmem:[%s2504_s1 + $0x348] sm:$0xff]  ;;  %v152_v38 = vld [vmem:[%s2504_s1 + $0x2d0] sm:$0xff]  ;;  %v1386_v43 = vpack.c.bf16 %v135_v30, %v134_v29 }
  0x28   :  { %1405 = vmatprep.subr.bf16.mxu1 %v1404_v56  ;;  %395 = vmatmul.mubr.f32.gmra.mrb[2].mxu0 %v30_v11  ;;  %v153_v39 = vld [vmem:[%s2504_s1 + $0x2d8] sm:$0xff]  ;;  %v19_v40 = vld [vmem:[%s2505_s0 + $0x28] sm:$0xff]  ;;  %v184_v41 = vld [vmem:[%s2504_s1 + $0x3d0] sm:$0xff]  ;;  %v1418_v45 = vpack.c.bf16 %v167_v35, %v166_v34 }
  0x29   :  { %1375 = vmatpush3.bf16.msra.mxu0 %v1374_v62  ;;  %399 = vmatprep.mubr.f32.mxu0 %v47_v24  ;;  %v185_v42 = vld [vmem:[%s2504_s1 + $0x3d8] sm:$0xff]  ;;  %v1388_v46 = vpack.c.bf16 %v153_v39, %v152_v38  ;;  %v136_v47 = vld [vmem:[%s2504_s1 + $0x250] sm:$0xff]  ;;  %v154_v52 = vld [vmem:[%s2504_s1 + $0x2e0] sm:$0xff] }
  0x2a   :  { %1377 = vmatprep.subr.bf16.mxu0 %v1376_v1  ;;  %475 = vmatmul.mubr.f32.gmra.mrb[2].mxu1 %v32_v20  ;;  %v21_v44 = vld [vmem:[%s2505_s0 + $0x38] sm:$0xff]  ;;  %v168_v49 = vld [vmem:[%s2504_s1 + $0x350] sm:$0xff]  ;;  %v1420_v50 = vpack.c.bf16 %v185_v42, %v184_v41  ;;  %v155_v53 = vld [vmem:[%s2504_s1 + $0x2e8] sm:$0xff] }
  0x2b   :  { %1407 = vmatpush3.bf16.msra.mxu1 %v1406_v0  ;;  %479 = vmatprep.mubr.f32.mxu1 %v49_v31  ;;  %v137_v48 = vld [vmem:[%s2504_s1 + $0x258] sm:$0xff]  ;;  %v186_v54 = vld [vmem:[%s2504_s1 + $0x3e0] sm:$0xff]  ;;  %v187_v55 = vld [vmem:[%s2504_s1 + $0x3e8] sm:$0xff]  ;;  %v1392_v58 = vpack.c.bf16 %v155_v53, %v154_v52 }
  0x2c   :  { %1409 = vmatprep.subr.bf16.mxu1 %v1408_v5  ;;  %400 = vmatmul.mubr.f32.gmra.mrb[4].mxu0 %v46_v27  ;;  %v169_v51 = vld [vmem:[%s2504_s1 + $0x358] sm:$0xff]  ;;  %v1390_v56 = vpack.c.bf16 %v137_v48, %v136_v47  ;;  %v138_v59 = vld [vmem:[%s2504_s1 + $0x260] sm:$0xff]  ;;  %v139_v60 = vld [vmem:[%s2504_s1 + $0x268] sm:$0xff]  ;;  %v1424_v62 = vpack.c.bf16 %v187_v55, %v186_v54 }
  0x2d   :  { %1379 = vmatpush3.bf16.msra.mxu0 %v1378_v12  ;;  %549 = vmatprep.mubr.f32.mxu0 %v19_v40  ;;  %v1422_v57 = vpack.c.bf16 %v169_v51, %v168_v49  ;;  %v170_v61 = vld [vmem:[%s2504_s1 + $0x360] sm:$0xff]  ;;  %v171_v63 = vld [vmem:[%s2504_s1 + $0x368] sm:$0xff]  ;;  %v156_v0 = vld [vmem:[%s2504_s1 + $0x2f0] sm:$0xff]  ;;  %v1394_v4 = vpack.c.bf16 %v139_v60, %v138_v59 }
  0x2e   :  { %1381 = vmatprep.subr.bf16.mxu0 %v1380_v17  ;;  %480 = vmatmul.mubr.f32.gmra.mrb[4].mxu1 %v48_v36  ;;  %v157_v1 = vld [vmem:[%s2504_s1 + $0x2f8] sm:$0xff]  ;;  %v188_v2 = vld [vmem:[%s2504_s1 + $0x3f0] sm:$0xff]  ;;  %v1426_v5 = vpack.c.bf16 %v171_v63, %v170_v61  ;;  %v206_v12 = vld [vmem:[%s2504_s1 + $0x480] sm:$0xff] }
  0x2f   :  { %1411 = vmatpush3.bf16.msra.mxu1 %v1410_v16  ;;  %629 = vmatprep.mubr.f32.mxu1 %v21_v44  ;;  %v189_v3 = vld [vmem:[%s2504_s1 + $0x3f8] sm:$0xff]  ;;  %v1396_v6 = vpack.c.bf16 %v157_v1, %v156_v0  ;;  %v140_v7 = vld [vmem:[%s2504_s1 + $0x270] sm:$0xff]  ;;  %v207_v13 = vld [vmem:[%s2504_s1 + $0x488] sm:$0xff] }
  0x30   :  { %1413 = vmatprep.subr.bf16.mxu1 %v1412_v21  ;;  %v141_v8 = vld [vmem:[%s2504_s1 + $0x278] sm:$0xff]  ;;  %v172_v9 = vld [vmem:[%s2504_s1 + $0x370] sm:$0xff]  ;;  %v1428_v10 = vpack.c.bf16 %v189_v3, %v188_v2  ;;  %v238_v14 = vld [vmem:[%s2504_s1 + $0x580] sm:$0xff]  ;;  %v1432_v18 = vpack.c.bf16 %v207_v13, %v206_v12 }
  0x31   :  { %1383 = vmatpush3.bf16.msra.mxu0 %v1382_v28  ;;  %v173_v11 = vld [vmem:[%s2504_s1 + $0x378] sm:$0xff]  ;;  %v239_v15 = vld [vmem:[%s2504_s1 + $0x588] sm:$0xff]  ;;  %v1398_v16 = vpack.c.bf16 %v141_v8, %v140_v7  ;;  %v190_v19 = vld [vmem:[%s2504_s1 + $0x400] sm:$0xff] }
  0x32   :  { %1385 = vmatprep.subr.bf16.mxu0 %v1384_v33  ;;  %v1430_v17 = vpack.c.bf16 %v173_v11, %v172_v9  ;;  %v191_v20 = vld [vmem:[%s2504_s1 + $0x408] sm:$0xff]  ;;  %v1464_v21 = vpack.c.bf16 %v239_v15, %v238_v14  ;;  %v222_v22 = vld [vmem:[%s2504_s1 + $0x500] sm:$0xff]  ;;  %v208_v25 = vld [vmem:[%s2504_s1 + $0x490] sm:$0xff] }
  0x33   :  { %1415 = vmatpush3.bf16.msra.mxu1 %v1414_v32  ;;  %v223_v23 = vld [vmem:[%s2504_s1 + $0x508] sm:$0xff]  ;;  %v18_v24 = vld [vmem:[%s2505_s0 + $0x20] sm:$0xff]  ;;  %v209_v26 = vld [vmem:[%s2504_s1 + $0x498] sm:$0xff]  ;;  %v1434_v27 = vpack.c.bf16 %v191_v20, %v190_v19 }
  0x34   :  { %1417 = vmatprep.subr.bf16.mxu1 %v1416_v37  ;;  %v20_v28 = vld [vmem:[%s2505_s0 + $0x30] sm:$0xff]  ;;  %v241_v30 = vld [vmem:[%s2504_s1 + $0x598] sm:$0xff]  ;;  %v1466_v31 = vpack.c.bf16 %v223_v23, %v222_v22  ;;  %v35_v32 = vld [vmem:[%s2505_s0 + $0xa8] sm:$0xff]  ;;  %v1436_v36 = vpack.c.bf16 %v209_v26, %v208_v25 }
  0x35   :  { %1387 = vmatpush3.bf16.msra.mxu0 %v1386_v43  ;;  %v240_v29 = vld [vmem:[%s2504_s1 + $0x590] sm:$0xff]  ;;  %v193_v34 = vld [vmem:[%s2504_s1 + $0x418] sm:$0xff]  ;;  %v34_v35 = vld [vmem:[%s2505_s0 + $0xa0] sm:$0xff] }
  0x36   :  { %1389 = vmatprep.subr.bf16.mxu0 %v1388_v46  ;;  %v192_v33 = vld [vmem:[%s2504_s1 + $0x410] sm:$0xff]  ;;  %v37_v37 = vld [vmem:[%s2505_s0 + $0xb8] sm:$0xff]  ;;  %v1468_v40 = vpack.c.bf16 %v241_v30, %v240_v29  ;;  %v210_v42 = vld [vmem:[%s2504_s1 + $0x4a0] sm:$0xff] }
  0x37   :  { %1419 = vmatpush3.bf16.msra.mxu1 %v1418_v45  ;;  %v224_v38 = vld [vmem:[%s2504_s1 + $0x510] sm:$0xff]  ;;  %v225_v39 = vld [vmem:[%s2504_s1 + $0x518] sm:$0xff]  ;;  %v211_v43 = vld [vmem:[%s2504_s1 + $0x4a8] sm:$0xff]  ;;  %v1438_v44 = vpack.c.bf16 %v193_v34, %v192_v33 }
  0x38   :  { %1421 = vmatprep.subr.bf16.mxu1 %v1420_v50  ;;  %v36_v41 = vld [vmem:[%s2505_s0 + $0xb0] sm:$0xff]  ;;  %v51_v45 = vld [vmem:[%s2505_s0 + $0x128] sm:$0x3]  ;;  %v242_v46 = vld [vmem:[%s2504_s1 + $0x5a0] sm:$0xff]  ;;  %v1470_v48 = vpack.c.bf16 %v225_v39, %v224_v38  ;;  %v1440_v52 = vpack.c.bf16 %v211_v43, %v210_v42 }
  0x39   :  { %1391 = vmatpush3.bf16.msra.mxu0 %v1390_v56  ;;  %v243_v47 = vld [vmem:[%s2504_s1 + $0x5a8] sm:$0xff]  ;;  %v194_v49 = vld [vmem:[%s2504_s1 + $0x420] sm:$0xff]  ;;  %v212_v54 = vld [vmem:[%s2504_s1 + $0x4b0] sm:$0xff] }
  0x3a   :  { %1393 = vmatprep.subr.bf16.mxu0 %v1392_v58  ;;  %v195_v50 = vld [vmem:[%s2504_s1 + $0x428] sm:$0xff]  ;;  %v226_v51 = vld [vmem:[%s2504_s1 + $0x520] sm:$0xff]  ;;  %v213_v55 = vld [vmem:[%s2504_s1 + $0x4b8] sm:$0xff] }
  0x3b   :  { %1423 = vmatpush3.bf16.msra.mxu1 %v1422_v57  ;;  %v227_v53 = vld [vmem:[%s2504_s1 + $0x528] sm:$0xff]  ;;  %v53_v56 = vld [vmem:[%s2505_s0 + $0x138] sm:$0x3]  ;;  %v1472_v57 = vpack.c.bf16 %v243_v47, %v242_v46  ;;  %v244_v58 = vld [vmem:[%s2504_s1 + $0x5b0] sm:$0xff]  ;;  %v1442_v61 = vpack.c.bf16 %v195_v50, %v194_v49  ;;  %v1444_v0 = vpack.c.bf16 %v213_v55, %v212_v54 }
  0x3c   :  { %1425 = vmatprep.subr.bf16.mxu1 %v1424_v62  ;;  %v245_v59 = vld [vmem:[%s2504_s1 + $0x5b8] sm:$0xff]  ;;  %v50_v60 = vld [vmem:[%s2505_s0 + $0x120] sm:$0x3]  ;;  %v52_v62 = vld [vmem:[%s2505_s0 + $0x130] sm:$0x3]  ;;  %v1474_v63 = vpack.c.bf16 %v227_v53, %v226_v51 }
  0x3d   :  { %1395 = vmatpush3.bf16.msra.mxu0 %v1394_v4  ;;  %v196_v1 = vld [vmem:[%s2504_s1 + $0x430] sm:$0xff]  ;;  %v197_v2 = vld [vmem:[%s2504_s1 + $0x438] sm:$0xff]  ;;  %v1476_v4 = vpack.c.bf16 %v245_v59, %v244_v58  ;;  %v215_v7 = vld [vmem:[%s2504_s1 + $0x4c8] sm:$0xff] }
  0x3e   :  { %1397 = vmatprep.subr.bf16.mxu0 %v1396_v6  ;;  %v228_v3 = vld [vmem:[%s2504_s1 + $0x530] sm:$0xff]  ;;  %v214_v6 = vld [vmem:[%s2504_s1 + $0x4c0] sm:$0xff]  ;;  %v247_v9 = vld [vmem:[%s2504_s1 + $0x5c8] sm:$0xff]  ;;  %v1446_v11 = vpack.c.bf16 %v197_v2, %v196_v1 }
  0x3f   :  { %1427 = vmatpush3.bf16.msra.mxu1 %v1426_v5  ;;  %v229_v5 = vld [vmem:[%s2504_s1 + $0x538] sm:$0xff]  ;;  %v246_v8 = vld [vmem:[%s2504_s1 + $0x5c0] sm:$0xff]  ;;  %v1448_v14 = vpack.c.bf16 %v215_v7, %v214_v6  ;;  %v231_v19 = vld [vmem:[%s2504_s1 + $0x548] sm:$0xff] }
  0x40   :  { %1429 = vmatprep.subr.bf16.mxu1 %v1428_v10  ;;  %v23_v10 = vld [vmem:[%s2505_s0 + $0x48] sm:$0xff]  ;;  %v25_v12 = vld [vmem:[%s2505_s0 + $0x58] sm:$0xff]  ;;  %v1478_v13 = vpack.c.bf16 %v229_v5, %v228_v3  ;;  %v198_v15 = vld [vmem:[%s2504_s1 + $0x440] sm:$0xff] }
  0x41   :  { %1399 = vmatpush3.bf16.msra.mxu0 %v1398_v16  ;;  %v199_v16 = vld [vmem:[%s2504_s1 + $0x448] sm:$0xff]  ;;  %v216_v20 = vld [vmem:[%s2504_s1 + $0x4d0] sm:$0xff]  ;;  %v249_v23 = vld [vmem:[%s2504_s1 + $0x5d8] sm:$0xff] }
  0x42   :  { %1433 = vmatprep.subr.bf16.mxu0 %v1432_v18  ;;  %v1480_v18 = vpack.c.bf16 %v247_v9, %v246_v8  ;;  %v248_v22 = vld [vmem:[%s2504_s1 + $0x5d0] sm:$0xff]  ;;  %v219_v33 = vld [vmem:[%s2504_s1 + $0x4e8] sm:$0xff]  ;;  %v250_v34 = vld [vmem:[%s2504_s1 + $0x5e0] sm:$0xff] }
  0x43   :  { %1431 = vmatpush3.bf16.msra.mxu1 %v1430_v17  ;;  %v230_v17 = vld [vmem:[%s2504_s1 + $0x540] sm:$0xff]  ;;  %v232_v29 = vld [vmem:[%s2504_s1 + $0x550] sm:$0xff]  ;;  %v1484_v30 = vpack.c.bf16 %v249_v23, %v248_v22  ;;  %v235_v43 = vld [vmem:[%s2504_s1 + $0x568] sm:$0xff] }
  0x44   :  { %1465 = vmatprep.subr.bf16.mxu1 %v1464_v21  ;;  %550 = vmatmul.mubr.f32.vlgmr.msra.gmra.mrb[6].mxu0 %v18_v24  ;;  %v217_v21 = vld [vmem:[%s2504_s1 + $0x4d8] sm:$0xff]  ;;  %v1450_v24 = vpack.c.bf16 %v199_v16, %v198_v15  ;;  %v1482_v25 = vpack.c.bf16 %v231_v19, %v230_v17  ;;  %v202_v39 = vld [vmem:[%s2504_s1 + $0x460] sm:$0xff]  ;;  %v252_v46 = vld [vmem:[%s2504_s1 + $0x5f0] sm:$0xff] }
  0x45   :  { %1435 = vmatpush3.bf16.msra.mxu0 %v1434_v27  ;;  %554 = vmatprep.mubr.f32.mxu0 %v35_v32  ;;  %v1452_v26 = vpack.c.bf16 %v217_v21, %v216_v20  ;;  %v200_v27 = vld [vmem:[%s2504_s1 + $0x450] sm:$0xff]  ;;  %v218_v32 = vld [vmem:[%s2504_s1 + $0x4e0] sm:$0xff]  ;;  %v253_v47 = vld [vmem:[%s2504_s1 + $0x5f8] sm:$0xff] }
  0x46   :  { %630 = vmatmul.mubr.f32.vlgmr.msra.gmra.mrb[6].mxu1 %v20_v28  ;;  %1437 = vmatprep.subr.bf16.mxu0 %v1436_v36  ;;  %v201_v28 = vld [vmem:[%s2504_s1 + $0x458] sm:$0xff]  ;;  %v1456_v38 = vpack.c.bf16 %v219_v33, %v218_v32  ;;  %v204_v51 = vld [vmem:[%s2504_s1 + $0x470] sm:$0xff]  ;;  %v1492_v54 = vpack.c.bf16 %v253_v47, %v252_v46  ;;  %v302_v58 = vld [vmem:[%s2504_s1 + $0x780] sm:$0xff] }
  0x47   :  { %1467 = vmatpush3.bf16.msra.mxu1 %v1466_v31  ;;  %634 = vmatprep.mubr.f32.mxu1 %v37_v37  ;;  %v233_v31 = vld [vmem:[%s2504_s1 + $0x558] sm:$0xff]  ;;  %v1454_v36 = vpack.c.bf16 %v201_v28, %v200_v27  ;;  %v236_v53 = vld [vmem:[%s2504_s1 + $0x570] sm:$0xff]  ;;  %v303_v59 = vld [vmem:[%s2504_s1 + $0x788] sm:$0xff] }
  0x48   :  { %555 = vmatmul.mubr.f32.gmra.mrb[8].mxu0 %v34_v35  ;;  %1469 = vmatprep.subr.bf16.mxu1 %v1468_v40  ;;  %v251_v35 = vld [vmem:[%s2504_s1 + $0x5e8] sm:$0xff]  ;;  %v1486_v37 = vpack.c.bf16 %v233_v31, %v232_v29  ;;  %v237_v55 = vld [vmem:[%s2504_s1 + $0x578] sm:$0xff]  ;;  %v1528_v1 = vpack.c.bf16 %v303_v59, %v302_v58  ;;  %v286_v2 = vld [vmem:[%s2504_s1 + $0x700] sm:$0xff] }
  0x49   :  { %1439 = vmatpush3.bf16.msra.mxu0 %v1438_v44  ;;  %559 = vmatprep.mubr.f32.mxu0 %v51_v45  ;;  %v203_v40 = vld [vmem:[%s2504_s1 + $0x468] sm:$0xff]  ;;  %v1488_v42 = vpack.c.bf16 %v251_v35, %v250_v34  ;;  %v220_v44 = vld [vmem:[%s2504_s1 + $0x4f0] sm:$0xff]  ;;  %v221_v45 = vld [vmem:[%s2504_s1 + $0x4f8] sm:$0xff] }
  0x4a   :  { %635 = vmatmul.mubr.f32.gmra.mrb[8].mxu1 %v36_v41  ;;  %1441 = vmatprep.subr.bf16.mxu0 %v1440_v52  ;;  %v234_v41 = vld [vmem:[%s2504_s1 + $0x560] sm:$0xff]  ;;  %v1460_v50 = vpack.c.bf16 %v221_v45, %v220_v44  ;;  %v205_v52 = vld [vmem:[%s2504_s1 + $0x478] sm:$0xff]  ;;  %v287_v3 = vld [vmem:[%s2504_s1 + $0x708] sm:$0xff] }
  0x4b   :  { %1471 = vmatpush3.bf16.msra.mxu1 %v1470_v48  ;;  %639 = vmatprep.mubr.f32.mxu1 %v53_v56  ;;  %v1458_v48 = vpack.c.bf16 %v203_v40, %v202_v39  ;;  %v1490_v49 = vpack.c.bf16 %v235_v43, %v234_v41  ;;  %v270_v56 = vld [vmem:[%s2504_s1 + $0x680] sm:$0xff]  ;;  %v272_v5 = vld [vmem:[%s2504_s1 + $0x690] sm:$0xff]  ;;  %v273_v6 = vld [vmem:[%s2504_s1 + $0x698] sm:$0xff] }
  0x4c   :  { %560 = vmatmul.mubr.f32.gmra.mrb[10].mxu0 %v50_v60  ;;  %1473 = vmatprep.subr.bf16.mxu1 %v1472_v57  ;;  %v271_v57 = vld [vmem:[%s2504_s1 + $0x688] sm:$0xff]  ;;  %v1462_v60 = vpack.c.bf16 %v205_v52, %v204_v51  ;;  %v24_v8 = vld [vmem:[%s2505_s0 + $0x50] sm:$0xff]  ;;  %v38_v15 = vld [vmem:[%s2505_s0 + $0xc0] sm:$0xff]  ;;  %v1500_v16 = vpack.c.bf16 %v273_v6, %v272_v5 }
  0x4d   :  { %1443 = vmatpush3.bf16.msra.mxu0 %v1442_v61  ;;  %709 = vmatprep.mubr.f32.mxu0 %v23_v10  ;;  %v1494_v61 = vpack.c.bf16 %v237_v55, %v236_v53  ;;  %v304_v9 = vld [vmem:[%s2504_s1 + $0x790] sm:$0xff]  ;;  %v305_v10 = vld [vmem:[%s2504_s1 + $0x798] sm:$0xff]  ;;  %v274_v22 = vld [vmem:[%s2504_s1 + $0x6a0] sm:$0xff] }
  0x4e   :  { %640 = vmatmul.mubr.f32.gmra.mrb[10].mxu1 %v52_v62  ;;  %1445 = vmatprep.subr.bf16.mxu0 %v1444_v0  ;;  %v1496_v62 = vpack.c.bf16 %v271_v57, %v270_v56  ;;  %v255_v0 = vld [vmem:[%s2504_s1 + $0x608] sm:$0xff]  ;;  %v41_v17 = vld [vmem:[%s2505_s0 + $0xd8] sm:$0xff]  ;;  %v1532_v20 = vpack.c.bf16 %v305_v10, %v304_v9  ;;  %v40_v21 = vld [vmem:[%s2505_s0 + $0xd0] sm:$0xff] }
  0x4f   :  { %1475 = vmatpush3.bf16.msra.mxu1 %v1474_v63  ;;  %789 = vmatprep.mubr.f32.mxu1 %v25_v12  ;;  %v254_v63 = vld [vmem:[%s2504_s1 + $0x600] sm:$0xff]  ;;  %v39_v12 = vld [vmem:[%s2505_s0 + $0xc8] sm:$0xff]  ;;  %v289_v19 = vld [vmem:[%s2504_s1 + $0x718] sm:$0xff] }
  0x50   :  { %1477 = vmatprep.subr.bf16.mxu1 %v1476_v4  ;;  %v22_v4 = vld [vmem:[%s2505_s0 + $0x40] sm:$0xff]  ;;  %v1498_v7 = vpack.c.bf16 %v255_v0, %v254_v63  ;;  %v275_v23 = vld [vmem:[%s2504_s1 + $0x6a8] sm:$0xff]  ;;  %v276_v34 = vld [vmem:[%s2504_s1 + $0x6b0] sm:$0xff] }
  0x51   :  { %1447 = vmatpush3.bf16.msra.mxu0 %v1446_v11  ;;  %v1530_v11 = vpack.c.bf16 %v287_v3, %v286_v2  ;;  %v307_v27 = vld [vmem:[%s2504_s1 + $0x7a8] sm:$0xff]  ;;  %v258_v29 = vld [vmem:[%s2504_s1 + $0x620] sm:$0xff]  ;;  %v1504_v32 = vpack.c.bf16 %v275_v23, %v274_v22  ;;  %v277_v35 = vld [vmem:[%s2504_s1 + $0x6b8] sm:$0xff] }
  0x52   :  { %1449 = vmatprep.subr.bf16.mxu0 %v1448_v14  ;;  %v257_v14 = vld [vmem:[%s2504_s1 + $0x618] sm:$0xff]  ;;  %v290_v31 = vld [vmem:[%s2504_s1 + $0x720] sm:$0xff]  ;;  %v291_v33 = vld [vmem:[%s2504_s1 + $0x728] sm:$0xff]  ;;  %v1508_v44 = vpack.c.bf16 %v277_v35, %v276_v34 }
  0x53   :  { %1479 = vmatpush3.bf16.msra.mxu1 %v1478_v13  ;;  %v256_v13 = vld [vmem:[%s2504_s1 + $0x610] sm:$0xff]  ;;  %v309_v39 = vld [vmem:[%s2504_s1 + $0x7b8] sm:$0xff]  ;;  %v54_v40 = vld [vmem:[%s2505_s0 + $0x140] sm:$0x3]  ;;  %v1538_v43 = vpack.c.bf16 %v291_v33, %v290_v31 }
  0x54   :  { %1481 = vmatprep.subr.bf16.mxu1 %v1480_v18  ;;  %v288_v18 = vld [vmem:[%s2504_s1 + $0x710] sm:$0xff]  ;;  %v261_v46 = vld [vmem:[%s2504_s1 + $0x638] sm:$0xff]  ;;  %v279_v51 = vld [vmem:[%s2504_s1 + $0x6c8] sm:$0xff] }
  0x55   :  { %1451 = vmatpush3.bf16.msra.mxu0 %v1450_v24  ;;  %v1502_v24 = vpack.c.bf16 %v257_v14, %v256_v13  ;;  %v1534_v28 = vpack.c.bf16 %v289_v19, %v288_v18  ;;  %v260_v45 = vld [vmem:[%s2504_s1 + $0x630] sm:$0xff]  ;;  %v310_v52 = vld [vmem:[%s2504_s1 + $0x7c0] sm:$0xff]  ;;  %v311_v53 = vld [vmem:[%s2504_s1 + $0x7c8] sm:$0xff] }
  0x56   :  { %1453 = vmatprep.subr.bf16.mxu0 %v1452_v26  ;;  %v306_v26 = vld [vmem:[%s2504_s1 + $0x7a0] sm:$0xff]  ;;  %v292_v47 = vld [vmem:[%s2504_s1 + $0x730] sm:$0xff]  ;;  %v1510_v55 = vpack.c.bf16 %v261_v46, %v260_v45  ;;  %v29_v56 = vld [vmem:[%s2505_s0 + $0x78] sm:$0xff] }
  0x57   :  { %1483 = vmatpush3.bf16.msra.mxu1 %v1482_v25  ;;  %v55_v25 = vld [vmem:[%s2505_s0 + $0x148] sm:$0x3]  ;;  %v262_v59 = vld [vmem:[%s2504_s1 + $0x640] sm:$0xff]  ;;  %v280_v0 = vld [vmem:[%s2504_s1 + $0x6d0] sm:$0xff] }
  0x58   :  { %1485 = vmatprep.subr.bf16.mxu1 %v1484_v30  ;;  %v259_v30 = vld [vmem:[%s2504_s1 + $0x628] sm:$0xff]  ;;  %v312_v2 = vld [vmem:[%s2504_s1 + $0x7d0] sm:$0xff]  ;;  %v313_v3 = vld [vmem:[%s2504_s1 + $0x7d8] sm:$0xff] }
  0x59   :  { %1455 = vmatpush3.bf16.msra.mxu0 %v1454_v36  ;;  %v57_v36 = vld [vmem:[%s2505_s0 + $0x158] sm:$0x3]  ;;  %v1506_v41 = vpack.c.bf16 %v259_v30, %v258_v29  ;;  %v295_v63 = vld [vmem:[%s2504_s1 + $0x748] sm:$0xff]  ;;  %v296_v9 = vld [vmem:[%s2504_s1 + $0x750] sm:$0xff]  ;;  %v1548_v10 = vpack.c.bf16 %v313_v3, %v312_v2 }
  0x5a   :  { %1457 = vmatprep.subr.bf16.mxu0 %v1456_v38  ;;  %v308_v38 = vld [vmem:[%s2504_s1 + $0x7b0] sm:$0xff]  ;;  %v283_v13 = vld [vmem:[%s2504_s1 + $0x6e8] sm:$0xff]  ;;  %v314_v14 = vld [vmem:[%s2504_s1 + $0x7e0] sm:$0xff] }
  0x5b   :  { %1487 = vmatpush3.bf16.msra.mxu1 %v1486_v37  ;;  %v1536_v37 = vpack.c.bf16 %v307_v27, %v306_v26  ;;  %v266_v19 = vld [vmem:[%s2504_s1 + $0x660] sm:$0xff]  ;;  %v299_v23 = vld [vmem:[%s2504_s1 + $0x768] sm:$0xff]  ;;  %v316_v26 = vld [vmem:[%s2504_s1 + $0x7f0] sm:$0xff] }
  0x5c   :  { %1489 = vmatprep.subr.bf16.mxu1 %v1488_v42  ;;  %v56_v42 = vld [vmem:[%s2505_s0 + $0x150] sm:$0x3]  ;;  %v317_v27 = vld [vmem:[%s2504_s1 + $0x7f8] sm:$0xff]  ;;  %v58_v46 = vld [vmem:[%s2505_s0 + $0x160] sm:$0x3] }
  0x5d   :  { %1459 = vmatpush3.bf16.msra.mxu0 %v1458_v48  ;;  %v1540_v48 = vpack.c.bf16 %v309_v39, %v308_v38  ;;  %v268_v31 = vld [vmem:[%s2504_s1 + $0x670] sm:$0xff]  ;;  %v1556_v33 = vpack.c.bf16 %v317_v27, %v316_v26  ;;  %v301_v35 = vld [vmem:[%s2504_s1 + $0x778] sm:$0xff]  ;;  %v26_v38 = vld [vmem:[%s2505_s0 + $0x60] sm:$0xff] }
  0x5e   :  { %1461 = vmatprep.subr.bf16.mxu0 %v1460_v50  ;;  %v278_v50 = vld [vmem:[%s2504_s1 + $0x6c0] sm:$0xff]  ;;  %v300_v34 = vld [vmem:[%s2504_s1 + $0x770] sm:$0xff]  ;;  %v61_v45 = vld [vmem:[%s2505_s0 + $0x178] sm:$0x3] }
  0x5f   :  { %1491 = vmatpush3.bf16.msra.mxu1 %v1490_v49  ;;  %v293_v49 = vld [vmem:[%s2504_s1 + $0x738] sm:$0xff]  ;;  %v1512_v58 = vpack.c.bf16 %v279_v51, %v278_v50  ;;  %v28_v39 = vld [vmem:[%s2505_s0 + $0x70] sm:$0xff] }
  0x60   :  { %1493 = vmatprep.subr.bf16.mxu1 %v1492_v54  ;;  %v27_v54 = vld [vmem:[%s2505_s0 + $0x68] sm:$0xff]  ;;  %v1542_v57 = vpack.c.bf16 %v293_v49, %v292_v47  ;;  %v60_v47 = vld [vmem:[%s2505_s0 + $0x170] sm:$0x3]  ;;  %v975_v49 = vld [vmem:[%s2506_s2] ss:$0 sm:$0xff] }
  0x61   :  { %1463 = vmatpush3.bf16.msra.mxu0 %v1462_v60  ;;  %v263_v60 = vld [vmem:[%s2504_s1 + $0x648] sm:$0xff] }
  0x62   :  { %1497 = vmatprep.subr.bf16.mxu0 %v1496_v62  ;;  %v1544_v62 = vpack.c.bf16 %v311_v53, %v310_v52 }
  0x63   :  { %1495 = vmatpush3.bf16.msra.mxu1 %v1494_v61  ;;  %v294_v61 = vld [vmem:[%s2504_s1 + $0x740] sm:$0xff] }
  0x64   :  { %1529 = vmatprep.subr.bf16.mxu1 %v1528_v1  ;;  %710 = vmatmul.mubr.f32.vlgmr.msra.gmra.mrb[12].mxu0 %v22_v4  ;;  %v281_v1 = vld [vmem:[%s2504_s1 + $0x6d8] sm:$0xff]  ;;  %v1514_v4 = vpack.c.bf16 %v263_v60, %v262_v59  ;;  %v1546_v5 = vpack.c.bf16 %v295_v63, %v294_v61 }
  0x65   :  { %1499 = vmatpush3.bf16.msra.mxu0 %v1498_v7  ;;  %714 = vmatprep.mubr.f32.mxu0 %v39_v12  ;;  %v1516_v6 = vpack.c.bf16 %v281_v1, %v280_v0  ;;  %v264_v7 = vld [vmem:[%s2504_s1 + $0x650] sm:$0xff]  ;;  %v282_v12 = vld [vmem:[%s2504_s1 + $0x6e0] sm:$0xff] }
  0x66   :  { %790 = vmatmul.mubr.f32.vlgmr.msra.gmra.mrb[12].mxu1 %v24_v8  ;;  %1501 = vmatprep.subr.bf16.mxu0 %v1500_v16  ;;  %v265_v8 = vld [vmem:[%s2504_s1 + $0x658] sm:$0xff]  ;;  %v1520_v18 = vpack.c.bf16 %v283_v13, %v282_v12 }
  0x67   :  { %1531 = vmatpush3.bf16.msra.mxu1 %v1530_v11  ;;  %794 = vmatprep.mubr.f32.mxu1 %v41_v17  ;;  %v297_v11 = vld [vmem:[%s2504_s1 + $0x758] sm:$0xff]  ;;  %v1518_v16 = vpack.c.bf16 %v265_v8, %v264_v7 }
  0x68   :  { %715 = vmatmul.mubr.f32.gmra.mrb[14].mxu0 %v38_v15  ;;  %1533 = vmatprep.subr.bf16.mxu1 %v1532_v20  ;;  %v315_v15 = vld [vmem:[%s2504_s1 + $0x7e8] sm:$0xff]  ;;  %v1550_v17 = vpack.c.bf16 %v297_v11, %v296_v9 }
  0x69   :  { %1503 = vmatpush3.bf16.msra.mxu0 %v1502_v24  ;;  %719 = vmatprep.mubr.f32.mxu0 %v55_v25  ;;  %v267_v20 = vld [vmem:[%s2504_s1 + $0x668] sm:$0xff]  ;;  %v1552_v22 = vpack.c.bf16 %v315_v15, %v314_v14  ;;  %v284_v24 = vld [vmem:[%s2504_s1 + $0x6f0] sm:$0xff]  ;;  %v285_v25 = vld [vmem:[%s2504_s1 + $0x6f8] sm:$0xff] }
  0x6a   :  { %795 = vmatmul.mubr.f32.gmra.mrb[14].mxu1 %v40_v21  ;;  %1505 = vmatprep.subr.bf16.mxu0 %v1504_v32  ;;  %v298_v21 = vld [vmem:[%s2504_s1 + $0x760] sm:$0xff]  ;;  %v1524_v30 = vpack.c.bf16 %v285_v25, %v284_v24  ;;  %v269_v32 = vld [vmem:[%s2504_s1 + $0x678] sm:$0xff] }
  0x6b   :  { %1535 = vmatpush3.bf16.msra.mxu1 %v1534_v28  ;;  %799 = vmatprep.mubr.f32.mxu1 %v57_v36  ;;  %v1522_v28 = vpack.c.bf16 %v267_v20, %v266_v19  ;;  %v1554_v29 = vpack.c.bf16 %v299_v23, %v298_v21  ;;  %v1526_v36 = vpack.c.bf16 %v269_v32, %v268_v31 }
  0x6c   :  { %720 = vmatmul.mubr.f32.gmra.mrb[16].mxu0 %v54_v40  ;;  %1537 = vmatprep.subr.bf16.mxu1 %v1536_v37  ;;  %v1558_v37 = vpack.c.bf16 %v301_v35, %v300_v34  ;;  %v43_v40 = vld [vmem:[%s2505_s0 + $0xe8] sm:$0xff] }
  0x6d   :  { %1507 = vmatpush3.bf16.msra.mxu0 %v1506_v41  ;;  %869 = vmatprep.mubr.f32.mxu0 %v27_v54  ;;  %v45_v41 = vld [vmem:[%s2505_s0 + $0xf8] sm:$0xff] }
  0x6e   :  { %800 = vmatmul.mubr.f32.gmra.mrb[16].mxu1 %v56_v42  ;;  %1509 = vmatprep.subr.bf16.mxu0 %v1508_v44  ;;  %v42_v42 = vld [vmem:[%s2505_s0 + $0xe0] sm:$0xff]  ;;  %v59_v44 = vld [vmem:[%s2505_s0 + $0x168] sm:$0x3] }
  0x6f   :  { %1539 = vmatpush3.bf16.msra.mxu1 %v1538_v43  ;;  %949 = vmatprep.mubr.f32.mxu1 %v29_v56  ;;  %v44_v43 = vld [vmem:[%s2505_s0 + $0xf0] sm:$0xff] }
  0x70   :  { %1541 = vmatprep.subr.bf16.mxu1 %v1540_v48 }
  0x71   :  { %1511 = vmatpush3.bf16.msra.mxu0 %v1510_v55 }
  0x72   :  { %1513 = vmatprep.subr.bf16.mxu0 %v1512_v58 }
  0x73   :  { %1543 = vmatpush3.bf16.msra.mxu1 %v1542_v57 }
  0x74   :  { %1545 = vmatprep.subr.bf16.mxu1 %v1544_v62 }
  0x75   :  { %1515 = vmatpush3.bf16.msra.mxu0 %v1514_v4 }
  0x76   :  { %1517 = vmatprep.subr.bf16.mxu0 %v1516_v6 }
  0x77   :  { %1547 = vmatpush3.bf16.msra.mxu1 %v1546_v5 }
  0x78   :  { %1549 = vmatprep.subr.bf16.mxu1 %v1548_v10 }
  0x79   :  { %1519 = vmatpush3.bf16.msra.mxu0 %v1518_v16 }
  0x7a   :  { %1521 = vmatprep.subr.bf16.mxu0 %v1520_v18 }
  0x7b   :  { %1551 = vmatpush3.bf16.msra.mxu1 %v1550_v17 }
  0x7c   :  { %1553 = vmatprep.subr.bf16.mxu1 %v1552_v22 }
  0x7d   :  { %1523 = vmatpush3.bf16.msra.mxu0 %v1522_v28 }
  0x7e   :  { %1525 = vmatprep.subr.bf16.mxu0 %v1524_v30 }
  0x7f   :  { %1555 = vmatpush3.bf16.msra.mxu1 %v1554_v29 }
  0x80   :  { %1557 = vmatprep.subr.bf16.mxu1 %v1556_v33 }
  0x81   :  { %1527 = vmatpush3.bf16.msra.mxu0 %v1526_v36 }
  0x83   :  { %1559 = vmatpush3.bf16.msra.mxu1 %v1558_v37 }
  0x84   :  { %870 = vmatmul.mubr.f32.vlgmr.msra.gmra.mrb[18].mxu0 %v26_v38 }
  0x85   :  { %874 = vmatprep.mubr.f32.mxu0 %v43_v40 }
  0x86   :  { %950 = vmatmul.mubr.f32.vlgmr.msra.gmra.mrb[18].mxu1 %v28_v39 }
  0x87   :  { %954 = vmatprep.mubr.f32.mxu1 %v45_v41 }
  0x88   :  { %875 = vmatmul.mubr.f32.gmra.mrb[20].mxu0 %v42_v42 }
  0x89   :  { %879 = vmatprep.mubr.f32.mxu0 %v59_v44 }
  0x8a   :  { %955 = vmatmul.mubr.f32.gmra.mrb[20].mxu1 %v44_v43 }
  0x8b   :  { %959 = vmatprep.mubr.f32.mxu1 %v61_v45 }
  0x8c   :  { %880 = vmatmul.mubr.f32.gmra.mrb[22].mxu0 %v58_v46 }
  0x8e   :  { %960 = vmatmul.mubr.f32.gmra.mrb[22].mxu1 %v60_v47 }
  0xf7   :  { %v1008_v48 = vpop.f32.mrb[0].mxu0 }
  0xf8   :  { %v1009_v50 = vpop.f32.mrb[1].mxu0 }
  0xf9   :  { %v1049_v51 = vpop.f32.mrb[0].mxu1  ;;  %v1010_v52 = vadd.f32 %v1009_v50, %v1008_v48 }
  0xfa   :  { %v1050_v53 = vpop.f32.mrb[1].mxu1 }
  0xfb   :  { %v1051_v54 = vadd.f32 %v1050_v53, %v1049_v51  ;;  %v392_v55 = vadd.f32 %v1010_v52, %v975_v49  ;;  %v1011_v57 = vpop.f32.mrb[2].mxu0 }
  0xfc   :  { %v1012_v58 = vpop.f32.mrb[3].mxu0 }
  0xfd   :  { %v472_v56 = vadd.f32 %v1051_v54, %v392_v55  ;;  %v1013_v59 = vadd.f32 %v1012_v58, %v1011_v57  ;;  %v1052_v60 = vpop.f32.mrb[2].mxu1 }
  0xfe   :  { %v1053_v61 = vpop.f32.mrb[3].mxu1 }
  0xff   :  { %v397_v62 = vadd.f32 %v1013_v59, %v975_v49  ;;  %v1054_v63 = vadd.f32 %v1053_v61, %v1052_v60  ;;  %v1014_v0 = vpop.f32.mrb[4].mxu0 }
 0x100   :  { %v1015_v1 = vpop.f32.mrb[5].mxu0 }
 0x101   :  { %v477_v2 = vadd.f32 %v1054_v63, %v397_v62  ;;  %v1016_v3 = vadd.f32 %v1015_v1, %v1014_v0  ;;  %v1055_v4 = vpop.f32.mrb[4].mxu1 }
 0x102   :  { %v1056_v5 = vpop.f32.mrb[5].mxu1 }
 0x103   :  { %v402_v6 = vadd.f32 %v1016_v3, %v975_v49  ;;  %v1057_v7 = vadd.f32 %v1056_v5, %v1055_v4 }
 0x105   :  { %v482_v8 = vadd.f32 %v1057_v7, %v402_v6 }
 0x117   :  { %v1090_v9 = vpop.f32.mrb[6].mxu0 }
 0x118   :  { %v1091_v10 = vpop.f32.mrb[7].mxu0 }
 0x119   :  { %v1131_v11 = vpop.f32.mrb[6].mxu1  ;;  %v1092_v12 = vadd.f32 %v1091_v10, %v1090_v9 }
 0x11a   :  { %v1132_v13 = vpop.f32.mrb[7].mxu1 }
 0x11b   :  { %v1133_v14 = vadd.f32 %v1132_v13, %v1131_v11  ;;  %v552_v15 = vadd.f32 %v1092_v12, %v472_v56  ;;  %v1093_v16 = vpop.f32.mrb[8].mxu0 }
 0x11c   :  { %v1094_v17 = vpop.f32.mrb[9].mxu0 }
 0x11d   :  { %v1134_v18 = vpop.f32.mrb[8].mxu1  ;;  %v632_v19 = vadd.f32 %v1133_v14, %v552_v15  ;;  %v1095_v20 = vadd.f32 %v1094_v17, %v1093_v16 }
 0x11e   :  { %v1135_v21 = vpop.f32.mrb[9].mxu1 }
 0x11f   :  { %v1136_v22 = vadd.f32 %v1135_v21, %v1134_v18  ;;  %v557_v23 = vadd.f32 %v1095_v20, %v477_v2  ;;  %v1096_v24 = vpop.f32.mrb[10].mxu0 }
 0x120   :  { %v1097_v25 = vpop.f32.mrb[11].mxu0 }
 0x121   :  { %v1137_v26 = vpop.f32.mrb[10].mxu1  ;;  %v637_v27 = vadd.f32 %v1136_v22, %v557_v23  ;;  %v1098_v28 = vadd.f32 %v1097_v25, %v1096_v24 }
 0x122   :  { %v1138_v29 = vpop.f32.mrb[11].mxu1 }
 0x123   :  { %v1139_v30 = vadd.f32 %v1138_v29, %v1137_v26  ;;  %v562_v31 = vadd.f32 %v1098_v28, %v482_v8 }
 0x125   :  { %v642_v32 = vadd.f32 %v1139_v30, %v562_v31 }
 0x137   :  { %v1172_v33 = vpop.f32.mrb[12].mxu0 }
 0x138   :  { %v1173_v34 = vpop.f32.mrb[13].mxu0 }
 0x139   :  { %v1213_v35 = vpop.f32.mrb[12].mxu1  ;;  %v1174_v36 = vadd.f32 %v1173_v34, %v1172_v33 }
 0x13a   :  { %v1214_v37 = vpop.f32.mrb[13].mxu1 }
 0x13b   :  { %v1215_v38 = vadd.f32 %v1214_v37, %v1213_v35  ;;  %v712_v39 = vadd.f32 %v1174_v36, %v632_v19  ;;  %v1175_v40 = vpop.f32.mrb[14].mxu0 }
 0x13c   :  { %v1176_v41 = vpop.f32.mrb[15].mxu0 }
 0x13d   :  { %v1216_v42 = vpop.f32.mrb[14].mxu1  ;;  %v792_v43 = vadd.f32 %v1215_v38, %v712_v39  ;;  %v1177_v44 = vadd.f32 %v1176_v41, %v1175_v40 }
 0x13e   :  { %v1217_v45 = vpop.f32.mrb[15].mxu1 }
 0x13f   :  { %v1218_v46 = vadd.f32 %v1217_v45, %v1216_v42  ;;  %v717_v47 = vadd.f32 %v1177_v44, %v637_v27  ;;  %v1178_v48 = vpop.f32.mrb[16].mxu0 }
 0x140   :  { %v1179_v49 = vpop.f32.mrb[17].mxu0 }
 0x141   :  { %v1219_v50 = vpop.f32.mrb[16].mxu1  ;;  %v797_v51 = vadd.f32 %v1218_v46, %v717_v47  ;;  %v1180_v52 = vadd.f32 %v1179_v49, %v1178_v48 }
 0x142   :  { %v1220_v53 = vpop.f32.mrb[17].mxu1 }
 0x143   :  { %v1221_v54 = vadd.f32 %v1220_v53, %v1219_v50  ;;  %v722_v55 = vadd.f32 %v1180_v52, %v642_v32 }
 0x145   :  { %v802_v56 = vadd.f32 %v1221_v54, %v722_v55 }
 0x157   :  { %v1254_v57 = vpop.f32.mrb[18].mxu0 }
 0x158   :  { %v1255_v58 = vpop.f32.mrb[19].mxu0 }
 0x159   :  { %v1295_v59 = vpop.f32.mrb[18].mxu1  ;;  %v1256_v60 = vadd.f32 %v1255_v58, %v1254_v57 }
 0x15a   :  { %v1296_v61 = vpop.f32.mrb[19].mxu1 }
 0x15b   :  { %v1297_v62 = vadd.f32 %v1296_v61, %v1295_v59  ;;  %v872_v63 = vadd.f32 %v1256_v60, %v792_v43  ;;  %v1257_v0 = vpop.f32.mrb[20].mxu0 }
 0x15c   :  { %v1258_v1 = vpop.f32.mrb[21].mxu0 }
 0x15d   :  { %v1298_v2 = vpop.f32.mrb[20].mxu1  ;;  %v952_v3 = vadd.f32 %v1297_v62, %v872_v63  ;;  %v1259_v4 = vadd.f32 %v1258_v1, %v1257_v0 }
 0x15e   :  { %v1299_v5 = vpop.f32.mrb[21].mxu1 }
 0x15f   :  { %v1300_v6 = vadd.f32 %v1299_v5, %v1298_v2  ;;  %v965_v7 = vmax.f32 %v952_v3, 0.0  ;;  %v877_v8 = vadd.f32 %v1259_v4, %v797_v51  ;;  %v1260_v9 = vpop.f32.mrb[22].mxu0 }
 0x160   :  { %v1261_v10 = vpop.f32.mrb[23].mxu0 }
 0x161   :  { %v1301_v11 = vpop.f32.mrb[22].mxu1  ;;  %968 = vst [vmem:[%s2507_s3] sm:$0xff] %v965_v7  ;;  %v957_v12 = vadd.f32 %v1300_v6, %v877_v8  ;;  %v1262_v13 = vadd.f32 %v1261_v10, %v1260_v9 }
 0x162   :  { %v1302_v14 = vpop.f32.mrb[23].mxu1 }
 0x163   :  { %v1303_v15 = vadd.f32 %v1302_v14, %v1301_v11  ;;  %v966_v16 = vmax.f32 %v957_v12, 0.0  ;;  %v882_v17 = vadd.f32 %v1262_v13, %v802_v56 }
 0x165   :  { %969 = vst [vmem:[%s2507_s3 + $0x8] sm:$0xff] %v966_v16  ;;  %v962_v18 = vadd.f32 %v1303_v15, %v882_v17 }
 0x167   :  { %v967_v19 = vmax.f32 %v962_v18, 0.0 }
 0x169   :  { %970 = vst [vmem:[%s2507_s3 + $0x10] sm:$0x3] %v967_v19 }

// kernel: model_forward.6
= control target key start
LH: loop header
LB: loop body
LE: loop exit
PB: predicated region body
PF: predicated region fallthrough
CT: control target
= control target key end

     0   :  { %v929_v43 = vmov 1983009808   ;;  %v175_v45 = vlaneseq  ;;  %vm931_vm0 = vmmov 0   ;;  %s1416_s1 = inlined_call_operand.vmem [shape: f32[1152,128], index: 1, kind: input, shape index: {}]   ;;  %s1417_s0 = inlined_call_operand.vmem [shape: f32[2,1152], index: 0, kind: input, shape index: {}]   ;;  %s1418_s2 = inlined_call_operand.vmem [shape: f32[1,128], index: 2, kind: input, shape index: {}]   ;;  %s1419_s3 = inlined_call_operand.vmem [shape: f32[2,128], index: 3, kind: output, shape index: {}]  }
   0x1   :  { %v33_v0 = vld [vmem:[%s1416_s1 + $0x80] sm:$0xff]  ;;  %v34_v1 = vld [vmem:[%s1416_s1 + $0x88] sm:$0xff]  ;;  %v35_v11 = vld [vmem:[%s1416_s1 + $0x90] sm:$0xff]  ;;  %v173_v44 = vunpack.c.l.s4 %v929_v43 }
   0x2   :  { %v17_v2 = vld [vmem:[%s1416_s1] sm:$0xff]  ;;  %v771_v3 = vpack.c.bf16 %v34_v1, %v33_v0  ;;  %v18_v4 = vld [vmem:[%s1416_s1 + $0x8] sm:$0xff]  ;;  %v36_v13 = vld [vmem:[%s1416_s1 + $0x98] sm:$0xff]  ;;  %v176_v60 = vshrl.u32 %v175_v45, 7 }
   0x3   :  { %v65_v5 = vld [vmem:[%s1416_s1 + $0x180] sm:$0xff]  ;;  %v66_v6 = vld [vmem:[%s1416_s1 + $0x188] sm:$0xff]  ;;  %v773_v7 = vpack.c.bf16 %v18_v4, %v17_v2  ;;  %v19_v14 = vld [vmem:[%s1416_s1 + $0x10] sm:$0xff]  ;;  %v775_v16 = vpack.c.bf16 %v36_v13, %v35_v11  ;;  %v174_v59 = vunpack.c.0.s8 %v173_v44 }
   0x4   :  { %v803_v8 = vpack.c.bf16 %v66_v6, %v65_v5  ;;  %v49_v9 = vld [vmem:[%s1416_s1 + $0x100] sm:$0xff]  ;;  %v50_v10 = vld [vmem:[%s1416_s1 + $0x108] sm:$0xff]  ;;  %772 = vmatprep.subr.bf16.mxu0 %v771_v3  ;;  %v20_v15 = vld [vmem:[%s1416_s1 + $0x18] sm:$0xff] }
   0x5   :  { %v805_v12 = vpack.c.bf16 %v50_v10, %v49_v9  ;;  %774 = vmatpush3.bf16.msra.mxu0 %v773_v7  ;;  %v777_v17 = vpack.c.bf16 %v20_v15, %v19_v14  ;;  %v67_v18 = vld [vmem:[%s1416_s1 + $0x190] sm:$0xff]  ;;  %v68_v19 = vld [vmem:[%s1416_s1 + $0x198] sm:$0xff]  ;;  %v37_v23 = vld [vmem:[%s1416_s1 + $0xa0] sm:$0xff]  ;;  %v1097_v10 = vsub.s32 %v174_v59, %v176_v60 }
   0x6   :  { %804 = vmatprep.subr.bf16.mxu1 %v803_v8  ;;  %v51_v20 = vld [vmem:[%s1416_s1 + $0x110] sm:$0xff]  ;;  %v807_v21 = vpack.c.bf16 %v68_v19, %v67_v18  ;;  %v52_v22 = vld [vmem:[%s1416_s1 + $0x118] sm:$0xff]  ;;  %v38_v24 = vld [vmem:[%s1416_s1 + $0xa8] sm:$0xff]  ;;  %776 = vmatprep.subr.bf16.mxu0 %v775_v16 }
   0x7   :  { %806 = vmatpush3.bf16.msra.mxu1 %v805_v12  ;;  %v809_v25 = vpack.c.bf16 %v52_v22, %v51_v20  ;;  %v779_v26 = vpack.c.bf16 %v38_v24, %v37_v23  ;;  %v21_v27 = vld [vmem:[%s1416_s1 + $0x20] sm:$0xff]  ;;  %v22_v28 = vld [vmem:[%s1416_s1 + $0x28] sm:$0xff]  ;;  %v39_v35 = vld [vmem:[%s1416_s1 + $0xb0] sm:$0xff] }
   0x8   :  { %v69_v29 = vld [vmem:[%s1416_s1 + $0x1a0] sm:$0xff]  ;;  %808 = vmatprep.subr.bf16.mxu1 %v807_v21  ;;  %v70_v30 = vld [vmem:[%s1416_s1 + $0x1a8] sm:$0xff]  ;;  %v781_v33 = vpack.c.bf16 %v22_v28, %v21_v27  ;;  %v40_v36 = vld [vmem:[%s1416_s1 + $0xb8] sm:$0xff] }
   0x9   :  { %v53_v31 = vld [vmem:[%s1416_s1 + $0x120] sm:$0xff]  ;;  %v54_v32 = vld [vmem:[%s1416_s1 + $0x128] sm:$0xff]  ;;  %778 = vmatpush3.bf16.msra.mxu0 %v777_v17  ;;  %v811_v34 = vpack.c.bf16 %v70_v30, %v69_v29  ;;  %v23_v37 = vld [vmem:[%s1416_s1 + $0x30] sm:$0xff]  ;;  %v783_v39 = vpack.c.bf16 %v40_v36, %v39_v35 }
   0xa   :  { %780 = vmatprep.subr.bf16.mxu0 %v779_v26  ;;  %v813_v38 = vpack.c.bf16 %v54_v32, %v53_v31  ;;  %v24_v40 = vld [vmem:[%s1416_s1 + $0x38] sm:$0xff]  ;;  %v71_v41 = vld [vmem:[%s1416_s1 + $0x1b0] sm:$0xff]  ;;  %v41_v49 = vld [vmem:[%s1416_s1 + $0xc0] sm:$0xff] }
   0xb   :  { %810 = vmatpush3.bf16.msra.mxu1 %v809_v25  ;;  %v72_v42 = vld [vmem:[%s1416_s1 + $0x1b8] sm:$0xff]  ;;  %v55_v47 = vld [vmem:[%s1416_s1 + $0x130] sm:$0xff]  ;;  %v42_v50 = vld [vmem:[%s1416_s1 + $0xc8] sm:$0xff]  ;;  %v785_v51 = vpack.c.bf16 %v24_v40, %v23_v37 }
   0xc   :  { %812 = vmatprep.subr.bf16.mxu1 %v811_v34  ;;  %v815_v46 = vpack.c.bf16 %v72_v42, %v71_v41  ;;  %v56_v48 = vld [vmem:[%s1416_s1 + $0x138] sm:$0xff]  ;;  %v73_v52 = vld [vmem:[%s1416_s1 + $0x1c0] sm:$0xff]  ;;  %v74_v53 = vld [vmem:[%s1416_s1 + $0x1c8] sm:$0xff]  ;;  %v787_v55 = vpack.c.bf16 %v42_v50, %v41_v49 }
   0xd   :  { %782 = vmatpush3.bf16.msra.mxu0 %v781_v33  ;;  %v817_v54 = vpack.c.bf16 %v56_v48, %v55_v47  ;;  %v25_v56 = vld [vmem:[%s1416_s1 + $0x40] sm:$0xff]  ;;  %v26_v57 = vld [vmem:[%s1416_s1 + $0x48] sm:$0xff]  ;;  %v819_v61 = vpack.c.bf16 %v74_v53, %v73_v52  ;;  %v43_v63 = vld [vmem:[%s1416_s1 + $0xd0] sm:$0xff] }
   0xe   :  { %784 = vmatprep.subr.bf16.mxu0 %v783_v39  ;;  %v57_v58 = vld [vmem:[%s1416_s1 + $0x140] sm:$0xff]  ;;  %v58_v62 = vld [vmem:[%s1416_s1 + $0x148] sm:$0xff]  ;;  %v44_v0 = vld [vmem:[%s1416_s1 + $0xd8] sm:$0xff]  ;;  %v789_v3 = vpack.c.bf16 %v26_v57, %v25_v56 }
   0xf   :  { %814 = vmatpush3.bf16.msra.mxu1 %v813_v38  ;;  %v75_v1 = vld [vmem:[%s1416_s1 + $0x1d0] sm:$0xff]  ;;  %v76_v2 = vld [vmem:[%s1416_s1 + $0x1d8] sm:$0xff]  ;;  %v821_v5 = vpack.c.bf16 %v58_v62, %v57_v58  ;;  %v791_v6 = vpack.c.bf16 %v44_v0, %v43_v63  ;;  %v45_v12 = vld [vmem:[%s1416_s1 + $0xe0] sm:$0xff] }
  0x10   :  { %816 = vmatprep.subr.bf16.mxu1 %v815_v46  ;;  %v27_v4 = vld [vmem:[%s1416_s1 + $0x50] sm:$0xff]  ;;  %v28_v7 = vld [vmem:[%s1416_s1 + $0x58] sm:$0xff]  ;;  %v823_v11 = vpack.c.bf16 %v76_v2, %v75_v1  ;;  %v46_v13 = vld [vmem:[%s1416_s1 + $0xe8] sm:$0xff] }
  0x11   :  { %786 = vmatpush3.bf16.msra.mxu0 %v785_v51  ;;  %v59_v8 = vld [vmem:[%s1416_s1 + $0x150] sm:$0xff]  ;;  %v60_v9 = vld [vmem:[%s1416_s1 + $0x158] sm:$0xff]  ;;  %v77_v14 = vld [vmem:[%s1416_s1 + $0x1e0] sm:$0xff]  ;;  %v793_v16 = vpack.c.bf16 %v28_v7, %v27_v4  ;;  %v795_v19 = vpack.c.bf16 %v46_v13, %v45_v12 }
  0x12   :  { %788 = vmatprep.subr.bf16.mxu0 %v787_v55  ;;  %v78_v15 = vld [vmem:[%s1416_s1 + $0x1e8] sm:$0xff]  ;;  %v825_v17 = vpack.c.bf16 %v60_v9, %v59_v8  ;;  %v14_v18 = vld [vmem:[%s1417_s0] sm:$0xff]  ;;  %v47_v27 = vld [vmem:[%s1416_s1 + $0xf0] sm:$0xff] }
  0x13   :  { %818 = vmatpush3.bf16.msra.mxu1 %v817_v54  ;;  %v29_v20 = vld [vmem:[%s1416_s1 + $0x60] sm:$0xff]  ;;  %v30_v21 = vld [vmem:[%s1416_s1 + $0x68] sm:$0xff]  ;;  %v178_v23 = vrot.slane %v14_v18, %v1097_v10  ;;  %v171_v24 = vcombine.high %v14_v18, %v14_v18  ;;  %v827_v25 = vpack.c.bf16 %v78_v15, %v77_v14  ;;  %v48_v28 = vld [vmem:[%s1416_s1 + $0xf8] sm:$0xff] }
  0x14   :  { %820 = vmatprep.subr.bf16.mxu1 %v819_v61  ;;  %v61_v22 = vld [vmem:[%s1416_s1 + $0x160] sm:$0xff]  ;;  %v62_v26 = vld [vmem:[%s1416_s1 + $0x168] sm:$0xff]  ;;  %v79_v29 = vld [vmem:[%s1416_s1 + $0x1f0] sm:$0xff]  ;;  %v797_v33 = vpack.c.bf16 %v30_v21, %v29_v20  ;;  %v799_v35 = vpack.c.bf16 %v48_v28, %v47_v27 }
  0x15   :  { %790 = vmatpush3.bf16.msra.mxu0 %v789_v3  ;;  %v80_v30 = vld [vmem:[%s1416_s1 + $0x1f8] sm:$0xff]  ;;  %v186_v31 = vcombine.high %v178_v23, %v178_v23  ;;  %v185_v32 = vrot.slane %v171_v24, %v1097_v10  ;;  %v829_v34 = vpack.c.bf16 %v62_v26, %v61_v22  ;;  %v31_v36 = vld [vmem:[%s1416_s1 + $0x70] sm:$0xff]  ;;  %v97_v42 = vld [vmem:[%s1416_s1 + $0x280] sm:$0xff] }
  0x16   :  { %792 = vmatprep.subr.bf16.mxu0 %v791_v6  ;;  %v32_v37 = vld [vmem:[%s1416_s1 + $0x78] sm:$0xff]  ;;  %v63_v38 = vld [vmem:[%s1416_s1 + $0x170] sm:$0xff]  ;;  %v831_v40 = vpack.c.bf16 %v80_v30, %v79_v29  ;;  %v98_v43 = vld [vmem:[%s1416_s1 + $0x288] sm:$0xff] }
  0x17   :  { %822 = vmatpush3.bf16.msra.mxu1 %v821_v5  ;;  %v187_v39 = vcombine.high %v185_v32, %v185_v32  ;;  %285 = vmatprep.mubr.f32.mxu0 %v186_v31  ;;  %v64_v41 = vld [vmem:[%s1416_s1 + $0x178] sm:$0xff]  ;;  %v129_v44 = vld [vmem:[%s1416_s1 + $0x380] sm:$0xff]  ;;  %v130_v45 = vld [vmem:[%s1416_s1 + $0x388] sm:$0xff]  ;;  %v801_v46 = vpack.c.bf16 %v32_v37, %v31_v36  ;;  %v835_v48 = vpack.c.bf16 %v98_v43, %v97_v42 }
  0x18   :  { %824 = vmatprep.subr.bf16.mxu1 %v823_v11  ;;  %v833_v47 = vpack.c.bf16 %v64_v41, %v63_v38  ;;  %v81_v49 = vld [vmem:[%s1416_s1 + $0x200] sm:$0xff]  ;;  %v82_v50 = vld [vmem:[%s1416_s1 + $0x208] sm:$0xff]  ;;  %v867_v52 = vpack.c.bf16 %v130_v45, %v129_v44  ;;  %v99_v54 = vld [vmem:[%s1416_s1 + $0x290] sm:$0xff] }
  0x19   :  { %794 = vmatpush3.bf16.msra.mxu0 %v793_v16  ;;  %355 = vmatprep.mubr.f32.mxu1 %v187_v39  ;;  %v113_v51 = vld [vmem:[%s1416_s1 + $0x300] sm:$0xff]  ;;  %v114_v53 = vld [vmem:[%s1416_s1 + $0x308] sm:$0xff]  ;;  %v100_v55 = vld [vmem:[%s1416_s1 + $0x298] sm:$0xff]  ;;  %v837_v58 = vpack.c.bf16 %v82_v50, %v81_v49 }
  0x1a   :  { %796 = vmatprep.subr.bf16.mxu0 %v795_v19  ;;  %v131_v56 = vld [vmem:[%s1416_s1 + $0x390] sm:$0xff]  ;;  %v132_v57 = vld [vmem:[%s1416_s1 + $0x398] sm:$0xff]  ;;  %v869_v59 = vpack.c.bf16 %v114_v53, %v113_v51  ;;  %v839_v60 = vpack.c.bf16 %v100_v55, %v99_v54  ;;  %v101_v2 = vld [vmem:[%s1416_s1 + $0x2a0] sm:$0xff] }
  0x1b   :  { %826 = vmatpush3.bf16.msra.mxu1 %v825_v17  ;;  %v83_v61 = vld [vmem:[%s1416_s1 + $0x210] sm:$0xff]  ;;  %v84_v62 = vld [vmem:[%s1416_s1 + $0x218] sm:$0xff]  ;;  %v871_v0 = vpack.c.bf16 %v132_v57, %v131_v56  ;;  %v102_v3 = vld [vmem:[%s1416_s1 + $0x2a8] sm:$0xff] }
  0x1c   :  { %828 = vmatprep.subr.bf16.mxu1 %v827_v25  ;;  %v115_v63 = vld [vmem:[%s1416_s1 + $0x310] sm:$0xff]  ;;  %v116_v1 = vld [vmem:[%s1416_s1 + $0x318] sm:$0xff]  ;;  %v133_v4 = vld [vmem:[%s1416_s1 + $0x3a0] sm:$0xff]  ;;  %v841_v6 = vpack.c.bf16 %v84_v62, %v83_v61  ;;  %v843_v8 = vpack.c.bf16 %v102_v3, %v101_v2 }
  0x1d   :  { %798 = vmatpush3.bf16.msra.mxu0 %v797_v33  ;;  %v134_v5 = vld [vmem:[%s1416_s1 + $0x3a8] sm:$0xff]  ;;  %v873_v7 = vpack.c.bf16 %v116_v1, %v115_v63  ;;  %v85_v9 = vld [vmem:[%s1416_s1 + $0x220] sm:$0xff]  ;;  %v103_v15 = vld [vmem:[%s1416_s1 + $0x2b0] sm:$0xff] }
  0x1e   :  { %800 = vmatprep.subr.bf16.mxu0 %v799_v35  ;;  %v86_v11 = vld [vmem:[%s1416_s1 + $0x228] sm:$0xff]  ;;  %v117_v12 = vld [vmem:[%s1416_s1 + $0x320] sm:$0xff]  ;;  %v875_v13 = vpack.c.bf16 %v134_v5, %v133_v4  ;;  %v104_v16 = vld [vmem:[%s1416_s1 + $0x2b8] sm:$0xff] }
  0x1f   :  { %830 = vmatpush3.bf16.msra.mxu1 %v829_v34  ;;  %v118_v14 = vld [vmem:[%s1416_s1 + $0x328] sm:$0xff]  ;;  %v135_v17 = vld [vmem:[%s1416_s1 + $0x3b0] sm:$0xff]  ;;  %v136_v18 = vld [vmem:[%s1416_s1 + $0x3b8] sm:$0xff]  ;;  %v845_v19 = vpack.c.bf16 %v86_v11, %v85_v9  ;;  %v847_v22 = vpack.c.bf16 %v104_v16, %v103_v15 }
  0x20   :  { %832 = vmatprep.subr.bf16.mxu1 %v831_v40  ;;  %v87_v20 = vld [vmem:[%s1416_s1 + $0x230] sm:$0xff]  ;;  %v877_v21 = vpack.c.bf16 %v118_v14, %v117_v12  ;;  %v120_v25 = vld [vmem:[%s1416_s1 + $0x338] sm:$0xff]  ;;  %v879_v26 = vpack.c.bf16 %v136_v18, %v135_v17  ;;  %v105_v27 = vld [vmem:[%s1416_s1 + $0x2c0] sm:$0xff] }
  0x21   :  { %802 = vmatpush3.bf16.msra.mxu0 %v801_v46  ;;  %v119_v24 = vld [vmem:[%s1416_s1 + $0x330] sm:$0xff]  ;;  %v106_v28 = vld [vmem:[%s1416_s1 + $0x2c8] sm:$0xff]  ;;  %v137_v30 = vld [vmem:[%s1416_s1 + $0x3c0] sm:$0xff] }
  0x22   :  { %836 = vmatprep.subr.bf16.mxu0 %v835_v48  ;;  %v15_v29 = vld [vmem:[%s1417_s0 + $0x8] sm:$0xff]  ;;  %v881_v35 = vpack.c.bf16 %v120_v25, %v119_v24  ;;  %v851_v36 = vpack.c.bf16 %v106_v28, %v105_v27  ;;  %v89_v37 = vld [vmem:[%s1416_s1 + $0x240] sm:$0xff]  ;;  %v107_v44 = vld [vmem:[%s1416_s1 + $0x2d0] sm:$0xff]  ;;  %v932_v28 = vmov 0.0  }
  0x23   :  { %834 = vmatpush3.bf16.msra.mxu1 %v833_v47  ;;  %v138_v31 = vld [vmem:[%s1416_s1 + $0x3c8] sm:$0xff]  ;;  %v188_v33 = vcombine.high %v15_v29, %v15_v29  ;;  %v121_v39 = vld [vmem:[%s1416_s1 + $0x340] sm:$0xff]  ;;  %v108_v45 = vld [vmem:[%s1416_s1 + $0x2d8] sm:$0xff] }
  0x24   :  { %868 = vmatprep.subr.bf16.mxu1 %v867_v52  ;;  %286 = vmatmul.mubr.f32.vlgmr.msra.gmra.mrb[0].mxu0 %v178_v23  ;;  %v88_v23 = vld [vmem:[%s1416_s1 + $0x238] sm:$0xff]  ;;  %v90_v38 = vld [vmem:[%s1416_s1 + $0x248] sm:$0xff]  ;;  %v883_v42 = vpack.c.bf16 %v138_v31, %v137_v30  ;;  %v139_v46 = vld [vmem:[%s1416_s1 + $0x3d0] sm:$0xff]  ;;  %v855_v50 = vpack.c.bf16 %v108_v45, %v107_v44 }
  0x25   :  { %838 = vmatpush3.bf16.msra.mxu0 %v837_v58  ;;  %v849_v34 = vpack.c.bf16 %v88_v23, %v87_v20  ;;  %v1278_v41 = vrot.slane %v188_v33, %v1097_v10  ;;  %v122_v43 = vld [vmem:[%s1416_s1 + $0x348] sm:$0xff]  ;;  %v853_v48 = vpack.c.bf16 %v90_v38, %v89_v37  ;;  %v91_v51 = vld [vmem:[%s1416_s1 + $0x250] sm:$0xff]  ;;  %v92_v52 = vld [vmem:[%s1416_s1 + $0x258] sm:$0xff] }
  0x26   :  { %356 = vmatmul.mubr.f32.vlgmr.msra.gmra.mrb[0].mxu1 %v185_v32  ;;  %840 = vmatprep.subr.bf16.mxu0 %v839_v60  ;;  %v1264_v32 = vrot.slane %v15_v29, %v1097_v10  ;;  %v140_v10 = vld [vmem:[%s1416_s1 + $0x3d8] sm:$0xff]  ;;  %v885_v49 = vpack.c.bf16 %v122_v43, %v121_v39  ;;  %v123_v53 = vld [vmem:[%s1416_s1 + $0x350] sm:$0xff]  ;;  %v109_v56 = vld [vmem:[%s1416_s1 + $0x2e0] sm:$0xff]  ;;  %v857_v60 = vpack.c.bf16 %v92_v52, %v91_v51 }
  0x27   :  { %870 = vmatpush3.bf16.msra.mxu1 %v869_v59  ;;  %v204_v47 = vcombine.high %v1278_v41, %v1278_v41  ;;  %v887_v54 = vpack.c.bf16 %v140_v10, %v139_v46  ;;  %v124_v55 = vld [vmem:[%s1416_s1 + $0x358] sm:$0xff]  ;;  %v110_v57 = vld [vmem:[%s1416_s1 + $0x2e8] sm:$0xff]  ;;  %v141_v58 = vld [vmem:[%s1416_s1 + $0x3e0] sm:$0xff] }
  0x28   :  { %872 = vmatprep.subr.bf16.mxu1 %v871_v0  ;;  %v203_v40 = vcombine.high %v1264_v32, %v1264_v32  ;;  %v142_v59 = vld [vmem:[%s1416_s1 + $0x3e8] sm:$0xff]  ;;  %v889_v61 = vpack.c.bf16 %v124_v55, %v123_v53  ;;  %v859_v62 = vpack.c.bf16 %v110_v57, %v109_v56  ;;  %v93_v63 = vld [vmem:[%s1416_s1 + $0x260] sm:$0xff]  ;;  %v111_v4 = vld [vmem:[%s1416_s1 + $0x2f0] sm:$0xff] }
  0x29   :  { %842 = vmatpush3.bf16.msra.mxu0 %v841_v6  ;;  %495 = vmatprep.mubr.f32.mxu1 %v204_v47  ;;  %v94_v0 = vld [vmem:[%s1416_s1 + $0x268] sm:$0xff]  ;;  %v125_v1 = vld [vmem:[%s1416_s1 + $0x360] sm:$0xff]  ;;  %v891_v2 = vpack.c.bf16 %v142_v59, %v141_v58  ;;  %v112_v5 = vld [vmem:[%s1416_s1 + $0x2f8] sm:$0xff] }
  0x2a   :  { %844 = vmatprep.subr.bf16.mxu0 %v843_v8  ;;  %425 = vmatprep.mubr.f32.mxu0 %v203_v40  ;;  %v126_v3 = vld [vmem:[%s1416_s1 + $0x368] sm:$0xff]  ;;  %v143_v6 = vld [vmem:[%s1416_s1 + $0x3f0] sm:$0xff]  ;;  %v861_v8 = vpack.c.bf16 %v94_v0, %v93_v63  ;;  %v863_v11 = vpack.c.bf16 %v112_v5, %v111_v4  ;;  %v128_v16 = vld [vmem:[%s1416_s1 + $0x378] sm:$0xff] }
  0x2b   :  { %874 = vmatpush3.bf16.msra.mxu1 %v873_v7  ;;  %v144_v7 = vld [vmem:[%s1416_s1 + $0x3f8] sm:$0xff]  ;;  %v893_v9 = vpack.c.bf16 %v126_v3, %v125_v1  ;;  %v95_v12 = vld [vmem:[%s1416_s1 + $0x270] sm:$0xff]  ;;  %v146_v20 = vld [vmem:[%s1416_s1 + $0x408] sm:$0xff] }
  0x2c   :  { %876 = vmatprep.subr.bf16.mxu1 %v875_v13  ;;  %v96_v13 = vld [vmem:[%s1416_s1 + $0x278] sm:$0xff]  ;;  %v895_v14 = vpack.c.bf16 %v144_v7, %v143_v6  ;;  %v127_v15 = vld [vmem:[%s1416_s1 + $0x370] sm:$0xff]  ;;  %v150_v27 = vld [vmem:[%s1416_s1 + $0x428] sm:$0xff] }
  0x2d   :  { %846 = vmatpush3.bf16.msra.mxu0 %v845_v19  ;;  %v865_v17 = vpack.c.bf16 %v96_v13, %v95_v12  ;;  %v897_v18 = vpack.c.bf16 %v128_v16, %v127_v15  ;;  %v145_v19 = vld [vmem:[%s1416_s1 + $0x400] sm:$0xff]  ;;  %v147_v23 = vld [vmem:[%s1416_s1 + $0x410] sm:$0xff]  ;;  %v148_v24 = vld [vmem:[%s1416_s1 + $0x418] sm:$0xff] }
  0x2e   :  { %848 = vmatprep.subr.bf16.mxu0 %v847_v22  ;;  %v930_v22 = vmov 0.0|0.0   ;;  %v903_v25 = vpack.c.bf16 %v148_v24, %v147_v23  ;;  %v151_v30 = vld [vmem:[%s1416_s1 + $0x430] sm:$0xff]  ;;  %v152_v31 = vld [vmem:[%s1416_s1 + $0x438] sm:$0xff]  ;;  %v153_v33 = vld [vmem:[%s1416_s1 + $0x440] sm:$0xff] }
  0x2f   :  { %878 = vmatpush3.bf16.msra.mxu1 %v877_v21  ;;  %v900_v21 = vpack.c.bf16 %v146_v20, %v145_v19  ;;  %v156_v37 = vld [vmem:[%s1416_s1 + $0x458] sm:$0xff]  ;;  %v157_v39 = vld [vmem:[%s1416_s1 + $0x460] sm:$0xff]  ;;  %v158_v40 = vld [vmem:[%s1416_s1 + $0x468] sm:$0xff] }
  0x30   :  { %880 = vmatprep.subr.bf16.mxu1 %v879_v26  ;;  %v149_v26 = vld [vmem:[%s1416_s1 + $0x420] sm:$0xff]  ;;  %v160_v43 = vld [vmem:[%s1416_s1 + $0x478] sm:$0xff]  ;;  %v578_v45 = vld.sshfl [vmem:[%s1417_s0 + $0x10] sm:$0x3 pattern:$0x76325410] }
  0x31   :  { %850 = vmatpush3.bf16.msra.mxu0 %v849_v34  ;;  %v906_v29 = vpack.c.bf16 %v150_v27, %v149_v26  ;;  %v154_v34 = vld [vmem:[%s1416_s1 + $0x448] sm:$0xff]  ;;  %v577_v10 = vld [vmem:[%s1418_s2] ss:$0 sm:$0xff] }
  0x32   :  { %852 = vmatprep.subr.bf16.mxu0 %v851_v36  ;;  %v155_v36 = vld [vmem:[%s1416_s1 + $0x450] sm:$0xff] }
  0x33   :  { %882 = vmatpush3.bf16.msra.mxu1 %v881_v35  ;;  %v912_v35 = vpack.c.bf16 %v154_v34, %v153_v33  ;;  %v915_v38 = vpack.c.bf16 %v156_v37, %v155_v36 }
  0x34   :  { %884 = vmatprep.subr.bf16.mxu1 %v883_v42  ;;  %v159_v42 = vld [vmem:[%s1416_s1 + $0x470] sm:$0xff] }
  0x35   :  { %854 = vmatpush3.bf16.msra.mxu0 %v853_v48  ;;  %v921_v44 = vpack.c.bf16 %v160_v43, %v159_v42 }
  0x36   :  { %856 = vmatprep.subr.bf16.mxu0 %v855_v50 }
  0x37   :  { %886 = vmatpush3.bf16.msra.mxu1 %v885_v49 }
  0x38   :  { %888 = vmatprep.subr.bf16.mxu1 %v887_v54 }
  0x39   :  { %858 = vmatpush3.bf16.msra.mxu0 %v857_v60 }
  0x3a   :  { %860 = vmatprep.subr.bf16.mxu0 %v859_v62 }
  0x3b   :  { %890 = vmatpush3.bf16.msra.mxu1 %v889_v61 }
  0x3c   :  { %892 = vmatprep.subr.bf16.mxu1 %v891_v2 }
  0x3d   :  { %862 = vmatpush3.bf16.msra.mxu0 %v861_v8 }
  0x3e   :  { %864 = vmatprep.subr.bf16.mxu0 %v863_v11 }
  0x3f   :  { %894 = vmatpush3.bf16.msra.mxu1 %v893_v9 }
  0x40   :  { %896 = vmatprep.subr.bf16.mxu1 %v895_v14 }
  0x41   :  { %866 = vmatpush3.bf16.msra.mxu0 %v865_v17 }
  0x42   :  { %899 = vmatprep.subr.bf16.mxu0 %v930_v22 }
  0x43   :  { %898 = vmatpush3.bf16.msra.mxu1 %v897_v18 }
  0x44   :  { %426 = vmatmul.mubr.f32.vlgmr.msra.gmra.mrb[2].mxu0 %v1264_v32  ;;  %v909_v32 = vpack.c.bf16 %v152_v31, %v151_v30 }
  0x45   :  { %901 = vmatpush3.bf16.msra.mxu0 %v900_v21  ;;  %768 = vmatprep.mubr.msk.f32.mxu0 %vm931_vm0, %v932_v28 }
  0x46   :  { %496 = vmatmul.mubr.f32.vlgmr.msra.gmra.mrb[2].mxu1 %v1278_v41  ;;  %902 = vmatprep.subr.bf16.mxu0 %v930_v22  ;;  %v918_v41 = vpack.c.bf16 %v158_v40, %v157_v39 }
  0x49   :  { %904 = vmatpush3.bf16.msra.mxu0 %v903_v25 }
  0x4a   :  { %905 = vmatprep.subr.bf16.mxu0 %v930_v22 }
  0x4d   :  { %907 = vmatpush3.bf16.msra.mxu0 %v906_v29 }
  0x4e   :  { %908 = vmatprep.subr.bf16.mxu0 %v930_v22 }
  0x51   :  { %910 = vmatpush3.bf16.msra.mxu0 %v909_v32 }
  0x52   :  { %911 = vmatprep.subr.bf16.mxu0 %v930_v22 }
  0x55   :  { %913 = vmatpush3.bf16.msra.mxu0 %v912_v35 }
  0x56   :  { %914 = vmatprep.subr.bf16.mxu0 %v930_v22 }
  0x59   :  { %916 = vmatpush3.bf16.msra.mxu0 %v915_v38 }
  0x5a   :  { %917 = vmatprep.subr.bf16.mxu0 %v930_v22 }
  0x5d   :  { %919 = vmatpush3.bf16.msra.mxu0 %v918_v41 }
  0x5e   :  { %920 = vmatprep.subr.bf16.mxu0 %v930_v22 }
  0x61   :  { %922 = vmatpush3.bf16.msra.mxu0 %v921_v44 }
  0x64   :  { %769 = vmatmul.mubr.f32.vlgmr.msra.gmra.mrb[4].mxu0 %v578_v45 }
  0xf7   :  { %v611_v46 = vpop.f32.mrb[0].mxu0 }
  0xf8   :  { %v612_v47 = vpop.f32.mrb[1].mxu0 }
  0xf9   :  { %v646_v48 = vpop.f32.mrb[0].mxu1  ;;  %v613_v49 = vadd.f32 %v612_v47, %v611_v46 }
  0xfa   :  { %v647_v50 = vpop.f32.mrb[1].mxu1 }
  0xfb   :  { %v648_v51 = vadd.f32 %v647_v50, %v646_v48  ;;  %v288_v52 = vadd.f32 %v613_v49, %v577_v10 }
  0xfd   :  { %v358_v53 = vadd.f32 %v648_v51, %v288_v52 }
 0x117   :  { %v681_v54 = vpop.f32.mrb[2].mxu0 }
 0x118   :  { %v682_v55 = vpop.f32.mrb[3].mxu0 }
 0x119   :  { %v716_v56 = vpop.f32.mrb[2].mxu1  ;;  %v683_v57 = vadd.f32 %v682_v55, %v681_v54 }
 0x11a   :  { %v717_v58 = vpop.f32.mrb[3].mxu1 }
 0x11b   :  { %v718_v59 = vadd.f32 %v717_v58, %v716_v56  ;;  %v428_v60 = vadd.f32 %v683_v57, %v358_v53 }
 0x11d   :  { %v498_v61 = vadd.f32 %v718_v59, %v428_v60 }
 0x137   :  { %v567_v62 = vpop.f32.mrb[4].mxu0 }
 0x138   :  { %v568_v63 = vadd.f32 %v567_v62, %v498_v61  ;;  %v770_v0 = vpop.f32.mrb[5].mxu0 }
 0x13a   :  { %v571_v1 = vmax.f32 %v568_v63, 0.0 }
 0x13c   :  { %572 = vst [vmem:[%s1419_s3] sm:$0x3] %v571_v1 }

// kernel: model_forward.7
= control target key start
LH: loop header
LB: loop body
LE: loop exit
PB: predicated region body
PF: predicated region fallthrough
CT: control target
= control target key end

     0   :  { %v1301_v3 = vmov 0.0   ;;  %s2142_s1 = inlined_call_operand.vmem [shape: f32[128,1024], index: 1, kind: input, shape index: {}]   ;;  %s2143_s0 = inlined_call_operand.vmem [shape: f32[2,128], index: 0, kind: input, shape index: {}]   ;;  %s2144_s3 = inlined_call_operand.vmem [shape: f32[1024,128], index: 3, kind: input, shape index: {}]   ;;  %s2145_s2 = inlined_call_operand.vmem [shape: f32[1,1024], index: 2, kind: input, shape index: {}]   ;;  %s2146_s4 = inlined_call_operand.vmem [shape: f32[1,128], index: 4, kind: input, shape index: {}]   ;;  %s2147_s5 = inlined_call_operand.vmem [shape: f32[2,128], index: 5, kind: output, shape index: {}]  }
   0x1   :  { %v22_v0 = vld [vmem:[%s2142_s1 + $0x8] sm:$0xff]  ;;  %v24_v2 = vld [vmem:[%s2142_s1 + $0x18] sm:$0xff]  ;;  %255 = vmatprep.mubr.f32.mxu0 %v1301_v3  ;;  %326 = vmatprep.mubr.f32.mxu1 %v1301_v3  ;;  %v21_v6 = vld [vmem:[%s2142_s1] sm:$0xff] }
   0x2   :  { %v30_v1 = vld [vmem:[%s2142_s1 + $0x48] sm:$0xff]  ;;  %v32_v5 = vld [vmem:[%s2142_s1 + $0x58] sm:$0xff]  ;;  %v29_v7 = vld [vmem:[%s2142_s1 + $0x40] sm:$0xff] }
   0x3   :  { %v1044_v4 = vpack.c.bf16 %v30_v1, %v22_v0  ;;  %v1076_v8 = vpack.c.bf16 %v32_v5, %v24_v2  ;;  %v1046_v9 = vpack.c.bf16 %v29_v7, %v21_v6  ;;  %v23_v10 = vld [vmem:[%s2142_s1 + $0x10] sm:$0xff]  ;;  %v38_v12 = vld [vmem:[%s2142_s1 + $0x88] sm:$0xff]  ;;  %v40_v15 = vld [vmem:[%s2142_s1 + $0x98] sm:$0xff] }
   0x4   :  { %v31_v11 = vld [vmem:[%s2142_s1 + $0x50] sm:$0xff]  ;;  %v46_v14 = vld [vmem:[%s2142_s1 + $0xc8] sm:$0xff]  ;;  %v48_v16 = vld [vmem:[%s2142_s1 + $0xd8] sm:$0xff] }
   0x5   :  { %1045 = vmatprep.subr.bf16.mxu0 %v1044_v4  ;;  %v1078_v13 = vpack.c.bf16 %v31_v11, %v23_v10  ;;  %1077 = vmatprep.subr.bf16.mxu1 %v1076_v8  ;;  %v1048_v17 = vpack.c.bf16 %v46_v14, %v38_v12  ;;  %v1080_v18 = vpack.c.bf16 %v48_v16, %v40_v15  ;;  %v37_v19 = vld [vmem:[%s2142_s1 + $0x80] sm:$0xff]  ;;  %v39_v21 = vld [vmem:[%s2142_s1 + $0x90] sm:$0xff]  ;;  %v54_v24 = vld [vmem:[%s2142_s1 + $0x108] sm:$0xff] }
   0x6   :  { %1047 = vmatpush1.bf16.msra.mxu0 %v1046_v9  ;;  %v45_v20 = vld [vmem:[%s2142_s1 + $0xc0] sm:$0xff]  ;;  %v47_v23 = vld [vmem:[%s2142_s1 + $0xd0] sm:$0xff]  ;;  %v62_v25 = vld [vmem:[%s2142_s1 + $0x148] sm:$0xff] }
   0x7   :  { %1079 = vmatpush1.bf16.msra.mxu1 %v1078_v13  ;;  %v1050_v22 = vpack.c.bf16 %v45_v20, %v37_v19  ;;  %1049 = vmatprep.subr.bf16.mxu0 %v1048_v17  ;;  %v1082_v26 = vpack.c.bf16 %v47_v23, %v39_v21  ;;  %v1052_v27 = vpack.c.bf16 %v62_v25, %v54_v24  ;;  %v56_v28 = vld [vmem:[%s2142_s1 + $0x118] sm:$0xff]  ;;  %v53_v30 = vld [vmem:[%s2142_s1 + $0x100] sm:$0xff]  ;;  %v55_v33 = vld [vmem:[%s2142_s1 + $0x110] sm:$0xff] }
   0x8   :  { %1081 = vmatprep.subr.bf16.mxu1 %v1080_v18  ;;  %v64_v29 = vld [vmem:[%s2142_s1 + $0x158] sm:$0xff]  ;;  %v61_v32 = vld [vmem:[%s2142_s1 + $0x140] sm:$0xff]  ;;  %v63_v34 = vld [vmem:[%s2142_s1 + $0x150] sm:$0xff] }
   0x9   :  { %v1084_v31 = vpack.c.bf16 %v64_v29, %v56_v28  ;;  %v1054_v35 = vpack.c.bf16 %v61_v32, %v53_v30  ;;  %v70_v36 = vld [vmem:[%s2142_s1 + $0x188] sm:$0xff]  ;;  %v72_v38 = vld [vmem:[%s2142_s1 + $0x198] sm:$0xff]  ;;  %v1086_v39 = vpack.c.bf16 %v63_v34, %v55_v33  ;;  %v69_v42 = vld [vmem:[%s2142_s1 + $0x180] sm:$0xff] }
   0xa   :  { %1051 = vmatpush1.bf16.msra.mxu0 %v1050_v22  ;;  %v78_v37 = vld [vmem:[%s2142_s1 + $0x1c8] sm:$0xff]  ;;  %v80_v41 = vld [vmem:[%s2142_s1 + $0x1d8] sm:$0xff]  ;;  %v77_v43 = vld [vmem:[%s2142_s1 + $0x1c0] sm:$0xff] }
   0xb   :  { %1083 = vmatpush1.bf16.msra.mxu1 %v1082_v26  ;;  %1053 = vmatprep.subr.bf16.mxu0 %v1052_v27  ;;  %v1056_v40 = vpack.c.bf16 %v78_v37, %v70_v36  ;;  %v1088_v44 = vpack.c.bf16 %v80_v41, %v72_v38  ;;  %v71_v45 = vld [vmem:[%s2142_s1 + $0x190] sm:$0xff]  ;;  %v86_v47 = vld [vmem:[%s2142_s1 + $0x208] sm:$0xff]  ;;  %v88_v49 = vld [vmem:[%s2142_s1 + $0x218] sm:$0xff]  ;;  %v1058_v51 = vpack.c.bf16 %v77_v43, %v69_v42 }
   0xc   :  { %1085 = vmatprep.subr.bf16.mxu1 %v1084_v31  ;;  %v79_v46 = vld [vmem:[%s2142_s1 + $0x1d0] sm:$0xff]  ;;  %v94_v48 = vld [vmem:[%s2142_s1 + $0x248] sm:$0xff]  ;;  %v96_v50 = vld [vmem:[%s2142_s1 + $0x258] sm:$0xff] }
   0xd   :  { %v1090_v52 = vpack.c.bf16 %v79_v46, %v71_v45  ;;  %v1060_v53 = vpack.c.bf16 %v94_v48, %v86_v47  ;;  %v85_v54 = vld [vmem:[%s2142_s1 + $0x200] sm:$0xff]  ;;  %v87_v56 = vld [vmem:[%s2142_s1 + $0x210] sm:$0xff]  ;;  %v1092_v57 = vpack.c.bf16 %v96_v50, %v88_v49  ;;  %v102_v59 = vld [vmem:[%s2142_s1 + $0x288] sm:$0xff] }
   0xe   :  { %1055 = vmatpush1.bf16.msra.mxu0 %v1054_v35  ;;  %v93_v55 = vld [vmem:[%s2142_s1 + $0x240] sm:$0xff]  ;;  %v95_v58 = vld [vmem:[%s2142_s1 + $0x250] sm:$0xff]  ;;  %v110_v60 = vld [vmem:[%s2142_s1 + $0x2c8] sm:$0xff] }
   0xf   :  { %1087 = vmatpush1.bf16.msra.mxu1 %v1086_v39  ;;  %1057 = vmatprep.subr.bf16.mxu0 %v1056_v40  ;;  %v104_v61 = vld [vmem:[%s2142_s1 + $0x298] sm:$0xff]  ;;  %v1062_v63 = vpack.c.bf16 %v93_v55, %v85_v54  ;;  %v1094_v0 = vpack.c.bf16 %v95_v58, %v87_v56  ;;  %v1064_v1 = vpack.c.bf16 %v110_v60, %v102_v59  ;;  %v101_v2 = vld [vmem:[%s2142_s1 + $0x280] sm:$0xff]  ;;  %v103_v5 = vld [vmem:[%s2142_s1 + $0x290] sm:$0xff] }
  0x10   :  { %1089 = vmatprep.subr.bf16.mxu1 %v1088_v44  ;;  %v112_v62 = vld [vmem:[%s2142_s1 + $0x2d8] sm:$0xff]  ;;  %v109_v4 = vld [vmem:[%s2142_s1 + $0x2c0] sm:$0xff]  ;;  %v111_v7 = vld [vmem:[%s2142_s1 + $0x2d0] sm:$0xff] }
  0x11   :  { %v1096_v6 = vpack.c.bf16 %v112_v62, %v104_v61  ;;  %v118_v8 = vld [vmem:[%s2142_s1 + $0x308] sm:$0xff]  ;;  %v120_v10 = vld [vmem:[%s2142_s1 + $0x318] sm:$0xff]  ;;  %v1066_v12 = vpack.c.bf16 %v109_v4, %v101_v2  ;;  %v1098_v13 = vpack.c.bf16 %v111_v7, %v103_v5  ;;  %v117_v15 = vld [vmem:[%s2142_s1 + $0x300] sm:$0xff] }
  0x12   :  { %1059 = vmatpush1.bf16.msra.mxu0 %v1058_v51  ;;  %v126_v9 = vld [vmem:[%s2142_s1 + $0x348] sm:$0xff]  ;;  %v128_v11 = vld [vmem:[%s2142_s1 + $0x358] sm:$0xff]  ;;  %v125_v16 = vld [vmem:[%s2142_s1 + $0x340] sm:$0xff] }
  0x13   :  { %1091 = vmatpush1.bf16.msra.mxu1 %v1090_v52  ;;  %1061 = vmatprep.subr.bf16.mxu0 %v1060_v53  ;;  %v1068_v14 = vpack.c.bf16 %v126_v9, %v118_v8  ;;  %v119_v17 = vld [vmem:[%s2142_s1 + $0x310] sm:$0xff]  ;;  %v1100_v18 = vpack.c.bf16 %v128_v11, %v120_v10  ;;  %v134_v20 = vld [vmem:[%s2142_s1 + $0x388] sm:$0xff]  ;;  %v136_v22 = vld [vmem:[%s2142_s1 + $0x398] sm:$0xff]  ;;  %v1070_v24 = vpack.c.bf16 %v125_v16, %v117_v15 }
  0x14   :  { %1093 = vmatprep.subr.bf16.mxu1 %v1092_v57  ;;  %v127_v19 = vld [vmem:[%s2142_s1 + $0x350] sm:$0xff]  ;;  %v142_v21 = vld [vmem:[%s2142_s1 + $0x3c8] sm:$0xff]  ;;  %v144_v23 = vld [vmem:[%s2142_s1 + $0x3d8] sm:$0xff] }
  0x15   :  { %v1102_v25 = vpack.c.bf16 %v127_v19, %v119_v17  ;;  %v1072_v26 = vpack.c.bf16 %v142_v21, %v134_v20  ;;  %v133_v27 = vld [vmem:[%s2142_s1 + $0x380] sm:$0xff]  ;;  %v135_v29 = vld [vmem:[%s2142_s1 + $0x390] sm:$0xff]  ;;  %v1104_v30 = vpack.c.bf16 %v144_v23, %v136_v22  ;;  %v26_v32 = vld [vmem:[%s2142_s1 + $0x28] sm:$0xff] }
  0x16   :  { %1063 = vmatpush1.bf16.msra.mxu0 %v1062_v63  ;;  %v141_v28 = vld [vmem:[%s2142_s1 + $0x3c0] sm:$0xff]  ;;  %v143_v31 = vld [vmem:[%s2142_s1 + $0x3d0] sm:$0xff]  ;;  %v34_v33 = vld [vmem:[%s2142_s1 + $0x68] sm:$0xff] }
  0x17   :  { %1095 = vmatpush1.bf16.msra.mxu1 %v1094_v0  ;;  %1065 = vmatprep.subr.bf16.mxu0 %v1064_v1  ;;  %v28_v34 = vld [vmem:[%s2142_s1 + $0x38] sm:$0xff]  ;;  %v1074_v36 = vpack.c.bf16 %v141_v28, %v133_v27  ;;  %v1106_v37 = vpack.c.bf16 %v143_v31, %v135_v29  ;;  %v1108_v38 = vpack.c.bf16 %v34_v33, %v26_v32  ;;  %v25_v39 = vld [vmem:[%s2142_s1 + $0x20] sm:$0xff]  ;;  %v27_v41 = vld [vmem:[%s2142_s1 + $0x30] sm:$0xff] }
  0x18   :  { %1097 = vmatprep.subr.bf16.mxu1 %v1096_v6  ;;  %v36_v35 = vld [vmem:[%s2142_s1 + $0x78] sm:$0xff]  ;;  %v33_v40 = vld [vmem:[%s2142_s1 + $0x60] sm:$0xff]  ;;  %v35_v43 = vld [vmem:[%s2142_s1 + $0x70] sm:$0xff] }
  0x19   :  { %v1140_v42 = vpack.c.bf16 %v36_v35, %v28_v34  ;;  %v42_v44 = vld [vmem:[%s2142_s1 + $0xa8] sm:$0xff]  ;;  %v44_v46 = vld [vmem:[%s2142_s1 + $0xb8] sm:$0xff]  ;;  %v1565_v48 = vld [vmem:[%s2143_s0] sm:$0x3]  ;;  %v1110_v49 = vpack.c.bf16 %v33_v40, %v25_v39  ;;  %v1142_v50 = vpack.c.bf16 %v35_v43, %v27_v41 }
  0x1a   :  { %1067 = vmatpush1.bf16.msra.mxu0 %v1066_v12  ;;  %v50_v45 = vld [vmem:[%s2142_s1 + $0xe8] sm:$0xff]  ;;  %v52_v47 = vld [vmem:[%s2142_s1 + $0xf8] sm:$0xff]  ;;  %v41_v52 = vld [vmem:[%s2142_s1 + $0xa0] sm:$0xff] }
  0x1b   :  { %1099 = vmatpush1.bf16.msra.mxu1 %v1098_v13  ;;  %1069 = vmatprep.subr.bf16.mxu0 %v1068_v14  ;;  %v1112_v51 = vpack.c.bf16 %v50_v45, %v42_v44  ;;  %v49_v53 = vld [vmem:[%s2142_s1 + $0xe0] sm:$0xff]  ;;  %v43_v54 = vld [vmem:[%s2142_s1 + $0xb0] sm:$0xff]  ;;  %v1144_v55 = vpack.c.bf16 %v52_v47, %v44_v46  ;;  %v58_v57 = vld [vmem:[%s2142_s1 + $0x128] sm:$0xff] }
  0x1c   :  { %1101 = vmatprep.subr.bf16.mxu1 %v1100_v18  ;;  %v51_v56 = vld [vmem:[%s2142_s1 + $0xf0] sm:$0xff]  ;;  %v66_v58 = vld [vmem:[%s2142_s1 + $0x168] sm:$0xff]  ;;  %v60_v59 = vld [vmem:[%s2142_s1 + $0x138] sm:$0xff]  ;;  %v1114_v61 = vpack.c.bf16 %v49_v53, %v41_v52 }
  0x1d   :  { %v68_v60 = vld [vmem:[%s2142_s1 + $0x178] sm:$0xff]  ;;  %v1146_v62 = vpack.c.bf16 %v51_v56, %v43_v54  ;;  %v1116_v63 = vpack.c.bf16 %v66_v58, %v58_v57  ;;  %v57_v0 = vld [vmem:[%s2142_s1 + $0x120] sm:$0xff]  ;;  %v59_v2 = vld [vmem:[%s2142_s1 + $0x130] sm:$0xff] }
  0x1e   :  { %1071 = vmatpush1.bf16.msra.mxu0 %v1070_v24  ;;  %v65_v1 = vld [vmem:[%s2142_s1 + $0x160] sm:$0xff]  ;;  %v1148_v4 = vpack.c.bf16 %v68_v60, %v60_v59  ;;  %v67_v5 = vld [vmem:[%s2142_s1 + $0x170] sm:$0xff]  ;;  %v74_v6 = vld [vmem:[%s2142_s1 + $0x1a8] sm:$0xff] }
  0x1f   :  { %1103 = vmatpush1.bf16.msra.mxu1 %v1102_v25  ;;  %1073 = vmatprep.subr.bf16.mxu0 %v1072_v26  ;;  %v82_v7 = vld [vmem:[%s2142_s1 + $0x1e8] sm:$0xff]  ;;  %v76_v8 = vld [vmem:[%s2142_s1 + $0x1b8] sm:$0xff]  ;;  %v1118_v10 = vpack.c.bf16 %v65_v1, %v57_v0  ;;  %v1150_v11 = vpack.c.bf16 %v67_v5, %v59_v2  ;;  %v73_v13 = vld [vmem:[%s2142_s1 + $0x1a0] sm:$0xff] }
  0x20   :  { %1105 = vmatprep.subr.bf16.mxu1 %v1104_v30  ;;  %v84_v9 = vld [vmem:[%s2142_s1 + $0x1f8] sm:$0xff]  ;;  %v1120_v12 = vpack.c.bf16 %v82_v7, %v74_v6  ;;  %v81_v14 = vld [vmem:[%s2142_s1 + $0x1e0] sm:$0xff]  ;;  %v75_v15 = vld [vmem:[%s2142_s1 + $0x1b0] sm:$0xff] }
  0x21   :  { %v83_v16 = vld [vmem:[%s2142_s1 + $0x1f0] sm:$0xff]  ;;  %v90_v17 = vld [vmem:[%s2142_s1 + $0x228] sm:$0xff]  ;;  %v92_v19 = vld [vmem:[%s2142_s1 + $0x238] sm:$0xff]  ;;  %v1122_v21 = vpack.c.bf16 %v81_v14, %v73_v13 }
  0x22   :  { %1075 = vmatpush1.bf16.msra.mxu0 %v1074_v36  ;;  %v98_v18 = vld [vmem:[%s2142_s1 + $0x268] sm:$0xff]  ;;  %v100_v20 = vld [vmem:[%s2142_s1 + $0x278] sm:$0xff]  ;;  %v1154_v22 = vpack.c.bf16 %v83_v16, %v75_v15  ;;  %v89_v24 = vld [vmem:[%s2142_s1 + $0x220] sm:$0xff] }
  0x23   :  { %1107 = vmatpush1.bf16.msra.mxu1 %v1106_v37  ;;  %1109 = vmatprep.subr.bf16.mxu0 %v1108_v38  ;;  %v1124_v23 = vpack.c.bf16 %v98_v18, %v90_v17  ;;  %v97_v25 = vld [vmem:[%s2142_s1 + $0x260] sm:$0xff]  ;;  %v91_v26 = vld [vmem:[%s2142_s1 + $0x230] sm:$0xff]  ;;  %v1156_v27 = vpack.c.bf16 %v100_v20, %v92_v19  ;;  %v106_v29 = vld [vmem:[%s2142_s1 + $0x2a8] sm:$0xff] }
  0x24   :  { %1141 = vmatprep.subr.bf16.mxu1 %v1140_v42  ;;  %v99_v28 = vld [vmem:[%s2142_s1 + $0x270] sm:$0xff]  ;;  %v114_v30 = vld [vmem:[%s2142_s1 + $0x2e8] sm:$0xff]  ;;  %v108_v31 = vld [vmem:[%s2142_s1 + $0x2b8] sm:$0xff]  ;;  %v1126_v33 = vpack.c.bf16 %v97_v25, %v89_v24 }
  0x25   :  { %256 = vmatmul.mubr.f32.vlgmr.msra.gmra.mrb[0].mxu0 %v1565_v48  ;;  %v116_v32 = vld [vmem:[%s2142_s1 + $0x2f8] sm:$0xff]  ;;  %v1158_v34 = vpack.c.bf16 %v99_v28, %v91_v26  ;;  %v1128_v35 = vpack.c.bf16 %v114_v30, %v106_v29  ;;  %v105_v36 = vld [vmem:[%s2142_s1 + $0x2a0] sm:$0xff]  ;;  %v107_v38 = vld [vmem:[%s2142_s1 + $0x2b0] sm:$0xff] }
  0x26   :  { %327 = vmatmul.mubr.f32.vlgmr.msra.gmra.mrb[0].mxu1 %v1565_v48  ;;  %1111 = vmatpush1.bf16.msra.mxu0 %v1110_v49  ;;  %v113_v37 = vld [vmem:[%s2142_s1 + $0x2e0] sm:$0xff]  ;;  %v1160_v39 = vpack.c.bf16 %v116_v32, %v108_v31  ;;  %v115_v40 = vld [vmem:[%s2142_s1 + $0x2f0] sm:$0xff]  ;;  %v122_v41 = vld [vmem:[%s2142_s1 + $0x328] sm:$0xff] }
  0x27   :  { %1143 = vmatpush1.bf16.msra.mxu1 %v1142_v50  ;;  %1113 = vmatprep.subr.bf16.mxu0 %v1112_v51  ;;  %v130_v42 = vld [vmem:[%s2142_s1 + $0x368] sm:$0xff]  ;;  %v124_v43 = vld [vmem:[%s2142_s1 + $0x338] sm:$0xff]  ;;  %v1130_v45 = vpack.c.bf16 %v113_v37, %v105_v36  ;;  %v1162_v46 = vpack.c.bf16 %v115_v40, %v107_v38  ;;  %v121_v49 = vld [vmem:[%s2142_s1 + $0x320] sm:$0xff] }
  0x28   :  { %1145 = vmatprep.subr.bf16.mxu1 %v1144_v55  ;;  %397 = vmatprep.mubr.f32.mxu0 %v1301_v3  ;;  %v132_v44 = vld [vmem:[%s2142_s1 + $0x378] sm:$0xff]  ;;  %v1132_v47 = vpack.c.bf16 %v130_v42, %v122_v41  ;;  %v129_v50 = vld [vmem:[%s2142_s1 + $0x360] sm:$0xff]  ;;  %v123_v51 = vld [vmem:[%s2142_s1 + $0x330] sm:$0xff] }
  0x29   :  { %468 = vmatprep.mubr.f32.mxu1 %v1301_v3  ;;  %v1152_v3 = vpack.c.bf16 %v84_v9, %v76_v8  ;;  %v1164_v52 = vpack.c.bf16 %v132_v44, %v124_v43  ;;  %v131_v53 = vld [vmem:[%s2142_s1 + $0x370] sm:$0xff]  ;;  %v138_v54 = vld [vmem:[%s2142_s1 + $0x3a8] sm:$0xff]  ;;  %v140_v56 = vld [vmem:[%s2142_s1 + $0x3b8] sm:$0xff]  ;;  %v1134_v58 = vpack.c.bf16 %v129_v50, %v121_v49 }
  0x2a   :  { %1115 = vmatpush1.bf16.msra.mxu0 %v1114_v61  ;;  %v146_v55 = vld [vmem:[%s2142_s1 + $0x3e8] sm:$0xff]  ;;  %v148_v57 = vld [vmem:[%s2142_s1 + $0x3f8] sm:$0xff]  ;;  %v1166_v59 = vpack.c.bf16 %v131_v53, %v123_v51  ;;  %v137_v61 = vld [vmem:[%s2142_s1 + $0x3a0] sm:$0xff] }
  0x2b   :  { %1147 = vmatpush1.bf16.msra.mxu1 %v1146_v62  ;;  %1117 = vmatprep.subr.bf16.mxu0 %v1116_v63  ;;  %v1136_v60 = vpack.c.bf16 %v146_v55, %v138_v54  ;;  %v145_v62 = vld [vmem:[%s2142_s1 + $0x3e0] sm:$0xff]  ;;  %v139_v63 = vld [vmem:[%s2142_s1 + $0x3b0] sm:$0xff]  ;;  %v1168_v0 = vpack.c.bf16 %v148_v57, %v140_v56  ;;  %v532_v6 = vld [vmem:[%s2144_s3 + $0x188] sm:$0xff] }
  0x2c   :  { %1149 = vmatprep.subr.bf16.mxu1 %v1148_v4  ;;  %v147_v1 = vld [vmem:[%s2142_s1 + $0x3f0] sm:$0xff]  ;;  %v499_v2 = vld [vmem:[%s2144_s3 + $0x80] sm:$0xff]  ;;  %v500_v4 = vld [vmem:[%s2144_s3 + $0x88] sm:$0xff]  ;;  %v1138_v7 = vpack.c.bf16 %v145_v62, %v137_v61 }
  0x2d   :  { %v531_v5 = vld [vmem:[%s2144_s3 + $0x180] sm:$0xff]  ;;  %v1170_v8 = vpack.c.bf16 %v147_v1, %v139_v63  ;;  %v1172_v9 = vpack.c.bf16 %v500_v4, %v499_v2  ;;  %v516_v14 = vld [vmem:[%s2144_s3 + $0x108] sm:$0xff]  ;;  %v501_v15 = vld [vmem:[%s2144_s3 + $0x90] sm:$0xff] }
  0x2e   :  { %1119 = vmatpush1.bf16.msra.mxu0 %v1118_v10  ;;  %v483_v10 = vld [vmem:[%s2144_s3] sm:$0xff]  ;;  %v1204_v13 = vpack.c.bf16 %v532_v6, %v531_v5  ;;  %v533_v16 = vld [vmem:[%s2144_s3 + $0x190] sm:$0xff]  ;;  %v534_v17 = vld [vmem:[%s2144_s3 + $0x198] sm:$0xff] }
  0x2f   :  { %1151 = vmatpush1.bf16.msra.mxu1 %v1150_v11  ;;  %1121 = vmatprep.subr.bf16.mxu0 %v1120_v12  ;;  %v484_v11 = vld [vmem:[%s2144_s3 + $0x8] sm:$0xff]  ;;  %v515_v12 = vld [vmem:[%s2144_s3 + $0x100] sm:$0xff]  ;;  %v1208_v24 = vpack.c.bf16 %v534_v17, %v533_v16  ;;  %v518_v25 = vld [vmem:[%s2144_s3 + $0x118] sm:$0xff] }
  0x30   :  { %1153 = vmatprep.subr.bf16.mxu1 %v1152_v3  ;;  %v502_v3 = vld [vmem:[%s2144_s3 + $0x98] sm:$0xff]  ;;  %v1174_v18 = vpack.c.bf16 %v484_v11, %v483_v10  ;;  %v1206_v19 = vpack.c.bf16 %v516_v14, %v515_v12  ;;  %v503_v26 = vld [vmem:[%s2144_s3 + $0xa0] sm:$0xff]  ;;  %v536_v29 = vld [vmem:[%s2144_s3 + $0x1a8] sm:$0xff] }
  0x31   :  { %v1176_v20 = vpack.c.bf16 %v502_v3, %v501_v15  ;;  %v535_v28 = vld [vmem:[%s2144_s3 + $0x1a0] sm:$0xff]  ;;  %v520_v36 = vld [vmem:[%s2144_s3 + $0x128] sm:$0xff]  ;;  %v505_v37 = vld [vmem:[%s2144_s3 + $0xb0] sm:$0xff] }
  0x32   :  { %1123 = vmatpush1.bf16.msra.mxu0 %v1122_v21  ;;  %v485_v21 = vld [vmem:[%s2144_s3 + $0x10] sm:$0xff]  ;;  %v506_v38 = vld [vmem:[%s2144_s3 + $0xb8] sm:$0xff]  ;;  %v507_v50 = vld [vmem:[%s2144_s3 + $0xc0] sm:$0xff] }
  0x33   :  { %1155 = vmatpush1.bf16.msra.mxu1 %v1154_v22  ;;  %1125 = vmatprep.subr.bf16.mxu0 %v1124_v23  ;;  %v486_v22 = vld [vmem:[%s2144_s3 + $0x18] sm:$0xff]  ;;  %v517_v23 = vld [vmem:[%s2144_s3 + $0x110] sm:$0xff]  ;;  %v1184_v43 = vpack.c.bf16 %v506_v38, %v505_v37  ;;  %v508_v51 = vld [vmem:[%s2144_s3 + $0xc8] sm:$0xff] }
  0x34   :  { %1157 = vmatprep.subr.bf16.mxu1 %v1156_v27  ;;  %v504_v27 = vld [vmem:[%s2144_s3 + $0xa8] sm:$0xff]  ;;  %v1178_v30 = vpack.c.bf16 %v486_v22, %v485_v21  ;;  %v1210_v31 = vpack.c.bf16 %v518_v25, %v517_v23  ;;  %v538_v40 = vld [vmem:[%s2144_s3 + $0x1b8] sm:$0xff]  ;;  %v489_v44 = vld [vmem:[%s2144_s3 + $0x30] sm:$0xff]  ;;  %v1188_v56 = vpack.c.bf16 %v508_v51, %v507_v50 }
  0x35   :  { %v1180_v32 = vpack.c.bf16 %v504_v27, %v503_v26  ;;  %v522_v49 = vld [vmem:[%s2144_s3 + $0x138] sm:$0xff]  ;;  %v540_v53 = vld [vmem:[%s2144_s3 + $0x1c8] sm:$0xff]  ;;  %v491_v57 = vld [vmem:[%s2144_s3 + $0x40] sm:$0xff] }
  0x36   :  { %1127 = vmatpush1.bf16.msra.mxu0 %v1126_v33  ;;  %v487_v33 = vld [vmem:[%s2144_s3 + $0x20] sm:$0xff]  ;;  %v524_v61 = vld [vmem:[%s2144_s3 + $0x148] sm:$0xff]  ;;  %v509_v62 = vld [vmem:[%s2144_s3 + $0xd0] sm:$0xff] }
  0x37   :  { %1159 = vmatpush1.bf16.msra.mxu1 %v1158_v34  ;;  %1129 = vmatprep.subr.bf16.mxu0 %v1128_v35  ;;  %v488_v34 = vld [vmem:[%s2144_s3 + $0x28] sm:$0xff]  ;;  %v519_v35 = vld [vmem:[%s2144_s3 + $0x120] sm:$0xff]  ;;  %v510_v63 = vld [vmem:[%s2144_s3 + $0xd8] sm:$0xff] }
  0x38   :  { %1161 = vmatprep.subr.bf16.mxu1 %v1160_v39  ;;  %v537_v39 = vld [vmem:[%s2144_s3 + $0x1b0] sm:$0xff]  ;;  %v1182_v41 = vpack.c.bf16 %v488_v34, %v487_v33  ;;  %v1214_v42 = vpack.c.bf16 %v520_v36, %v519_v35  ;;  %v542_v1 = vld [vmem:[%s2144_s3 + $0x1d8] sm:$0xff]  ;;  %v1192_v5 = vpack.c.bf16 %v510_v63, %v509_v62  ;;  %v511_v11 = vld [vmem:[%s2144_s3 + $0xe0] sm:$0xff] }
  0x39   :  { %v493_v6 = vld [vmem:[%s2144_s3 + $0x50] sm:$0xff]  ;;  %v526_v10 = vld [vmem:[%s2144_s3 + $0x158] sm:$0xff]  ;;  %v512_v12 = vld [vmem:[%s2144_s3 + $0xe8] sm:$0xff] }
  0x3a   :  { %1131 = vmatpush1.bf16.msra.mxu0 %v1130_v45  ;;  %v490_v45 = vld [vmem:[%s2144_s3 + $0x38] sm:$0xff]  ;;  %v544_v14 = vld [vmem:[%s2144_s3 + $0x1e8] sm:$0xff]  ;;  %v1196_v16 = vpack.c.bf16 %v512_v12, %v511_v11  ;;  %v545_v26 = vld [vmem:[%s2144_s3 + $0x1f0] sm:$0xff] }
  0x3b   :  { %1163 = vmatpush1.bf16.msra.mxu1 %v1162_v46  ;;  %1133 = vmatprep.subr.bf16.mxu0 %v1132_v47  ;;  %v521_v46 = vld [vmem:[%s2144_s3 + $0x130] sm:$0xff]  ;;  %v1216_v47 = vpack.c.bf16 %v538_v40, %v537_v39  ;;  %v1186_v54 = vpack.c.bf16 %v490_v45, %v489_v44  ;;  %v528_v22 = vld [vmem:[%s2144_s3 + $0x168] sm:$0xff]  ;;  %v514_v25 = vld [vmem:[%s2144_s3 + $0xf8] sm:$0xff] }
  0x3c   :  { %1165 = vmatprep.subr.bf16.mxu1 %v1164_v52  ;;  %v539_v52 = vld [vmem:[%s2144_s3 + $0x1c0] sm:$0xff]  ;;  %v1218_v55 = vpack.c.bf16 %v522_v49, %v521_v46  ;;  %v529_v33 = vld [vmem:[%s2144_s3 + $0x170] sm:$0xff]  ;;  %v530_v34 = vld [vmem:[%s2144_s3 + $0x178] sm:$0xff] }
  0x3d   :  { %v1234_v35 = vpack.c.bf16 %v530_v34, %v529_v33  ;;  %v564_v36 = vld [vmem:[%s2144_s3 + $0x288] sm:$0xff]  ;;  %v595_v37 = vld [vmem:[%s2144_s3 + $0x380] sm:$0xff] }
  0x3e   :  { %1135 = vmatpush1.bf16.msra.mxu0 %v1134_v58  ;;  %v492_v58 = vld [vmem:[%s2144_s3 + $0x48] sm:$0xff]  ;;  %v1939_v44 = vld [vmem:[%s2145_s2] sm:$0xff] }
  0x3f   :  { %1167 = vmatpush1.bf16.msra.mxu1 %v1166_v59  ;;  %1137 = vmatprep.subr.bf16.mxu0 %v1136_v60  ;;  %v523_v59 = vld [vmem:[%s2144_s3 + $0x140] sm:$0xff]  ;;  %v1220_v60 = vpack.c.bf16 %v540_v53, %v539_v52  ;;  %v1190_v2 = vpack.c.bf16 %v492_v58, %v491_v57  ;;  %v596_v39 = vld [vmem:[%s2144_s3 + $0x388] sm:$0xff] }
  0x40   :  { %1169 = vmatprep.subr.bf16.mxu1 %v1168_v0  ;;  %v541_v0 = vld [vmem:[%s2144_s3 + $0x1d0] sm:$0xff]  ;;  %v1222_v4 = vpack.c.bf16 %v524_v61, %v523_v59  ;;  %v1268_v40 = vpack.c.bf16 %v596_v39, %v595_v37  ;;  %v547_v57 = vld [vmem:[%s2144_s3 + $0x200] sm:$0xff]  ;;  %v548_v58 = vld [vmem:[%s2144_s3 + $0x208] sm:$0xff] }
  0x41   :  { %v579_v59 = vld [vmem:[%s2144_s3 + $0x300] sm:$0xff]  ;;  %v580_v63 = vld [vmem:[%s2144_s3 + $0x308] sm:$0xff]  ;;  %v585_v37 = vld [vmem:[%s2144_s3 + $0x330] sm:$0xff] }
  0x42   :  { %1139 = vmatpush1.bf16.msra.mxu0 %v1138_v7  ;;  %v494_v7 = vld [vmem:[%s2144_s3 + $0x58] sm:$0xff]  ;;  %v1270_v11 = vpack.c.bf16 %v580_v63, %v579_v59 }
  0x43   :  { %1171 = vmatpush1.bf16.msra.mxu1 %v1170_v8  ;;  %1173 = vmatprep.subr.bf16.mxu0 %v1172_v9  ;;  %v525_v8 = vld [vmem:[%s2144_s3 + $0x150] sm:$0xff]  ;;  %v1224_v9 = vpack.c.bf16 %v542_v1, %v541_v0  ;;  %v1194_v15 = vpack.c.bf16 %v494_v7, %v493_v6  ;;  %v566_v1 = vld [vmem:[%s2144_s3 + $0x298] sm:$0xff] }
  0x44   :  { %1205 = vmatprep.subr.bf16.mxu1 %v1204_v13  ;;  %v543_v13 = vld [vmem:[%s2144_s3 + $0x1e0] sm:$0xff]  ;;  %v1226_v3 = vpack.c.bf16 %v526_v10, %v525_v8  ;;  %v565_v0 = vld [vmem:[%s2144_s3 + $0x290] sm:$0xff]  ;;  %v598_v6 = vld [vmem:[%s2144_s3 + $0x398] sm:$0xff] }
  0x45   :  { %398 = vmatmul.mubr.f32.vlgmr.msra.gmra.mrb[2].mxu0 %v1565_v48  ;;  %v1228_v17 = vpack.c.bf16 %v544_v14, %v543_v13  ;;  %v1240_v12 = vpack.c.bf16 %v566_v1, %v565_v0  ;;  %v549_v13 = vld [vmem:[%s2144_s3 + $0x210] sm:$0xff]  ;;  %v550_v14 = vld [vmem:[%s2144_s3 + $0x218] sm:$0xff] }
  0x46   :  { %469 = vmatmul.mubr.f32.vlgmr.msra.gmra.mrb[2].mxu1 %v1565_v48  ;;  %1175 = vmatpush3.bf16.msra.mxu0 %v1174_v18  ;;  %v1212_v48 = vpack.c.bf16 %v536_v29, %v535_v28  ;;  %v495_v18 = vld [vmem:[%s2144_s3 + $0x60] sm:$0xff]  ;;  %v546_v28 = vld [vmem:[%s2144_s3 + $0x1f8] sm:$0xff]  ;;  %v497_v29 = vld [vmem:[%s2144_s3 + $0x70] sm:$0xff] }
  0x47   :  { %1207 = vmatpush3.bf16.msra.mxu1 %v1206_v19  ;;  %1177 = vmatprep.subr.bf16.mxu0 %v1176_v20  ;;  %v496_v19 = vld [vmem:[%s2144_s3 + $0x68] sm:$0xff]  ;;  %v527_v20 = vld [vmem:[%s2144_s3 + $0x160] sm:$0xff]  ;;  %v586_v39 = vld [vmem:[%s2144_s3 + $0x338] sm:$0xff] }
  0x48   :  { %1209 = vmatprep.subr.bf16.mxu1 %v1208_v24  ;;  %v1198_v21 = vpack.c.bf16 %v496_v19, %v495_v18  ;;  %v1230_v23 = vpack.c.bf16 %v528_v22, %v527_v20  ;;  %v513_v24 = vld [vmem:[%s2144_s3 + $0xf0] sm:$0xff]  ;;  %v568_v18 = vld [vmem:[%s2144_s3 + $0x2a8] sm:$0xff]  ;;  %v599_v19 = vld [vmem:[%s2144_s3 + $0x3a0] sm:$0xff] }
  0x49   :  { %v1200_v27 = vpack.c.bf16 %v514_v25, %v513_v24  ;;  %v600_v20 = vld [vmem:[%s2144_s3 + $0x3a8] sm:$0xff]  ;;  %v551_v24 = vld [vmem:[%s2144_s3 + $0x220] sm:$0xff]  ;;  %v558_v63 = vld [vmem:[%s2144_s3 + $0x258] sm:$0xff] }
  0x4a   :  { %1179 = vmatpush3.bf16.msra.mxu0 %v1178_v30  ;;  %v498_v30 = vld [vmem:[%s2144_s3 + $0x78] sm:$0xff]  ;;  %v552_v25 = vld [vmem:[%s2144_s3 + $0x228] sm:$0xff]  ;;  %v589_v0 = vld [vmem:[%s2144_s3 + $0x350] sm:$0xff] }
  0x4b   :  { %1211 = vmatpush3.bf16.msra.mxu1 %v1210_v31  ;;  %1181 = vmatprep.subr.bf16.mxu0 %v1180_v32  ;;  %v1232_v31 = vpack.c.bf16 %v546_v28, %v545_v26  ;;  %v1202_v32 = vpack.c.bf16 %v498_v30, %v497_v29  ;;  %v583_v26 = vld [vmem:[%s2144_s3 + $0x320] sm:$0xff]  ;;  %v584_v28 = vld [vmem:[%s2144_s3 + $0x328] sm:$0xff]  ;;  %v569_v29 = vld [vmem:[%s2144_s3 + $0x2b0] sm:$0xff]  ;;  %v1246_v33 = vpack.c.bf16 %v552_v25, %v551_v24 }
  0x4c   :  { %1213 = vmatprep.subr.bf16.mxu1 %v1212_v48  ;;  %v563_v48 = vld [vmem:[%s2144_s3 + $0x280] sm:$0xff]  ;;  %v570_v30 = vld [vmem:[%s2144_s3 + $0x2b8] sm:$0xff]  ;;  %v1278_v34 = vpack.c.bf16 %v584_v28, %v583_v26 }
  0x4d   :  { %v1236_v38 = vpack.c.bf16 %v564_v36, %v563_v48  ;;  %v553_v48 = vld [vmem:[%s2144_s3 + $0x230] sm:$0xff]  ;;  %v554_v36 = vld [vmem:[%s2144_s3 + $0x238] sm:$0xff] }
  0x4e   :  { %1183 = vmatpush3.bf16.msra.mxu0 %v1182_v41  ;;  %v151_v41 = vlaneseq }
  0x4f   :  { %1215 = vmatpush3.bf16.msra.mxu1 %v1214_v42  ;;  %1185 = vmatprep.subr.bf16.mxu0 %v1184_v43 }
  0x50   :  { %1217 = vmatprep.subr.bf16.mxu1 %v1216_v47  ;;  %v1933_v42 = vshrl.u32 %v151_v41, 7  ;;  %v572_v41 = vld [vmem:[%s2144_s3 + $0x2c8] sm:$0xff] }
  0x52   :  { %1187 = vmatpush3.bf16.msra.mxu0 %v1186_v54  ;;  %v153_v43 = vsub.s32 0, %v1933_v42  ;;  %v161_v45 = vsub.s32 2, %v1933_v42  ;;  %v157_v46 = vsub.s32 1, %v1933_v42  ;;  %v165_v47 = vsub.s32 3, %v1933_v42 }
  0x53   :  { %1219 = vmatpush3.bf16.msra.mxu1 %v1218_v55  ;;  %1189 = vmatprep.subr.bf16.mxu0 %v1188_v56 }
  0x54   :  { %1221 = vmatprep.subr.bf16.mxu1 %v1220_v60  ;;  %v154_v49 = vrot.slane %v1939_v44, %v153_v43  ;;  %v162_v50 = vrot.slane %v1939_v44, %v161_v45  ;;  %v158_v51 = vrot.slane %v1939_v44, %v157_v46  ;;  %v166_v52 = vrot.slane %v1939_v44, %v165_v47  ;;  %v603_v43 = vld [vmem:[%s2144_s3 + $0x3c0] sm:$0xff]  ;;  %v604_v45 = vld [vmem:[%s2144_s3 + $0x3c8] sm:$0xff] }
  0x55   :  { %v1250_v46 = vpack.c.bf16 %v554_v36, %v553_v48  ;;  %v1282_v47 = vpack.c.bf16 %v586_v39, %v585_v37 }
  0x56   :  { %1191 = vmatpush3.bf16.msra.mxu0 %v1190_v2 }
  0x57   :  { %1223 = vmatpush3.bf16.msra.mxu1 %v1222_v4  ;;  %1193 = vmatprep.subr.bf16.mxu0 %v1192_v5  ;;  %v597_v5 = vld [vmem:[%s2144_s3 + $0x390] sm:$0xff] }
  0x58   :  { %1225 = vmatprep.subr.bf16.mxu1 %v1224_v9  ;;  %v1238_v9 = vpack.c.bf16 %v548_v58, %v547_v57  ;;  %v605_v57 = vld [vmem:[%s2144_s3 + $0x3d0] sm:$0xff]  ;;  %v606_v58 = vld [vmem:[%s2144_s3 + $0x3d8] sm:$0xff] }
  0x59   :  { %v1288_v1 = vpack.c.bf16 %v606_v58, %v605_v57 }
  0x5a   :  { %1195 = vmatpush3.bf16.msra.mxu0 %v1194_v15  ;;  %v581_v15 = vld [vmem:[%s2144_s3 + $0x310] sm:$0xff] }
  0x5b   :  { %1227 = vmatpush3.bf16.msra.mxu1 %v1226_v3  ;;  %1197 = vmatprep.subr.bf16.mxu0 %v1196_v16  ;;  %v1272_v3 = vpack.c.bf16 %v598_v6, %v597_v5  ;;  %v582_v16 = vld [vmem:[%s2144_s3 + $0x318] sm:$0xff]  ;;  %v576_v5 = vld [vmem:[%s2144_s3 + $0x2e8] sm:$0xff]  ;;  %v607_v6 = vld [vmem:[%s2144_s3 + $0x3e0] sm:$0xff] }
  0x5c   :  { %1229 = vmatprep.subr.bf16.mxu1 %v1228_v17  ;;  %v567_v17 = vld [vmem:[%s2144_s3 + $0x2a0] sm:$0xff]  ;;  %v1274_v22 = vpack.c.bf16 %v582_v16, %v581_v15  ;;  %v592_v16 = vld [vmem:[%s2144_s3 + $0x368] sm:$0xff] }
  0x5e   :  { %1199 = vmatpush3.bf16.msra.mxu0 %v1198_v21  ;;  %v1242_v21 = vpack.c.bf16 %v550_v14, %v549_v13  ;;  %v560_v13 = vld [vmem:[%s2144_s3 + $0x268] sm:$0xff]  ;;  %v591_v14 = vld [vmem:[%s2144_s3 + $0x360] sm:$0xff] }
  0x5f   :  { %1231 = vmatpush3.bf16.msra.mxu1 %v1230_v23  ;;  %1201 = vmatprep.subr.bf16.mxu0 %v1200_v27  ;;  %v1244_v23 = vpack.c.bf16 %v568_v18, %v567_v17  ;;  %v1276_v27 = vpack.c.bf16 %v600_v20, %v599_v19  ;;  %v173_v17 = vsub.s32 5, %v1933_v42  ;;  %v577_v18 = vld [vmem:[%s2144_s3 + $0x2f0] sm:$0xff]  ;;  %v578_v19 = vld [vmem:[%s2144_s3 + $0x2f8] sm:$0xff]  ;;  %v181_v20 = vsub.s32 7, %v1933_v42 }
  0x60   :  { %1233 = vmatprep.subr.bf16.mxu1 %v1232_v31  ;;  %v601_v31 = vld [vmem:[%s2144_s3 + $0x3b0] sm:$0xff]  ;;  %v1294_v25 = vpack.c.bf16 %v592_v16, %v591_v14  ;;  %v1264_v26 = vpack.c.bf16 %v578_v19, %v577_v18 }
  0x62   :  { %1203 = vmatpush3.bf16.msra.mxu0 %v1202_v32  ;;  %v602_v32 = vld [vmem:[%s2144_s3 + $0x3b8] sm:$0xff] }
  0x63   :  { %1235 = vmatpush3.bf16.msra.mxu1 %v1234_v35  ;;  %1237 = vmatprep.subr.bf16.mxu0 %v1236_v38  ;;  %v1248_v35 = vpack.c.bf16 %v570_v30, %v569_v29  ;;  %v1280_v38 = vpack.c.bf16 %v602_v32, %v601_v31  ;;  %v174_v29 = vrot.slane %v1939_v44, %v173_v17  ;;  %v593_v31 = vld [vmem:[%s2144_s3 + $0x370] sm:$0xff]  ;;  %v594_v32 = vld [vmem:[%s2144_s3 + $0x378] sm:$0xff] }
  0x64   :  { %1269 = vmatprep.subr.bf16.mxu1 %v1268_v40  ;;  %v571_v40 = vld [vmem:[%s2144_s3 + $0x2c0] sm:$0xff] }
  0xf8   :  { %v257_v53 = vpop.f32.mrb[0].mxu0 }
  0xf9   :  { %v258_v54 = vadd.f32 %v257_v53, %v154_v49  ;;  %v328_v55 = vpop.f32.mrb[0].mxu1  ;;  %v259_v56 = vpop.f32.mrb[1].mxu0  ;;  %v1252_v49 = vpack.c.bf16 %v572_v41, %v571_v40  ;;  %v1284_v53 = vpack.c.bf16 %v604_v45, %v603_v43 }
  0xfa   :  { %v329_v60 = vadd.f32 %v328_v55, %v162_v50  ;;  %v260_v61 = vadd.f32 %v259_v56, %v158_v51  ;;  %v330_v62 = vpop.f32.mrb[1].mxu1  ;;  %v555_v50 = vld [vmem:[%s2144_s3 + $0x240] sm:$0xff]  ;;  %v556_v51 = vld [vmem:[%s2144_s3 + $0x248] sm:$0xff]  ;;  %v573_v55 = vld [vmem:[%s2144_s3 + $0x2d0] sm:$0xff] }
  0xfb   :  { %v475_v2 = vmax.f32 %v258_v54, 0.0  ;;  %v331_v4 = vadd.f32 %v330_v62, %v166_v52  ;;  %v587_v52 = vld [vmem:[%s2144_s3 + $0x340] sm:$0xff]  ;;  %v588_v54 = vld [vmem:[%s2144_s3 + $0x348] sm:$0xff]  ;;  %v574_v56 = vld [vmem:[%s2144_s3 + $0x2d8] sm:$0xff]  ;;  %v1254_v59 = vpack.c.bf16 %v556_v51, %v555_v50 }
  0xfc   :  { %v477_v7 = vmax.f32 %v329_v60, 0.0  ;;  %v476_v8 = vmax.f32 %v260_v61, 0.0  ;;  %v1286_v60 = vpack.c.bf16 %v588_v54, %v587_v52  ;;  %v1256_v61 = vpack.c.bf16 %v574_v56, %v573_v55  ;;  %v557_v62 = vld [vmem:[%s2144_s3 + $0x250] sm:$0xff]  ;;  %v903_v51 = vld [vmem:[%s2146_s4] ss:$0 sm:$0xff] }
  0xfd   :  { %v478_v10 = vmax.f32 %v331_v4, 0.0  ;;  %v575_v4 = vld [vmem:[%s2144_s3 + $0x2e0] sm:$0xff] }
  0xfe   :  { %682 = vmatprep.mubr.f32.mxu0 %v476_v8  ;;  %v1258_v8 = vpack.c.bf16 %v558_v63, %v557_v62 }
  0xff   :  { %752 = vmatprep.mubr.f32.mxu1 %v478_v10  ;;  %683 = vmatmul.mubr.f32.vlgmr.msra.gmra.mrb[4].mxu0 %v475_v2  ;;  %v590_v2 = vld [vmem:[%s2144_s3 + $0x358] sm:$0xff]  ;;  %v1260_v10 = vpack.c.bf16 %v576_v5, %v575_v4 }
 0x100   :  { %753 = vmatmul.mubr.f32.vlgmr.msra.gmra.mrb[4].mxu1 %v477_v7  ;;  %1239 = vmatpush3.bf16.msra.mxu0 %v1238_v9  ;;  %v608_v7 = vld [vmem:[%s2144_s3 + $0x3e8] sm:$0xff]  ;;  %v1290_v9 = vpack.c.bf16 %v590_v2, %v589_v0 }
 0x101   :  { %1271 = vmatpush3.bf16.msra.mxu1 %v1270_v11  ;;  %1241 = vmatprep.subr.bf16.mxu0 %v1240_v12  ;;  %v169_v11 = vsub.s32 4, %v1933_v42  ;;  %v559_v12 = vld [vmem:[%s2144_s3 + $0x260] sm:$0xff]  ;;  %v1292_v15 = vpack.c.bf16 %v608_v7, %v607_v6 }
 0x102   :  { %1273 = vmatprep.subr.bf16.mxu1 %v1272_v3  ;;  %v177_v3 = vsub.s32 6, %v1933_v42  ;;  %v561_v42 = vld [vmem:[%s2144_s3 + $0x270] sm:$0xff] }
 0x103   :  { %v170_v24 = vrot.slane %v1939_v44, %v169_v11 }
 0x104   :  { %1243 = vmatpush3.bf16.msra.mxu0 %v1242_v21  ;;  %v609_v21 = vld [vmem:[%s2144_s3 + $0x3f0] sm:$0xff]  ;;  %v178_v28 = vrot.slane %v1939_v44, %v177_v3 }
 0x105   :  { %1275 = vmatpush3.bf16.msra.mxu1 %v1274_v22  ;;  %1245 = vmatprep.subr.bf16.mxu0 %v1244_v23  ;;  %v610_v22 = vld [vmem:[%s2144_s3 + $0x3f8] sm:$0xff]  ;;  %v1262_v23 = vpack.c.bf16 %v560_v13, %v559_v12 }
 0x106   :  { %1277 = vmatprep.subr.bf16.mxu1 %v1276_v27  ;;  %v562_v27 = vld [vmem:[%s2144_s3 + $0x278] sm:$0xff]  ;;  %v1296_v30 = vpack.c.bf16 %v610_v22, %v609_v21 }
 0x108   :  { %1247 = vmatpush3.bf16.msra.mxu0 %v1246_v33  ;;  %v182_v33 = vrot.slane %v1939_v44, %v181_v20 }
 0x109   :  { %1279 = vmatpush3.bf16.msra.mxu1 %v1278_v34  ;;  %1249 = vmatprep.subr.bf16.mxu0 %v1248_v35  ;;  %v1266_v35 = vpack.c.bf16 %v562_v27, %v561_v42 }
 0x10a   :  { %1281 = vmatprep.subr.bf16.mxu1 %v1280_v38  ;;  %v1298_v38 = vpack.c.bf16 %v594_v32, %v593_v31 }
 0x10c   :  { %1251 = vmatpush3.bf16.msra.mxu0 %v1250_v46 }
 0x10d   :  { %1283 = vmatpush3.bf16.msra.mxu1 %v1282_v47  ;;  %1253 = vmatprep.subr.bf16.mxu0 %v1252_v49 }
 0x10e   :  { %1285 = vmatprep.subr.bf16.mxu1 %v1284_v53 }
 0x110   :  { %1255 = vmatpush3.bf16.msra.mxu0 %v1254_v59 }
 0x111   :  { %1287 = vmatpush3.bf16.msra.mxu1 %v1286_v60  ;;  %1257 = vmatprep.subr.bf16.mxu0 %v1256_v61 }
 0x112   :  { %1289 = vmatprep.subr.bf16.mxu1 %v1288_v1 }
 0x114   :  { %1259 = vmatpush3.bf16.msra.mxu0 %v1258_v8 }
 0x115   :  { %1291 = vmatpush3.bf16.msra.mxu1 %v1290_v9  ;;  %1261 = vmatprep.subr.bf16.mxu0 %v1260_v10 }
 0x116   :  { %1293 = vmatprep.subr.bf16.mxu1 %v1292_v15 }
 0x118   :  { %v399_v34 = vpop.f32.mrb[2].mxu0  ;;  %1263 = vmatpush3.bf16.msra.mxu0 %v1262_v23 }
 0x119   :  { %v400_v48 = vadd.f32 %v399_v34, %v170_v24  ;;  %v470_v36 = vpop.f32.mrb[2].mxu1  ;;  %1295 = vmatpush3.bf16.msra.mxu1 %v1294_v25  ;;  %v401_v37 = vpop.f32.mrb[3].mxu0  ;;  %1265 = vmatprep.subr.bf16.mxu0 %v1264_v26 }
 0x11a   :  { %v471_v39 = vadd.f32 %v470_v36, %v178_v28  ;;  %v402_v40 = vadd.f32 %v401_v37, %v174_v29  ;;  %v472_v41 = vpop.f32.mrb[3].mxu1  ;;  %1297 = vmatprep.subr.bf16.mxu1 %v1296_v30 }
 0x11b   :  { %v473_v43 = vadd.f32 %v472_v41, %v182_v33  ;;  %v479_v47 = vmax.f32 %v400_v48, 0.0 }
 0x11c   :  { %v481_v45 = vmax.f32 %v471_v39, 0.0  ;;  %v480_v46 = vmax.f32 %v402_v40, 0.0  ;;  %1267 = vmatpush3.bf16.msra.mxu0 %v1266_v35 }
 0x11d   :  { %v482_v49 = vmax.f32 %v473_v43, 0.0  ;;  %1299 = vmatpush3.bf16.msra.mxu1 %v1298_v38 }
 0x11e   :  { %822 = vmatprep.mubr.f32.mxu0 %v480_v46 }
 0x11f   :  { %892 = vmatprep.mubr.f32.mxu1 %v482_v49  ;;  %823 = vmatmul.mubr.f32.vlgmr.msra.gmra.mrb[6].mxu0 %v479_v47 }
 0x120   :  { %893 = vmatmul.mubr.f32.vlgmr.msra.gmra.mrb[6].mxu1 %v481_v45 }
 0x1d2   :  { %v936_v44 = vpop.f32.mrb[4].mxu0 }
 0x1d3   :  { %v971_v50 = vpop.f32.mrb[4].mxu1  ;;  %v937_v52 = vpop.f32.mrb[5].mxu0 }
 0x1d4   :  { %v938_v53 = vadd.f32 %v937_v52, %v936_v44  ;;  %v972_v54 = vpop.f32.mrb[5].mxu1 }
 0x1d5   :  { %v973_v55 = vadd.f32 %v972_v54, %v971_v50 }
 0x1d6   :  { %v685_v56 = vadd.f32 %v938_v53, %v903_v51 }
 0x1d8   :  { %v755_v57 = vadd.f32 %v973_v55, %v685_v56 }
 0x1f2   :  { %v1006_v58 = vpop.f32.mrb[6].mxu0 }
 0x1f3   :  { %v1041_v59 = vpop.f32.mrb[6].mxu1  ;;  %v1007_v60 = vpop.f32.mrb[7].mxu0 }
 0x1f4   :  { %v1008_v61 = vadd.f32 %v1007_v60, %v1006_v58  ;;  %v1042_v62 = vpop.f32.mrb[7].mxu1 }
 0x1f5   :  { %v1043_v63 = vadd.f32 %v1042_v62, %v1041_v59 }
 0x1f6   :  { %v825_v0 = vadd.f32 %v1008_v61, %v755_v57 }
 0x1f8   :  { %v895_v1 = vadd.f32 %v1043_v63, %v825_v0 }
 0x1fa   :  { %898 = vst [vmem:[%s2147_s5] sm:$0x3] %v895_v1 }

</bundles_post_ra>
